<compile_context>
chip_gen: v7x
topology: tpu7x:2x2x1
jax: 0.10.0
libtpu: 0.0.40
codegen_flags: <defaults>
</compile_context>

<pallas_src>
import jax
import jax.numpy as jnp
from jax.experimental import pallas as pl
from jax.experimental.pallas import tpu as pltpu

C_IN = 3
C_OUT = 16
SEQ = 32
PAD = 1
L_OUT = SEQ + 2 * PAD          # kernel_size=1, stride=1, padding=1 -> 34
N_SUB = 6

SUB_VALUES = (0.754, 0.12123, 0.8424, 0.2234, 0.7123, 0.934)


def _conv_sub_kernel(w_ref, x_ref, b_ref, sub_ref, o_ref):
    # w_ref:   (C_OUT, C_IN)          VMEM (trailing k=1 dim squeezed by BlockSpec)
    # x_ref:   (C_IN, SEQ)            VMEM (batch dim squeezed by BlockSpec)
    # b_ref:   (C_OUT, 1)             VMEM
    # sub_ref: (N_SUB,)               SMEM (scalar reads -> scalar-splat subtracts)
    # o_ref:   (N_SUB, C_OUT, L_OUT)  VMEM
    w = w_ref[...]
    x = x_ref[...]
    b = b_ref[...]

    # Conv1d with kernel_size=1: contraction over C_IN=3 as broadcast FMAs on
    # the VPU (exact f32, no MXU pass).  No input padding is materialized —
    # the zero-pad output columns reduce to `bias` because kernel_size == 1.
    v1 = w[:, 0:1] * x[0:1, :]
    for ci in range(1, C_IN):
        v1 = v1 + w[:, ci:ci + 1] * x[ci:ci + 1, :]
    inner = v1 + b                                  # (C_OUT, SEQ): output cols 1..SEQ

    # Broadcast subtract of sub[n]: per n, one scalar-splat vsub + stores.
    for n in range(N_SUB):
        s = sub_ref[n]                              # f32 scalar from SMEM
        edge = b - s                                # (C_OUT, 1): pad columns = bias - sub[n]
        o_ref[n, :, 0:PAD] = edge
        o_ref[n, :, PAD:PAD + SEQ] = inner - s
        o_ref[n, :, PAD + SEQ:L_OUT] = edge


@jax.jit
def conv1d_k1_sub(x, weight, bias, sub):
    """x: (1, C_IN, SEQ); weight: (C_OUT, C_IN, 1); bias: (C_OUT,); sub: (N_SUB,).

    Returns (N_SUB, C_OUT, L_OUT) f32, matching PyTorch broadcasting of
    Conv1d(3,16,1,stride=1,padding=1)(x) - sub.reshape(6,1,1)."""
    assert x.shape == (1, C_IN, SEQ), "kernel assumes batch size 1"
    assert weight.shape == (C_OUT, C_IN, 1) and bias.shape == (C_OUT,)
    assert sub.shape == (N_SUB,)

    b2 = bias.reshape(C_OUT, 1)       # zero-cost bitcast reshape (no HBM copy)

    return pl.pallas_call(
        _conv_sub_kernel,
        out_shape=jax.ShapeDtypeStruct((N_SUB, C_OUT, L_OUT), jnp.float32),
        in_specs=[
            # weight passed as-is; kernel-size-1 dim squeezed away by BlockSpec.
            pl.BlockSpec((C_OUT, C_IN, None), lambda: (0, 0, 0)),
            # x passed as-is; batch dim squeezed away by BlockSpec.
            pl.BlockSpec((None, C_IN, SEQ), lambda: (0, 0, 0)),
            # bias column, whole array in VMEM.
            pl.BlockSpec(memory_space=pltpu.MemorySpace.VMEM),
            # subtraction constants as SMEM scalars.
            pl.BlockSpec(memory_space=pltpu.MemorySpace.SMEM),
        ],
        out_specs=pl.BlockSpec(memory_space=pltpu.MemorySpace.VMEM),
        cost_estimate=pl.CostEstimate(
            flops=2 * C_OUT * C_IN * L_OUT + N_SUB * C_OUT * L_OUT,
            transcendentals=0,
            bytes_accessed=(C_OUT * C_IN + C_IN * SEQ + C_OUT + N_SUB
                            + N_SUB * C_OUT * L_OUT) * 4,
        ),
    )(weight, x, b2, sub)


def reference(x, weight, bias, sub):
    xp = jnp.pad(x, ((0, 0), (0, 0), (PAD, PAD)))
    v1 = jnp.einsum("oik,bil->bol", weight, xp,
                    precision=jax.lax.Precision.HIGHEST) + bias[None, :, None]
    return v1 - sub.reshape(N_SUB, 1, 1)


if __name__ == "__main__":
    key = jax.random.PRNGKey(0)
    kx, kw, kb = jax.random.split(key, 3)

    x = jax.random.normal(kx, (1, C_IN, SEQ), dtype=jnp.float32)
    # deterministic "Conv1d(3,16,1)" parameters (Kaiming-uniform-ish bound)
    bound = 1.0 / (C_IN ** 0.5)
    weight = jax.random.uniform(kw, (C_OUT, C_IN, 1), jnp.float32,
                                minval=-bound, maxval=bound)
    bias = jax.random.uniform(kb, (C_OUT,), jnp.float32,
                              minval=-bound, maxval=bound)
    sub = jnp.asarray(SUB_VALUES, dtype=jnp.float32)

    out = conv1d_k1_sub(x, weight, bias, sub)
    jax.block_until_ready(out)

    ref = reference(x, weight, bias, sub)
    assert out.shape == (N_SUB, C_OUT, L_OUT)
    assert jnp.allclose(out, ref, atol=1e-5, rtol=1e-5)
    print("KERNEL_OK")
</pallas_src>

<mosaic_0001>
module attributes {stable_mosaic.version = 11 : i64} {
  func.func @_conv_sub_kernel(%arg0: memref<16x3x1xf32, #tpu.memory_space<vmem>>, %arg1: memref<1x3x32xf32, #tpu.memory_space<vmem>>, %arg2: memref<16x1xf32, #tpu.memory_space<vmem>>, %arg3: memref<6xf32, #tpu.memory_space<smem>>, %arg4: memref<6x16x34xf32, #tpu.memory_space<vmem>>) attributes {dimension_semantics = [], scalar_prefetch = 0 : i64, scratch_operands = 0 : i64, tpu.core_type = #tpu.core_type<tc>} {
    %c0 = arith.constant 0 : index
    %c0_0 = arith.constant 0 : index
    %c0_1 = arith.constant 0 : index
    %0 = vector.load %arg0[%c0, %c0_0, %c0_1] : memref<16x3x1xf32, #tpu.memory_space<vmem>>, vector<16x3x1xf32>
    %1 = vector.shape_cast %0 : vector<16x3x1xf32> to vector<16x3xf32>
    %c0_2 = arith.constant 0 : index
    %c0_3 = arith.constant 0 : index
    %c0_4 = arith.constant 0 : index
    %2 = vector.load %arg1[%c0_2, %c0_3, %c0_4] : memref<1x3x32xf32, #tpu.memory_space<vmem>>, vector<1x3x32xf32>
    %3 = vector.shape_cast %2 : vector<1x3x32xf32> to vector<3x32xf32>
    %c0_5 = arith.constant 0 : index
    %c0_6 = arith.constant 0 : index
    %4 = vector.load %arg2[%c0_5, %c0_6] : memref<16x1xf32, #tpu.memory_space<vmem>>, vector<16x1xf32>
    %5 = vector.extract_strided_slice %1 {offsets = [0, 0], sizes = [16, 1], strides = [1, 1]} : vector<16x3xf32> to vector<16x1xf32>
    %6 = vector.extract_strided_slice %3 {offsets = [0, 0], sizes = [1, 32], strides = [1, 1]} : vector<3x32xf32> to vector<1x32xf32>
    %7 = vector.broadcast %5 : vector<16x1xf32> to vector<16x32xf32>
    %8 = vector.broadcast %6 : vector<1x32xf32> to vector<16x32xf32>
    %9 = arith.mulf %7, %8 : vector<16x32xf32>
    %10 = vector.extract_strided_slice %1 {offsets = [0, 1], sizes = [16, 1], strides = [1, 1]} : vector<16x3xf32> to vector<16x1xf32>
    %11 = vector.extract_strided_slice %3 {offsets = [1, 0], sizes = [1, 32], strides = [1, 1]} : vector<3x32xf32> to vector<1x32xf32>
    %12 = vector.broadcast %10 : vector<16x1xf32> to vector<16x32xf32>
    %13 = vector.broadcast %11 : vector<1x32xf32> to vector<16x32xf32>
    %14 = arith.mulf %12, %13 : vector<16x32xf32>
    %15 = arith.addf %9, %14 : vector<16x32xf32>
    %16 = vector.extract_strided_slice %1 {offsets = [0, 2], sizes = [16, 1], strides = [1, 1]} : vector<16x3xf32> to vector<16x1xf32>
    %17 = vector.extract_strided_slice %3 {offsets = [2, 0], sizes = [1, 32], strides = [1, 1]} : vector<3x32xf32> to vector<1x32xf32>
    %18 = vector.broadcast %16 : vector<16x1xf32> to vector<16x32xf32>
    %19 = vector.broadcast %17 : vector<1x32xf32> to vector<16x32xf32>
    %20 = arith.mulf %18, %19 : vector<16x32xf32>
    %21 = arith.addf %15, %20 : vector<16x32xf32>
    %22 = vector.broadcast %4 : vector<16x1xf32> to vector<16x32xf32>
    %23 = arith.addf %21, %22 : vector<16x32xf32>
    %c0_7 = arith.constant 0 : index
    %24 = memref.load %arg3[%c0_7] : memref<6xf32, #tpu.memory_space<smem>>
    %25 = vector.broadcast %24 : f32 to vector<16x1xf32>
    %26 = arith.subf %4, %25 : vector<16x1xf32>
    %c0_8 = arith.constant 0 : index
    %c0_9 = arith.constant 0 : index
    %c0_10 = arith.constant 0 : index
    %27 = vector.load %arg4[%c0_8, %c0_9, %c0_10] : memref<6x16x34xf32, #tpu.memory_space<vmem>>, vector<1x16x1xf32>
    %28 = vector.shape_cast %27 : vector<1x16x1xf32> to vector<16x1xf32>
    %29 = vector.shape_cast %26 : vector<16x1xf32> to vector<1x16x1xf32>
    tpu.vector_store %arg4[%c0_8, %c0_9, %c0_10], %29 {strides = array<i32>} : memref<6x16x34xf32, #tpu.memory_space<vmem>>, vector<1x16x1xf32>,
    %30 = vector.broadcast %24 : f32 to vector<16x32xf32>
    %31 = arith.subf %23, %30 : vector<16x32xf32>
    %c0_11 = arith.constant 0 : index
    %c0_12 = arith.constant 0 : index
    %c1 = arith.constant 1 : index
    %32 = vector.load %arg4[%c0_11, %c0_12, %c1] : memref<6x16x34xf32, #tpu.memory_space<vmem>>, vector<1x16x32xf32>
    %33 = vector.shape_cast %32 : vector<1x16x32xf32> to vector<16x32xf32>
    %34 = vector.shape_cast %31 : vector<16x32xf32> to vector<1x16x32xf32>
    tpu.vector_store %arg4[%c0_11, %c0_12, %c1], %34 {strides = array<i32>} : memref<6x16x34xf32, #tpu.memory_space<vmem>>, vector<1x16x32xf32>,
    %c0_13 = arith.constant 0 : index
    %c0_14 = arith.constant 0 : index
    %c33 = arith.constant 33 : index
    %35 = vector.load %arg4[%c0_13, %c0_14, %c33] : memref<6x16x34xf32, #tpu.memory_space<vmem>>, vector<1x16x1xf32>
    %36 = vector.shape_cast %35 : vector<1x16x1xf32> to vector<16x1xf32>
    %37 = vector.shape_cast %26 : vector<16x1xf32> to vector<1x16x1xf32>
    tpu.vector_store %arg4[%c0_13, %c0_14, %c33], %37 {strides = array<i32>} : memref<6x16x34xf32, #tpu.memory_space<vmem>>, vector<1x16x1xf32>,
    %c1_15 = arith.constant 1 : index
    %38 = memref.load %arg3[%c1_15] : memref<6xf32, #tpu.memory_space<smem>>
    %39 = vector.broadcast %38 : f32 to vector<16x1xf32>
    %40 = arith.subf %4, %39 : vector<16x1xf32>
    %c1_16 = arith.constant 1 : index
    %c0_17 = arith.constant 0 : index
    %c0_18 = arith.constant 0 : index
    %41 = vector.load %arg4[%c1_16, %c0_17, %c0_18] : memref<6x16x34xf32, #tpu.memory_space<vmem>>, vector<1x16x1xf32>
    %42 = vector.shape_cast %41 : vector<1x16x1xf32> to vector<16x1xf32>
    %43 = vector.shape_cast %40 : vector<16x1xf32> to vector<1x16x1xf32>
    tpu.vector_store %arg4[%c1_16, %c0_17, %c0_18], %43 {strides = array<i32>} : memref<6x16x34xf32, #tpu.memory_space<vmem>>, vector<1x16x1xf32>,
    %44 = vector.broadcast %38 : f32 to vector<16x32xf32>
    %45 = arith.subf %23, %44 : vector<16x32xf32>
    %c1_19 = arith.constant 1 : index
    %c0_20 = arith.constant 0 : index
    %c1_21 = arith.constant 1 : index
    %46 = vector.load %arg4[%c1_19, %c0_20, %c1_21] : memref<6x16x34xf32, #tpu.memory_space<vmem>>, vector<1x16x32xf32>
    %47 = vector.shape_cast %46 : vector<1x16x32xf32> to vector<16x32xf32>
    %48 = vector.shape_cast %45 : vector<16x32xf32> to vector<1x16x32xf32>
    tpu.vector_store %arg4[%c1_19, %c0_20, %c1_21], %48 {strides = array<i32>} : memref<6x16x34xf32, #tpu.memory_space<vmem>>, vector<1x16x32xf32>,
    %c1_22 = arith.constant 1 : index
    %c0_23 = arith.constant 0 : index
    %c33_24 = arith.constant 33 : index
    %49 = vector.load %arg4[%c1_22, %c0_23, %c33_24] : memref<6x16x34xf32, #tpu.memory_space<vmem>>, vector<1x16x1xf32>
    %50 = vector.shape_cast %49 : vector<1x16x1xf32> to vector<16x1xf32>
    %51 = vector.shape_cast %40 : vector<16x1xf32> to vector<1x16x1xf32>
    tpu.vector_store %arg4[%c1_22, %c0_23, %c33_24], %51 {strides = array<i32>} : memref<6x16x34xf32, #tpu.memory_space<vmem>>, vector<1x16x1xf32>,
    %c2 = arith.constant 2 : index
    %52 = memref.load %arg3[%c2] : memref<6xf32, #tpu.memory_space<smem>>
    %53 = vector.broadcast %52 : f32 to vector<16x1xf32>
    %54 = arith.subf %4, %53 : vector<16x1xf32>
    %c2_25 = arith.constant 2 : index
    %c0_26 = arith.constant 0 : index
    %c0_27 = arith.constant 0 : index
    %55 = vector.load %arg4[%c2_25, %c0_26, %c0_27] : memref<6x16x34xf32, #tpu.memory_space<vmem>>, vector<1x16x1xf32>
    %56 = vector.shape_cast %55 : vector<1x16x1xf32> to vector<16x1xf32>
    %57 = vector.shape_cast %54 : vector<16x1xf32> to vector<1x16x1xf32>
    tpu.vector_store %arg4[%c2_25, %c0_26, %c0_27], %57 {strides = array<i32>} : memref<6x16x34xf32, #tpu.memory_space<vmem>>, vector<1x16x1xf32>,
    %58 = vector.broadcast %52 : f32 to vector<16x32xf32>
    %59 = arith.subf %23, %58 : vector<16x32xf32>
    %c2_28 = arith.constant 2 : index
    %c0_29 = arith.constant 0 : index
    %c1_30 = arith.constant 1 : index
    %60 = vector.load %arg4[%c2_28, %c0_29, %c1_30] : memref<6x16x34xf32, #tpu.memory_space<vmem>>, vector<1x16x32xf32>
    %61 = vector.shape_cast %60 : vector<1x16x32xf32> to vector<16x32xf32>
    %62 = vector.shape_cast %59 : vector<16x32xf32> to vector<1x16x32xf32>
    tpu.vector_store %arg4[%c2_28, %c0_29, %c1_30], %62 {strides = array<i32>} : memref<6x16x34xf32, #tpu.memory_space<vmem>>, vector<1x16x32xf32>,
    %c2_31 = arith.constant 2 : index
    %c0_32 = arith.constant 0 : index
    %c33_33 = arith.constant 33 : index
    %63 = vector.load %arg4[%c2_31, %c0_32, %c33_33] : memref<6x16x34xf32, #tpu.memory_space<vmem>>, vector<1x16x1xf32>
    %64 = vector.shape_cast %63 : vector<1x16x1xf32> to vector<16x1xf32>
    %65 = vector.shape_cast %54 : vector<16x1xf32> to vector<1x16x1xf32>
    tpu.vector_store %arg4[%c2_31, %c0_32, %c33_33], %65 {strides = array<i32>} : memref<6x16x34xf32, #tpu.memory_space<vmem>>, vector<1x16x1xf32>,
    %c3 = arith.constant 3 : index
    %66 = memref.load %arg3[%c3] : memref<6xf32, #tpu.memory_space<smem>>
    %67 = vector.broadcast %66 : f32 to vector<16x1xf32>
    %68 = arith.subf %4, %67 : vector<16x1xf32>
    %c3_34 = arith.constant 3 : index
    %c0_35 = arith.constant 0 : index
    %c0_36 = arith.constant 0 : index
    %69 = vector.load %arg4[%c3_34, %c0_35, %c0_36] : memref<6x16x34xf32, #tpu.memory_space<vmem>>, vector<1x16x1xf32>
    %70 = vector.shape_cast %69 : vector<1x16x1xf32> to vector<16x1xf32>
    %71 = vector.shape_cast %68 : vector<16x1xf32> to vector<1x16x1xf32>
    tpu.vector_store %arg4[%c3_34, %c0_35, %c0_36], %71 {strides = array<i32>} : memref<6x16x34xf32, #tpu.memory_space<vmem>>, vector<1x16x1xf32>,
    %72 = vector.broadcast %66 : f32 to vector<16x32xf32>
    %73 = arith.subf %23, %72 : vector<16x32xf32>
    %c3_37 = arith.constant 3 : index
    %c0_38 = arith.constant 0 : index
    %c1_39 = arith.constant 1 : index
    %74 = vector.load %arg4[%c3_37, %c0_38, %c1_39] : memref<6x16x34xf32, #tpu.memory_space<vmem>>, vector<1x16x32xf32>
    %75 = vector.shape_cast %74 : vector<1x16x32xf32> to vector<16x32xf32>
    %76 = vector.shape_cast %73 : vector<16x32xf32> to vector<1x16x32xf32>
    tpu.vector_store %arg4[%c3_37, %c0_38, %c1_39], %76 {strides = array<i32>} : memref<6x16x34xf32, #tpu.memory_space<vmem>>, vector<1x16x32xf32>,
    %c3_40 = arith.constant 3 : index
    %c0_41 = arith.constant 0 : index
    %c33_42 = arith.constant 33 : index
    %77 = vector.load %arg4[%c3_40, %c0_41, %c33_42] : memref<6x16x34xf32, #tpu.memory_space<vmem>>, vector<1x16x1xf32>
    %78 = vector.shape_cast %77 : vector<1x16x1xf32> to vector<16x1xf32>
    %79 = vector.shape_cast %68 : vector<16x1xf32> to vector<1x16x1xf32>
    tpu.vector_store %arg4[%c3_40, %c0_41, %c33_42], %79 {strides = array<i32>} : memref<6x16x34xf32, #tpu.memory_space<vmem>>, vector<1x16x1xf32>,
    %c4 = arith.constant 4 : index
    %80 = memref.load %arg3[%c4] : memref<6xf32, #tpu.memory_space<smem>>
    %81 = vector.broadcast %80 : f32 to vector<16x1xf32>
    %82 = arith.subf %4, %81 : vector<16x1xf32>
    %c4_43 = arith.constant 4 : index
    %c0_44 = arith.constant 0 : index
    %c0_45 = arith.constant 0 : index
    %83 = vector.load %arg4[%c4_43, %c0_44, %c0_45] : memref<6x16x34xf32, #tpu.memory_space<vmem>>, vector<1x16x1xf32>
    %84 = vector.shape_cast %83 : vector<1x16x1xf32> to vector<16x1xf32>
    %85 = vector.shape_cast %82 : vector<16x1xf32> to vector<1x16x1xf32>
    tpu.vector_store %arg4[%c4_43, %c0_44, %c0_45], %85 {strides = array<i32>} : memref<6x16x34xf32, #tpu.memory_space<vmem>>, vector<1x16x1xf32>,
    %86 = vector.broadcast %80 : f32 to vector<16x32xf32>
    %87 = arith.subf %23, %86 : vector<16x32xf32>
    %c4_46 = arith.constant 4 : index
    %c0_47 = arith.constant 0 : index
    %c1_48 = arith.constant 1 : index
    %88 = vector.load %arg4[%c4_46, %c0_47, %c1_48] : memref<6x16x34xf32, #tpu.memory_space<vmem>>, vector<1x16x32xf32>
    %89 = vector.shape_cast %88 : vector<1x16x32xf32> to vector<16x32xf32>
    %90 = vector.shape_cast %87 : vector<16x32xf32> to vector<1x16x32xf32>
    tpu.vector_store %arg4[%c4_46, %c0_47, %c1_48], %90 {strides = array<i32>} : memref<6x16x34xf32, #tpu.memory_space<vmem>>, vector<1x16x32xf32>,
    %c4_49 = arith.constant 4 : index
    %c0_50 = arith.constant 0 : index
    %c33_51 = arith.constant 33 : index
    %91 = vector.load %arg4[%c4_49, %c0_50, %c33_51] : memref<6x16x34xf32, #tpu.memory_space<vmem>>, vector<1x16x1xf32>
    %92 = vector.shape_cast %91 : vector<1x16x1xf32> to vector<16x1xf32>
    %93 = vector.shape_cast %82 : vector<16x1xf32> to vector<1x16x1xf32>
    tpu.vector_store %arg4[%c4_49, %c0_50, %c33_51], %93 {strides = array<i32>} : memref<6x16x34xf32, #tpu.memory_space<vmem>>, vector<1x16x1xf32>,
    %c5 = arith.constant 5 : index
    %94 = memref.load %arg3[%c5] : memref<6xf32, #tpu.memory_space<smem>>
    %95 = vector.broadcast %94 : f32 to vector<16x1xf32>
    %96 = arith.subf %4, %95 : vector<16x1xf32>
    %c5_52 = arith.constant 5 : index
    %c0_53 = arith.constant 0 : index
    %c0_54 = arith.constant 0 : index
    %97 = vector.load %arg4[%c5_52, %c0_53, %c0_54] : memref<6x16x34xf32, #tpu.memory_space<vmem>>, vector<1x16x1xf32>
    %98 = vector.shape_cast %97 : vector<1x16x1xf32> to vector<16x1xf32>
    %99 = vector.shape_cast %96 : vector<16x1xf32> to vector<1x16x1xf32>
    tpu.vector_store %arg4[%c5_52, %c0_53, %c0_54], %99 {strides = array<i32>} : memref<6x16x34xf32, #tpu.memory_space<vmem>>, vector<1x16x1xf32>,
    %100 = vector.broadcast %94 : f32 to vector<16x32xf32>
    %101 = arith.subf %23, %100 : vector<16x32xf32>
    %c5_55 = arith.constant 5 : index
    %c0_56 = arith.constant 0 : index
    %c1_57 = arith.constant 1 : index
    %102 = vector.load %arg4[%c5_55, %c0_56, %c1_57] : memref<6x16x34xf32, #tpu.memory_space<vmem>>, vector<1x16x32xf32>
    %103 = vector.shape_cast %102 : vector<1x16x32xf32> to vector<16x32xf32>
    %104 = vector.shape_cast %101 : vector<16x32xf32> to vector<1x16x32xf32>
    tpu.vector_store %arg4[%c5_55, %c0_56, %c1_57], %104 {strides = array<i32>} : memref<6x16x34xf32, #tpu.memory_space<vmem>>, vector<1x16x32xf32>,
    %c5_58 = arith.constant 5 : index
    %c0_59 = arith.constant 0 : index
    %c33_60 = arith.constant 33 : index
    %105 = vector.load %arg4[%c5_58, %c0_59, %c33_60] : memref<6x16x34xf32, #tpu.memory_space<vmem>>, vector<1x16x1xf32>
    %106 = vector.shape_cast %105 : vector<1x16x1xf32> to vector<16x1xf32>
    %107 = vector.shape_cast %96 : vector<16x1xf32> to vector<1x16x1xf32>
    tpu.vector_store %arg4[%c5_58, %c0_59, %c33_60], %107 {strides = array<i32>} : memref<6x16x34xf32, #tpu.memory_space<vmem>>, vector<1x16x1xf32>,
    return
  }
}

</mosaic_0001>

<bundles_post_ra>
// kernel: conv1d_k1_sub.1
= control target key start
LH: loop header
LB: loop body
LE: loop exit
PB: predicated region body
PF: predicated region fallthrough
CT: control target
= control target key end

     0   :  { %9 = vsyncpa [#allocation4], 0  ;;  %s8060_s0 = inlined_call_operand.vmem [shape: f32[16,3,1], index: 0, kind: input, shape index: {}]   ;;  %s8061_s1 = inlined_call_operand.vmem [shape: f32[1,3,32], index: 1, kind: input, shape index: {}]   ;;  %s8062_s2 = inlined_call_operand.vmem [shape: f32[16,1], index: 2, kind: input, shape index: {}]   ;;  %s8063_s3 = inlined_call_operand.vmem [shape: f32[6], index: 3, kind: input, shape index: {}]   ;;  %s8064_s4 = inlined_call_operand.hbm [shape: f32[6,16,34], index: 4, kind: output, shape index: {}]  }
   0x1   :  { %10 = vsyncpa [#allocation3], 0  ;;  %s23_s17 = sshll.u32 %s8063_s3, 4  ;;  %s24_s17 = int_to_ptr.vmem [resolvable:$true] %s23_s17 }
   0x2   :  { %s4794_s18 = scalar_lea.vmem %s24_s17, 16  ;;  %p4799_p1 = scmp.lt.s32.totalorder %s24_s17, %s24_s17 }
   0x3   :  { %p4795_p0 = scmp.ne.s32.totalorder %s24_s17, %s4794_s18  ;;  %p4800_p2 = scmp.lt.s32.totalorder %s4794_s18, %s4794_s18 }
   0x5   :  { %p4801_p3 = por %p4800_p2, %p4799_p1 }
   0x7   :  { %p4802_p4 = pnand %p4801_p3, %p4795_p0 }
   0x9   :  { %4805 = shalt.err (!%p4802_p4)
}
   0xa   :  { %s4832_s19 = smov [#allocation2]  }
   0xb   :  { %26 = dma.vmem_to_smem %s24_s17, 16, %s4832_s19, [#allocation4]  }
   0xc   :  { %4828 = dma.done.wait [#allocation4], 16  }
   0xd   :  { %4829 = vsyncadd [#allocation4], 4294967280 }
   0xe   :  { %30 = sfence }
   0xf   :  { %v50_v0 = vlaneseq  ;;  %v4833_v1 = vmov 0   ;;  %v47_v4 = vld [vmem:[%s8061_s1] sm:$0x7]  ;;  %v4898_v19 = vld [vmem:[%s8062_s2 + $0x8] sm:$0xff]  ;;  %s4924_s26 = sld [smem:[#allocation2]]  ;;  %vm790_vm0 = vcmask 7168  }
  0x10   :  { %4787 = vset.pattern.permute.xlu1 %v4833_v1  ;;  %4786 = vset.pattern.permute.xlu0 %v4833_v1  ;;  %8208 = vst [vmem:[#allocation13_spill] sm:$0xff] %v4898_v19  ;;  %v4903_v20 = vld [vmem:[%s8062_s2] sm:$0xff]  ;;  %v33_v30 = vld [vmem:[%s8060_s0 + $0x8] sm:$0x7]  ;;  %v34_v31 = vld [vmem:[%s8060_s0 + $0xc] sm:$0x7] }
  0x11   :  { %v4866_v2 = vshrl.u32 %v50_v0, 7  ;;  %v1114_v3 = vand.u32 127, %v50_v0  ;;  %8209 = vst [vmem:[#allocation14_spill] sm:$0xff] %v4903_v20  ;;  %v31_v28 = vld [vmem:[%s8060_s0] sm:$0x7]  ;;  %s4834_s29 = smov 33  }
  0x12   :  { %v32_v29 = vld [vmem:[%s8060_s0 + $0x4] sm:$0x7]  ;;  %v35_v32 = vld [vmem:[%s8060_s0 + $0x10] sm:$0x7]  ;;  %v36_v35 = vld [vmem:[%s8060_s0 + $0x14] sm:$0x7] }
  0x13   :  { %v4872_v5 = vsub.s32 0, %v4866_v2  ;;  %v1115_v6 = vadd.s32 4294967295, %v1114_v3  ;;  %v1120_v7 = vadd.s32 4294967287, %v1114_v3  ;;  %v1127_v8 = vadd.s32 4294967279, %v1114_v3  ;;  %v37_v40 = vld [vmem:[%s8060_s0 + $0x18] sm:$0x7] }
  0x14   :  { %v1134_v9 = vadd.s32 4294967271, %v1114_v3  ;;  %v4888_v15 = vsub.s32 1, %v4866_v2  ;;  %v4892_v17 = vsub.s32 2, %v4866_v2  ;;  %v38_v46 = vld [vmem:[%s8060_s0 + $0x1c] sm:$0x7]  ;;  %vm1125_vm1 = vcmask 138312  }
  0x15   :  { %8203 = vst [vmem:[#allocation8_spill] sm:$0xff] %v4872_v5  ;;  %v117_v10 = vrot.slane %v47_v4, %v4872_v5  ;;  %v4876_v11 = vsub.s32 %v1115_v6, %v4866_v2  ;;  %v4879_v12 = vsub.s32 %v1120_v7, %v4866_v2  ;;  %v4882_v13 = vsub.s32 %v1127_v8, %v4866_v2  ;;  %v39_v51 = vld [vmem:[%s8060_s0 + $0x20] sm:$0x7]  ;;  %v40_v56 = vld [vmem:[%s8060_s0 + $0x24] sm:$0x7]  ;;  %s4776_s8 = sld [smem:[#allocation2 + $0x2]] }
  0x16   :  { %v4885_v14 = vsub.s32 %v1134_v9, %v4866_v2  ;;  %v269_v16 = vrot.slane %v47_v4, %v4888_v15  ;;  %v485_v18 = vrot.slane %v47_v4, %v4892_v17  ;;  %v53_v34 = vrot.slane %v31_v28, %v4872_v5  ;;  %v5005_v57 = vld [vmem:[%s8060_s0 + $0x28] sm:$0x7]  ;;  %v5022_v62 = vld [vmem:[%s8060_s0 + $0x2c] sm:$0x7]  ;;  %s4777_s9 = sld [smem:[#allocation2 + $0x3]]  ;;  %s4778_s14 = sld [smem:[#allocation2 + $0x4]] }
  0x17   :  { %8204 = vst [vmem:[#allocation9_spill] sm:$0xff] %v4876_v11  ;;  %8205 = vst [vmem:[#allocation10_spill] sm:$0xff] %v4879_v12  ;;  %128 = vbcast.lane.b32.xlu1 %v117_v10, 272  ;;  %120 = vbcast.lane.b32.xlu0 %v117_v10, 256  ;;  %v205_v36 = vrot.slane %v31_v28, %v4888_v15  ;;  %v4946_v37 = vrot.slane %v32_v29, %v4872_v5  ;;  %v5027_v0 = vstv %s4924_s26  ;;  %vm1132_vm2 = vcmask 203912   ;;  %s4779_s15 = sld [smem:[#allocation2 + $0x5]] }
  0x18   :  { %8206 = vst [vmem:[#allocation11_spill] sm:$0xff] %v4882_v13  ;;  %8207 = vst [vmem:[#allocation12_spill] sm:$0xff] %v4885_v14  ;;  %v4949_v38 = vrot.slane %v32_v29, %v4888_v15  ;;  %v4952_v39 = vrot.slane %v33_v30, %v4872_v5  ;;  %v4960_v42 = vrot.slane %v33_v30, %v4888_v15  ;;  %vm1139_vm3 = vcmask 269512  }
  0x19   :  { %v4963_v43 = vrot.slane %v34_v31, %v4872_v5  ;;  %v4966_v44 = vrot.slane %v34_v31, %v4888_v15  ;;  %v4969_v45 = vrot.slane %v35_v32, %v4872_v5  ;;  %v421_v47 = vrot.slane %v31_v28, %v4892_v17  ;;  %8210 = vst [vmem:[#allocation15_spill] sm:$0xff] %v5005_v57 }
  0x1a   :  { %v4976_v48 = vrot.slane %v32_v29, %v4892_v17  ;;  %v4979_v49 = vrot.slane %v35_v32, %v4888_v15  ;;  %v4982_v50 = vrot.slane %v36_v35, %v4872_v5  ;;  %v4988_v52 = vrot.slane %v33_v30, %v4892_v17  ;;  %8211 = vst [vmem:[#allocation16_spill] sm:$0xff] %v5022_v62 }
  0x1b   :  { %132 = vbcast.lane.b32.xlu1 %v117_v10, 280  ;;  %124 = vbcast.lane.b32.xlu0 %v117_v10, 264  ;;  %v4991_v53 = vrot.slane %v34_v31, %v4892_v17  ;;  %v4994_v54 = vrot.slane %v36_v35, %v4888_v15  ;;  %v4997_v55 = vrot.slane %v37_v40, %v4872_v5  ;;  %vm1426_vm4 = vcmask 1041409  }
  0x1c   :  { %v5008_v58 = vrot.slane %v35_v32, %v4892_v17  ;;  %v5011_v59 = vrot.slane %v36_v35, %v4892_v17  ;;  %v5014_v60 = vrot.slane %v37_v40, %v4888_v15  ;;  %v5017_v61 = vrot.slane %v38_v46, %v4872_v5 }
  0x1d   :  { %v5030_v1 = vrot.slane %v37_v40, %v4892_v17  ;;  %v5033_v3 = vrot.slane %v38_v46, %v4888_v15  ;;  %v5036_v4 = vrot.slane %v39_v51, %v4872_v5  ;;  %v5039_v6 = vrot.slane %v38_v46, %v4892_v17 }
  0x1e   :  { %v5042_v7 = vrot.slane %v39_v51, %v4888_v15  ;;  %v5045_v8 = vrot.slane %v40_v56, %v4872_v5  ;;  %v5049_v9 = vrot.slane %v5005_v57, %v4872_v5  ;;  %v5058_v28 = vrot.slane %v40_v56, %v4888_v15 }
  0x1f   :  { %276 = vbcast.lane.b32.xlu1 %v269_v16, 264  ;;  %272 = vbcast.lane.b32.xlu0 %v269_v16, 256  ;;  %8212 = vst [vmem:[#allocation17_spill] sm:$0xff] %v5033_v3  ;;  %8213 = vst [vmem:[#allocation18_spill] sm:$0xff] %v5036_v4  ;;  %v5062_v29 = vrot.slane %v5022_v62, %v4872_v5  ;;  %v5068_v35 = vrot.slane %v40_v56, %v4892_v17  ;;  %vm1428_vm5 = vcmask 1042434   ;;  %vm1430_vm6 = vcmask 1043459  }
  0x20   :  { %8214 = vst [vmem:[#allocation19_spill] sm:$0xff] %v5039_v6  ;;  %8215 = vst [vmem:[#allocation20_spill] sm:$0xff] %v5042_v7  ;;  %v5077_v13 = vrot.slane %v5005_v57, %v4888_v15  ;;  %vm1432_vm7 = vcmask 1044484   ;;  %vm1434_vm8 = vcmask 1045509   ;;  %vm1436_vm9 = vcmask 1046534  }
  0x21   :  { %8216 = vst [vmem:[#allocation21_spill] sm:$0xff] %v5045_v8  ;;  %8217 = vst [vmem:[#allocation22_spill] sm:$0xff] %v5049_v9  ;;  %vm1438_vm10 = vcmask 1047559   ;;  %vm1449_vm11 = vcmask 269320   ;;  %vm1460_vm12 = vcmask 277768  }
  0x22   :  { %8219 = vst [vmem:[#allocation24_spill] sm:$0xff] %v5058_v28  ;;  %8220 = vst [vmem:[#allocation25_spill] sm:$0xff] %v5062_v29 }
  0x23   :  { %284 = vbcast.lane.b32.xlu1 %v269_v16, 280  ;;  %280 = vbcast.lane.b32.xlu0 %v269_v16, 272  ;;  %8221 = vst [vmem:[#allocation26_spill] sm:$0xff] %v5068_v35  ;;  %8222 = vst [vmem:[#allocation27_spill] sm:$0xff] %v5077_v13 }
  0x27   :  { %492 = vbcast.lane.b32.xlu1 %v485_v18, 264  ;;  %488 = vbcast.lane.b32.xlu0 %v485_v18, 256 }
  0x2b   :  { %500 = vbcast.lane.b32.xlu1 %v485_v18, 280  ;;  %496 = vbcast.lane.b32.xlu0 %v485_v18, 272  ;;  %v5055_v18 = vrot.slane %v39_v51, %v4892_v17 }
  0x2d   :  { %8218 = vst [vmem:[#allocation23_spill] sm:$0xff] %v5055_v18 }
  0x2f   :  { %640 = vperm.xlu1 %4787, %v4898_v19   ;;  %636 = vperm.xlu0 %4786, %v4903_v20  }
  0x89   :  { %v4907_v21 = vpop.permute.xlu0 %120  ;;  %v4909_v22 = vpop.permute.xlu1 %128 }
  0x8a   :  { %v138_v51 = vmul.f32 %v4907_v21, %v53_v34  ;;  %v140_v14 = vmul.f32 %v4909_v22, %v53_v34  ;;  %v142_v56 = vmul.f32 %v4907_v21, %v4946_v37  ;;  %v144_v9 = vmul.f32 %v4909_v22, %v4946_v37 }
  0x8b   :  { %v5092_v13 = vmul.f32 %v4909_v22, %v4952_v39  ;;  %v5104_v18 = vmul.f32 %v4907_v21, %v4963_v43 }
  0x8d   :  { %v4911_v23 = vpop.permute.xlu0 %124  ;;  %v4913_v24 = vpop.permute.xlu1 %132 }
  0x8e   :  { %v141_v31 = vmul.f32 %v4913_v24, %v53_v34  ;;  %v139_v46 = vmul.f32 %v4911_v23, %v53_v34  ;;  %v146_v34 = vmul.f32 %v4907_v21, %v4952_v39  ;;  %v143_v57 = vmul.f32 %v4911_v23, %v4946_v37 }
  0x8f   :  { %v145_v7 = vmul.f32 %v4913_v24, %v4946_v37 }
  0x91   :  { %v4915_v25 = vpop.permute.xlu0 %272  ;;  %v4917_v26 = vpop.permute.xlu1 %276 }
  0x92   :  { %v291_v16 = vmul.f32 %v4917_v26, %v205_v36  ;;  %v290_v30 = vmul.f32 %v4915_v25, %v205_v36 }
  0x94   :  { %v355_v29 = vadd.f32 %v291_v16, %v139_v46  ;;  %v354_v35 = vadd.f32 %v290_v30, %v138_v51  ;;  %v295_v16 = vmul.f32 %v4917_v26, %v4949_v38  ;;  %v294_v46 = vmul.f32 %v4915_v25, %v4949_v38 }
  0x95   :  { %v4919_v27 = vpop.permute.xlu0 %280  ;;  %v4938_v33 = vpop.permute.xlu1 %284 }
  0x96   :  { %v293_v32 = vmul.f32 %v4938_v33, %v205_v36  ;;  %v292_v20 = vmul.f32 %v4919_v27, %v205_v36  ;;  %v297_v62 = vmul.f32 %v4938_v33, %v4949_v38 }
  0x98   :  { %v357_v28 = vadd.f32 %v293_v32, %v141_v31  ;;  %v356_v51 = vadd.f32 %v292_v20, %v140_v14  ;;  %v359_v14 = vadd.f32 %v295_v16, %v143_v57  ;;  %v358_v20 = vadd.f32 %v294_v46, %v142_v56 }
  0x99   :  { %v4957_v41 = vpop.permute.xlu0 %488  ;;  %v5024_v63 = vpop.permute.xlu1 %492  ;;  %v5138_v57 = vmul.f32 %v4907_v21, %v4969_v45  ;;  %v5150_v46 = vmul.f32 %v4909_v22, %v4969_v45 }
  0x9a   :  { %v507_v11 = vmul.f32 %v5024_v63, %v421_v47  ;;  %v506_v12 = vmul.f32 %v4957_v41, %v421_v47  ;;  %v510_v4 = vmul.f32 %v4957_v41, %v4976_v48 }
  0x9c   :  { %v571_v31 = vadd.f32 %v507_v11, %v355_v29  ;;  %v570_v32 = vadd.f32 %v506_v12, %v354_v35  ;;  %v296_v29 = vmul.f32 %v4919_v27, %v4949_v38  ;;  %v574_v38 = vadd.f32 %v510_v4, %v358_v20 }
  0x9d   :  { %v5051_v10 = vpop.permute.xlu0 %496  ;;  %v5070_v40 = vpop.permute.xlu1 %500 }
  0x9e   :  { %v509_v36 = vmul.f32 %v5070_v40, %v421_v47  ;;  %v508_v8 = vmul.f32 %v5051_v10, %v421_v47  ;;  %v511_v47 = vmul.f32 %v5024_v63, %v4976_v48  ;;  %v513_v56 = vmul.f32 %v5070_v40, %v4976_v48 }
  0x9f   :  { %v360_v16 = vadd.f32 %v296_v29, %v144_v9  ;;  %v147_v9 = vmul.f32 %v4911_v23, %v4952_v39 }
  0xa0   :  { %v572_v11 = vadd.f32 %v508_v8, %v356_v51  ;;  %v361_v8 = vadd.f32 %v297_v62, %v145_v7  ;;  %v299_v62 = vmul.f32 %v4917_v26, %v4960_v42  ;;  %v298_v7 = vmul.f32 %v4915_v25, %v4960_v42 }
  0xa2   :  { %v577_v20 = vadd.f32 %v513_v56, %v361_v8 }
  0xae   :  { %v5084_v19 = vpop.permute.xlu0 %636 }
  0xaf   :  { %v645_v30 = vrot.slane %v5084_v19, %v4872_v5  ;;  %v573_v5 = vadd.f32 %v509_v36, %v357_v28  ;;  %v649_v12 = vrot.slane %v5084_v19, %v4888_v15  ;;  %v575_v28 = vadd.f32 %v511_v47, %v359_v14 }
  0xb0   :  { %v5134_v36 = vmul.f32 %v4909_v22, %v4963_v43  ;;  %v515_v47 = vmul.f32 %v5024_v63, %v4988_v52  ;;  %v301_v14 = vmul.f32 %v4938_v33, %v4960_v42 }
  0xb1   :  { %v5116_v6 = vadd.f32 %v645_v30, %v571_v31  ;;  %v5118_v3 = vadd.f32 %v645_v30, %v570_v32  ;;  %v5128_v31 = vadd.f32 %v645_v30, %v573_v5  ;;  %v5130_v32 = vadd.f32 %v645_v30, %v572_v11 }
  0xb2   :  { %v512_v5 = vmul.f32 %v5051_v10, %v4976_v48  ;;  %v5156_v51 = vadd.f32 %v649_v12, %v575_v28  ;;  %v5158_v48 = vadd.f32 %v649_v12, %v574_v38  ;;  %v149_v11 = vmul.f32 %v4913_v24, %v4952_v39 }
  0xb3   :  { %v794_v37 = vsub.f32 %v5116_v6, %v5027_v0  ;;  %v793_v35 = vsub.f32 %v5118_v3, %v5027_v0  ;;  %8223 = vst [vmem:[#allocation28_spill] sm:$0xff] %v5130_v32  ;;  %v796_v4 = vsub.f32 %v5128_v31, %v5027_v0  ;;  %v795_v30 = vsub.f32 %v5130_v32, %v5027_v0 }
  0xb4   :  { %8224 = vst [vmem:[#allocation29_spill] sm:$0xff] %v5156_v51  ;;  %8225 = vst [vmem:[#allocation30_spill] sm:$0xff] %v5158_v48  ;;  %v576_v29 = vadd.f32 %v512_v5, %v360_v16  ;;  %v363_v28 = vadd.f32 %v299_v62, %v147_v9  ;;  %v362_v38 = vadd.f32 %v298_v7, %v146_v34 }
  0xb5   :  { %925 = vperm.xlu0 %4786, %v794_v37   ;;  %922 = vperm.xlu1 %4787, %v793_v35   ;;  %v514_v37 = vmul.f32 %v4957_v41, %v4988_v52  ;;  %v653_v35 = vrot.slane %v5084_v19, %v4892_v17  ;;  %v300_v32 = vmul.f32 %v4919_v27, %v4960_v42  ;;  %v8095_v42 = vsub.s32 3, %v4866_v2 }
  0xb6   :  { %v798_v39 = vsub.f32 %v5156_v51, %v5027_v0  ;;  %v5180_v8 = vadd.f32 %v649_v12, %v576_v29  ;;  %v579_v56 = vadd.f32 %v515_v47, %v363_v28  ;;  %v365_v5 = vadd.f32 %v301_v14, %v149_v11 }
  0xb7   :  { %v5184_v16 = vmul.f32 %v4907_v21, %v4982_v50  ;;  %v5188_v34 = vmul.f32 %v4909_v22, %v4982_v50  ;;  %v578_v62 = vadd.f32 %v514_v37, %v362_v38  ;;  %v517_v7 = vmul.f32 %v5070_v40, %v4988_v52 }
  0xb8   :  { %8227 = vst [vmem:[#allocation32_spill] sm:$0xff] %v5180_v8  ;;  %v364_v9 = vadd.f32 %v300_v32, %v5092_v13  ;;  %v303_v47 = vmul.f32 %v4917_v26, %v4966_v44  ;;  %v302_v11 = vmul.f32 %v4915_v25, %v4966_v44  ;;  %v5202_v14 = vmul.f32 %v4907_v21, %v4997_v55 }
  0xb9   :  { %931 = vperm.xlu0 %4786, %v796_v4   ;;  %928 = vperm.xlu1 %4787, %v795_v30   ;;  %v797_v4 = vsub.f32 %v5158_v48, %v5027_v0  ;;  %v5178_v30 = vadd.f32 %v649_v12, %v577_v20  ;;  %v516_v12 = vmul.f32 %v5051_v10, %v4988_v52 }
  0xba   :  { %v799_v29 = vsub.f32 %v5180_v8, %v5027_v0  ;;  %v5208_v37 = vadd.f32 %v653_v35, %v579_v56  ;;  %v5210_v52 = vadd.f32 %v653_v35, %v578_v62  ;;  %v151_v13 = vmul.f32 %v4911_v23, %v4963_v43 }
  0xbb   :  { %8226 = vst [vmem:[#allocation31_spill] sm:$0xff] %v5178_v30  ;;  %v800_v20 = vsub.f32 %v5178_v30, %v5027_v0  ;;  %v519_v32 = vmul.f32 %v5024_v63, %v4991_v53  ;;  %v153_v28 = vmul.f32 %v4913_v24, %v4963_v43  ;;  %v305_v38 = vmul.f32 %v4938_v33, %v4966_v44 }
  0xbc   :  { %8228 = vst [vmem:[#allocation33_spill] sm:$0xff] %v5208_v37  ;;  %8229 = vst [vmem:[#allocation34_spill] sm:$0xff] %v5210_v52  ;;  %v518_v56 = vmul.f32 %v4957_v41, %v4991_v53  ;;  %v657_v62 = vrot.slane %v5084_v19, %v8095_v42  ;;  %v367_v8 = vadd.f32 %v303_v47, %v151_v13  ;;  %v8096_v47 = vsub.s32 4, %v4866_v2 }
  0xbd   :  { %937 = vperm.xlu0 %4786, %v798_v39   ;;  %934 = vperm.xlu1 %4787, %v797_v4   ;;  %v581_v39 = vadd.f32 %v517_v7, %v365_v5  ;;  %v580_v4 = vadd.f32 %v516_v12, %v364_v9  ;;  %v366_v30 = vadd.f32 %v302_v11, %v5104_v18 }
  0xbe   :  { %v304_v43 = vmul.f32 %v4919_v27, %v4966_v44  ;;  %v802_v48 = vsub.f32 %v5208_v37, %v5027_v0  ;;  %v801_v5 = vsub.f32 %v5210_v52, %v5027_v0  ;;  %v369_v9 = vadd.f32 %v305_v38, %v153_v28 }
  0xbf   :  { %v5232_v7 = vadd.f32 %v653_v35, %v581_v39  ;;  %v5234_v12 = vadd.f32 %v653_v35, %v580_v4  ;;  %v520_v18 = vmul.f32 %v5051_v10, %v4991_v53  ;;  %v5242_v44 = vmul.f32 %v4909_v22, %v4997_v55 }
  0xc0   :  { %v583_v11 = vadd.f32 %v519_v32, %v367_v8  ;;  %v5247_v35 = vmul.f32 %v4907_v21, %v5017_v61  ;;  %v368_v13 = vadd.f32 %v304_v43, %v5134_v36  ;;  %v307_v28 = vmul.f32 %v4917_v26, %v4979_v49 }
  0xc1   :  { %943 = vperm.xlu0 %4786, %v800_v20   ;;  %940 = vperm.xlu1 %4787, %v799_v29   ;;  %8230 = vst [vmem:[#allocation35_spill] sm:$0xff] %v5232_v7  ;;  %8231 = vst [vmem:[#allocation36_spill] sm:$0xff] %v5234_v12  ;;  %v521_v20 = vmul.f32 %v5070_v40, %v4991_v53  ;;  %v582_v29 = vadd.f32 %v518_v56, %v366_v30 }
  0xc2   :  { %v306_v53 = vmul.f32 %v4915_v25, %v4979_v49  ;;  %v5256_v38 = vmul.f32 %v4909_v22, %v5017_v61  ;;  %v803_v30 = vsub.f32 %v5234_v12, %v5027_v0  ;;  %v5262_v8 = vadd.f32 %v657_v62, %v583_v11 }
  0xc3   :  { %v5264_v32 = vadd.f32 %v657_v62, %v582_v29  ;;  %v585_v36 = vadd.f32 %v521_v20, %v369_v9  ;;  %v584_v39 = vadd.f32 %v520_v18, %v368_v13  ;;  %v155_v4 = vmul.f32 %v4911_v23, %v4969_v45 }
  0xc4   :  { %8232 = vst [vmem:[#allocation37_spill] sm:$0xff] %v5262_v8  ;;  %v157_v56 = vmul.f32 %v4913_v24, %v4969_v45  ;;  %v523_v43 = vmul.f32 %v5024_v63, %v5008_v58  ;;  %v309_v11 = vmul.f32 %v4938_v33, %v4979_v49  ;;  %v661_v9 = vrot.slane %v5084_v19, %v8096_v47 }
  0xc5   :  { %949 = vperm.xlu0 %4786, %v802_v48   ;;  %946 = vperm.xlu1 %4787, %v801_v5   ;;  %v804_v48 = vsub.f32 %v5232_v7, %v5027_v0  ;;  %8233 = vst [vmem:[#allocation38_spill] sm:$0xff] %v5264_v32  ;;  %v522_v5 = vmul.f32 %v4957_v41, %v5008_v58 }
  0xc6   :  { %v371_v20 = vadd.f32 %v307_v28, %v155_v4  ;;  %v370_v18 = vadd.f32 %v306_v53, %v5138_v57  ;;  %v308_v45 = vmul.f32 %v4919_v27, %v4979_v49  ;;  %v806_v29 = vsub.f32 %v5262_v8, %v5027_v0 }
  0xc7   :  { %v805_v13 = vsub.f32 %v5264_v32, %v5027_v0  ;;  %v525_v42 = vmul.f32 %v5070_v40, %v5008_v58  ;;  %v524_v28 = vmul.f32 %v5051_v10, %v5008_v58  ;;  %v159_v57 = vmul.f32 %v4911_v23, %v4982_v50 }
  0xc8   :  { %v161_v49 = vmul.f32 %v4913_v24, %v4982_v50  ;;  %v8103_v53 = vsub.s32 5, %v4866_v2  ;;  %v586_v4 = vadd.f32 %v522_v5, %v370_v18  ;;  %v311_v47 = vmul.f32 %v4917_v26, %v4994_v54 }
  0xc9   :  { %955 = vperm.xlu0 %4786, %v804_v48   ;;  %952 = vperm.xlu1 %4787, %v803_v30   ;;  %v5286_v48 = vadd.f32 %v657_v62, %v585_v36  ;;  %v5288_v30 = vadd.f32 %v657_v62, %v584_v39  ;;  %v587_v36 = vadd.f32 %v523_v43, %v371_v20 }
  0xca   :  { %v373_v62 = vadd.f32 %v309_v11, %v157_v56  ;;  %v372_v39 = vadd.f32 %v308_v45, %v5150_v46  ;;  %v310_v58 = vmul.f32 %v4915_v25, %v4994_v54  ;;  %v163_v32 = vmul.f32 %v4911_v23, %v4997_v55 }
  0xcb   :  { %8234 = vst [vmem:[#allocation39_spill] sm:$0xff] %v5286_v48  ;;  %8235 = vst [vmem:[#allocation40_spill] sm:$0xff] %v5288_v30  ;;  %v808_v50 = vsub.f32 %v5286_v48, %v5027_v0  ;;  %v5310_v43 = vadd.f32 %v661_v9, %v587_v36  ;;  %v5312_v56 = vadd.f32 %v661_v9, %v586_v4 }
  0xcc   :  { %v527_v46 = vmul.f32 %v5024_v63, %v5011_v59  ;;  %v313_v5 = vmul.f32 %v4938_v33, %v4994_v54  ;;  %v165_v11 = vmul.f32 %v4913_v24, %v4997_v55  ;;  %v167_v20 = vmul.f32 %v4911_v23, %v5017_v61 }
  0xcd   :  { %961 = vperm.xlu0 %4786, %v806_v29   ;;  %958 = vperm.xlu1 %4787, %v805_v13   ;;  %v807_v29 = vsub.f32 %v5288_v30, %v5027_v0  ;;  %8236 = vst [vmem:[#allocation41_spill] sm:$0xff] %v5310_v43  ;;  %8237 = vst [vmem:[#allocation42_spill] sm:$0xff] %v5312_v56  ;;  %v589_v18 = vadd.f32 %v525_v42, %v373_v62 }
  0xce   :  { %v588_v45 = vadd.f32 %v524_v28, %v372_v39  ;;  %v526_v13 = vmul.f32 %v4957_v41, %v5011_v59  ;;  %v665_v36 = vrot.slane %v5084_v19, %v8103_v53  ;;  %v375_v4 = vadd.f32 %v311_v47, %v159_v57 }
  0xcf   :  { %v374_v30 = vadd.f32 %v310_v58, %v5184_v16  ;;  %v312_v55 = vmul.f32 %v4919_v27, %v4994_v54  ;;  %v810_v48 = vsub.f32 %v5310_v43, %v5027_v0  ;;  %v809_v42 = vsub.f32 %v5312_v56, %v5027_v0 }
  0xd0   :  { %v5334_v28 = vadd.f32 %v661_v9, %v589_v18  ;;  %v5336_v62 = vadd.f32 %v661_v9, %v588_v45  ;;  %v591_v39 = vadd.f32 %v527_v46, %v375_v4  ;;  %v529_v47 = vmul.f32 %v5070_v40, %v5011_v59 }
  0xd1   :  { %967 = vperm.xlu0 %4786, %v808_v50   ;;  %964 = vperm.xlu1 %4787, %v807_v29   ;;  %v377_v50 = vadd.f32 %v313_v5, %v161_v49  ;;  %v169_v16 = vmul.f32 %v4913_v24, %v5017_v61  ;;  %v590_v57 = vadd.f32 %v526_v13, %v374_v30  ;;  %v8106_v4 = vsub.s32 7, %v4866_v2 }
  0xd2   :  { %8238 = vst [vmem:[#allocation43_spill] sm:$0xff] %v5334_v28  ;;  %8239 = vst [vmem:[#allocation44_spill] sm:$0xff] %v5336_v62  ;;  %v528_v58 = vmul.f32 %v5051_v10, %v5011_v59  ;;  %v317_v9 = vmul.f32 %v4938_v33, %v5014_v60  ;;  %v376_v29 = vadd.f32 %v312_v55, %v5188_v34 }
  0xd3   :  { %v315_v49 = vmul.f32 %v4917_v26, %v5014_v60  ;;  %v531_v46 = vmul.f32 %v5024_v63, %v5030_v1  ;;  %v314_v61 = vmul.f32 %v4915_v25, %v5014_v60  ;;  %v811_v59 = vsub.f32 %v5336_v62, %v5027_v0 }
  0xd4   :  { %v5358_v30 = vadd.f32 %v665_v36, %v591_v39  ;;  %v5360_v5 = vadd.f32 %v665_v36, %v590_v57  ;;  %v593_v34 = vadd.f32 %v529_v47, %v377_v50  ;;  %v530_v18 = vmul.f32 %v4957_v41, %v5030_v1  ;;  %v8242_v39 = vld [vmem:[#allocation17_spill] sm:$0xff] }
  0xd5   :  { %973 = vperm.xlu0 %4786, %v810_v48   ;;  %970 = vperm.xlu1 %4787, %v809_v42   ;;  %v812_v48 = vsub.f32 %v5334_v28, %v5027_v0  ;;  %v533_v45 = vmul.f32 %v5070_v40, %v5030_v1  ;;  %v316_v13 = vmul.f32 %v4919_v27, %v5014_v60  ;;  %v8244_v62 = vsub.s32 6, %v4866_v2 }
  0xd6   :  { %8240 = vst [vmem:[#allocation45_spill] sm:$0xff] %v5358_v30  ;;  %8241 = vst [vmem:[#allocation46_spill] sm:$0xff] %v5360_v5  ;;  %v592_v55 = vadd.f32 %v528_v58, %v376_v29  ;;  %v381_v42 = vadd.f32 %v317_v9, %v165_v11  ;;  %v319_v57 = vmul.f32 %v4917_v26, %v8242_v39 }
  0xd7   :  { %v5371_v53 = vadd.f32 %v665_v36, %v593_v34  ;;  %v379_v50 = vadd.f32 %v315_v49, %v163_v32  ;;  %v378_v47 = vadd.f32 %v314_v61, %v5202_v14  ;;  %v532_v54 = vmul.f32 %v5051_v10, %v5030_v1  ;;  %v5404_v34 = vpop.permute.xlu1 %640 }
  0xd8   :  { %v669_v60 = vrot.slane %v5084_v19, %v8244_v62  ;;  %v813_v11 = vsub.f32 %v5360_v5, %v5027_v0  ;;  %v5383_v58 = vadd.f32 %v665_v36, %v592_v55  ;;  %v380_v32 = vadd.f32 %v316_v13, %v5242_v44  ;;  %v8246_v62 = vld [vmem:[#allocation19_spill] sm:$0xff] }
  0xd9   :  { %979 = vperm.xlu0 %4786, %v812_v48   ;;  %976 = vperm.xlu1 %4787, %v811_v59   ;;  %8243 = vst [vmem:[#allocation17_spill] sm:$0xff] %v5371_v53  ;;  %v814_v48 = vsub.f32 %v5358_v30, %v5027_v0  ;;  %v595_v9 = vadd.f32 %v531_v46, %v379_v50 }
  0xda   :  { %8245 = vst [vmem:[#allocation47_spill] sm:$0xff] %v5383_v58  ;;  %v594_v29 = vadd.f32 %v530_v18, %v378_v47  ;;  %v321_v14 = vmul.f32 %v4938_v33, %v8242_v39  ;;  %v597_v1 = vadd.f32 %v533_v45, %v381_v42  ;;  %v383_v49 = vadd.f32 %v319_v57, %v167_v20  ;;  %v5402_v20 = vld [vmem:[%s8060_s0 + $0x30] sm:$0x7] }
  0xdb   :  { %v535_v61 = vmul.f32 %v5024_v63, %v8246_v62  ;;  %v673_v59 = vrot.slane %v5084_v19, %v8106_v4  ;;  %v816_v36 = vsub.f32 %v5371_v53, %v5027_v0  ;;  %v318_v44 = vmul.f32 %v4915_v25, %v8242_v39 }
  0xdc   :  { %v534_v46 = vmul.f32 %v4957_v41, %v8246_v62  ;;  %v815_v18 = vsub.f32 %v5383_v58, %v5027_v0  ;;  %v5408_v19 = vadd.f32 %v669_v60, %v595_v9  ;;  %v5410_v45 = vadd.f32 %v669_v60, %v594_v29  ;;  %v8251_v9 = vld [vmem:[#allocation8_spill] sm:$0xff] }
  0xdd   :  { %985 = vperm.xlu0 %4786, %v814_v48   ;;  %982 = vperm.xlu1 %4787, %v813_v11   ;;  %v5412_v13 = vadd.f32 %v669_v60, %v597_v1  ;;  %v596_v55 = vadd.f32 %v532_v54, %v380_v32  ;;  %v385_v42 = vadd.f32 %v321_v14, %v169_v16  ;;  %v8250_v48 = vld [vmem:[#allocation16_spill] sm:$0xff] }
  0xde   :  { %8247 = vst [vmem:[#allocation19_spill] sm:$0xff] %v5408_v19  ;;  %8248 = vst [vmem:[#allocation48_spill] sm:$0xff] %v5410_v45  ;;  %v537_v57 = vmul.f32 %v5070_v40, %v8246_v62  ;;  %v320_v50 = vmul.f32 %v4919_v27, %v8242_v39  ;;  %v599_v47 = vadd.f32 %v535_v61, %v383_v49 }
  0xdf   :  { %8249 = vst [vmem:[#allocation49_spill] sm:$0xff] %v5412_v13  ;;  %v5420_v11 = vrot.slane %v8250_v48, %v4888_v15  ;;  %v5424_v29 = vrot.slane %v5402_v20, %v8251_v9  ;;  %v677_v16 = vrot.slane %v5404_v34, %v8251_v9  ;;  %v5428_v54 = vadd.f32 %v669_v60, %v596_v55  ;;  %v8254_v55 = vld [vmem:[#allocation20_spill] sm:$0xff] }
  0xe0   :  { %v382_v32 = vadd.f32 %v318_v44, %v5247_v35  ;;  %v536_v39 = vmul.f32 %v5051_v10, %v8246_v62  ;;  %v818_v14 = vsub.f32 %v5408_v19, %v5027_v0  ;;  %v817_v1 = vsub.f32 %v5410_v45, %v5027_v0  ;;  %v8255_v44 = vld [vmem:[#allocation18_spill] sm:$0xff] }
  0xe1   :  { %991 = vperm.xlu0 %4786, %v816_v36   ;;  %988 = vperm.xlu1 %4787, %v815_v18   ;;  %8252 = vst [vmem:[#allocation16_spill] sm:$0xff] %v5428_v54  ;;  %v820_v49 = vsub.f32 %v5412_v13, %v5027_v0  ;;  %v5439_v61 = vadd.f32 %v673_v59, %v599_v47  ;;  %v8258_v47 = vld [vmem:[#allocation23_spill] sm:$0xff] }
  0xe2   :  { %v598_v36 = vadd.f32 %v534_v46, %v382_v32  ;;  %v601_v18 = vadd.f32 %v537_v57, %v385_v42  ;;  %v384_v60 = vadd.f32 %v320_v50, %v5256_v38  ;;  %v323_v35 = vmul.f32 %v4917_v26, %v8254_v55 }
  0xe3   :  { %8253 = vst [vmem:[#allocation8_spill] sm:$0xff] %v5439_v61  ;;  %v322_v62 = vmul.f32 %v4915_v25, %v8254_v55  ;;  %v173_v4 = vmul.f32 %v4913_v24, %v8255_v44  ;;  %v325_v13 = vmul.f32 %v4938_v33, %v8254_v55  ;;  %v819_v46 = vsub.f32 %v5428_v54, %v5027_v0 }
  0xe4   :  { %v5452_v42 = vadd.f32 %v673_v59, %v598_v36  ;;  %v600_v38 = vadd.f32 %v536_v39, %v384_v60  ;;  %v171_v57 = vmul.f32 %v4911_v23, %v8255_v44  ;;  %v5456_v50 = vadd.f32 %v673_v59, %v601_v18 }
  0xe5   :  { %997 = vperm.xlu0 %4786, %v818_v14   ;;  %994 = vperm.xlu1 %4787, %v817_v1   ;;  %v539_v32 = vmul.f32 %v5024_v63, %v8258_v47  ;;  %v170_v14 = vmul.f32 %v4907_v21, %v8255_v44  ;;  %v538_v1 = vmul.f32 %v4957_v41, %v8258_v47 }
  0xe6   :  { %8256 = vst [vmem:[#allocation20_spill] sm:$0xff] %v5452_v42  ;;  %8257 = vst [vmem:[#allocation18_spill] sm:$0xff] %v5456_v50  ;;  %v5464_v45 = vadd.f32 %v673_v59, %v600_v38  ;;  %v387_v54 = vadd.f32 %v323_v35, %v171_v57  ;;  %v172_v39 = vmul.f32 %v4909_v22, %v8255_v44  ;;  %v8260_v44 = vld [vmem:[#allocation15_spill] sm:$0xff]  ;;  %v8261_v57 = vld [vmem:[#allocation21_spill] sm:$0xff] }
  0xe7   :  { %v324_v36 = vmul.f32 %v4919_v27, %v8254_v55  ;;  %v386_v18 = vadd.f32 %v322_v62, %v170_v14  ;;  %v389_v60 = vadd.f32 %v325_v13, %v173_v4  ;;  %v541_v19 = vmul.f32 %v5070_v40, %v8258_v47 }
  0xe8   :  { %8259 = vst [vmem:[#allocation23_spill] sm:$0xff] %v5464_v45  ;;  %v681_v58 = vrot.slane %v5404_v34, %v4888_v15  ;;  %v822_v59 = vsub.f32 %v5439_v61, %v5027_v0  ;;  %v540_v35 = vmul.f32 %v5051_v10, %v8258_v47  ;;  %v5480_v38 = vrot.slane %v8260_v44, %v4892_v17  ;;  %v8262_v47 = vld [vmem:[#allocation24_spill] sm:$0xff] }
  0xe9   :  { %1003 = vperm.xlu0 %4786, %v820_v49   ;;  %1000 = vperm.xlu1 %4787, %v819_v46   ;;  %v821_v49 = vsub.f32 %v5452_v42, %v5027_v0  ;;  %v824_v4 = vsub.f32 %v5456_v50, %v5027_v0  ;;  %v603_v13 = vadd.f32 %v539_v32, %v387_v54  ;;  %v8264_v32 = vld [vmem:[#allocation26_spill] sm:$0xff] }
  0xea   :  { %v602_v55 = vadd.f32 %v538_v1, %v386_v18  ;;  %v823_v62 = vsub.f32 %v5464_v45, %v5027_v0  ;;  %v388_v46 = vadd.f32 %v324_v36, %v172_v39  ;;  %v175_v14 = vmul.f32 %v4911_v23, %v8261_v57  ;;  %v5505_v18 = vld [vmem:[%s8060_s0 + $0x34] sm:$0x7] }
  0xeb   :  { %v327_v61 = vmul.f32 %v4917_v26, %v8262_v47  ;;  %v5492_v44 = vadd.f32 %v677_v16, %v603_v13  ;;  %v605_v42 = vadd.f32 %v541_v19, %v389_v60  ;;  %v326_v50 = vmul.f32 %v4915_v25, %v8262_v47 }
  0xec   :  { %v604_v54 = vadd.f32 %v540_v35, %v388_v46  ;;  %v543_v1 = vmul.f32 %v5024_v63, %v8264_v32  ;;  %v177_v39 = vmul.f32 %v4913_v24, %v8261_v57  ;;  %v329_v36 = vmul.f32 %v4938_v33, %v8262_v47 }
  0xed   :  { %1009 = vperm.xlu0 %4786, %v822_v59   ;;  %1006 = vperm.xlu1 %4787, %v821_v49   ;;  %8263 = vst [vmem:[#allocation15_spill] sm:$0xff] %v5492_v44  ;;  %v5507_v59 = vadd.f32 %v677_v16, %v602_v55  ;;  %v5509_v19 = vadd.f32 %v677_v16, %v605_v42 }
  0xee   :  { %v174_v60 = vmul.f32 %v4907_v21, %v8261_v57  ;;  %v542_v35 = vmul.f32 %v4957_v41, %v8264_v32  ;;  %v5515_v49 = vadd.f32 %v677_v16, %v604_v54  ;;  %v391_v13 = vadd.f32 %v327_v61, %v175_v14 }
  0xef   :  { %8265 = vst [vmem:[#allocation21_spill] sm:$0xff] %v5507_v59  ;;  %8266 = vst [vmem:[#allocation24_spill] sm:$0xff] %v5509_v19  ;;  %v176_v46 = vmul.f32 %v4909_v22, %v8261_v57  ;;  %v328_v45 = vmul.f32 %v4919_v27, %v8262_v47  ;;  %v5523_v55 = vrot.slane %v5404_v34, %v4892_v17 }
  0xf0   :  { %8267 = vst [vmem:[#allocation26_spill] sm:$0xff] %v5515_v49  ;;  %v390_v42 = vadd.f32 %v326_v50, %v174_v60  ;;  %v5527_v53 = vrot.slane %v5505_v18, %v8251_v9  ;;  %v607_v16 = vadd.f32 %v543_v1, %v391_v13  ;;  %v393_v54 = vadd.f32 %v329_v36, %v177_v39  ;;  %v8269_v36 = vld [vmem:[#allocation27_spill] sm:$0xff] }
  0xf1   :  { %1015 = vperm.xlu0 %4786, %v824_v4   ;;  %1012 = vperm.xlu1 %4787, %v823_v62   ;;  %v545_v61 = vmul.f32 %v5070_v40, %v8264_v32  ;;  %v544_v57 = vmul.f32 %v5051_v10, %v8264_v32  ;;  %v826_v14 = vsub.f32 %v5492_v44, %v5027_v0  ;;  %v8270_v32 = vld [vmem:[#allocation22_spill] sm:$0xff] }
  0xf2   :  { %v825_v4 = vsub.f32 %v5507_v59, %v5027_v0  ;;  %v828_v50 = vsub.f32 %v5509_v19, %v5027_v0  ;;  %v606_v62 = vadd.f32 %v542_v35, %v390_v42  ;;  %v827_v47 = vsub.f32 %v5515_v49, %v5027_v0 }
  0xf3   :  { %v5541_v1 = vadd.f32 %v681_v58, %v607_v16  ;;  %v392_v39 = vadd.f32 %v328_v45, %v176_v46  ;;  %v331_v60 = vmul.f32 %v4917_v26, %v8269_v36  ;;  %v179_v13 = vmul.f32 %v4911_v23, %v8270_v32 }
  0xf4   :  { %v181_v59 = vmul.f32 %v4913_v24, %v8270_v32  ;;  %v333_v35 = vmul.f32 %v4938_v33, %v8269_v36  ;;  %v609_v42 = vadd.f32 %v545_v61, %v393_v54  ;;  %v547_v16 = vmul.f32 %v5024_v63, %v5480_v38 }
  0xf5   :  { %8268 = vst [vmem:[#allocation50_spill] sm:$0xff] %v5541_v1  ;;  %1021 = vperm.xlu0 %4786, %v826_v14   ;;  %1018 = vperm.xlu1 %4787, %v825_v4   ;;  %v608_v19 = vadd.f32 %v544_v57, %v392_v39  ;;  %v330_v45 = vmul.f32 %v4915_v25, %v8269_v36 }
  0xf6   :  { %v5555_v46 = vadd.f32 %v681_v58, %v606_v62  ;;  %v178_v14 = vmul.f32 %v4907_v21, %v8270_v32  ;;  %v180_v4 = vmul.f32 %v4909_v22, %v8270_v32  ;;  %v332_v49 = vmul.f32 %v4919_v27, %v8269_v36 }
  0xf7   :  { %v5563_v44 = vadd.f32 %v681_v58, %v609_v42  ;;  %v5565_v54 = vadd.f32 %v681_v58, %v608_v19  ;;  %v395_v61 = vadd.f32 %v331_v60, %v179_v13  ;;  %v546_v57 = vmul.f32 %v4957_v41, %v5480_v38 }
  0xf8   :  { %8271 = vst [vmem:[#allocation27_spill] sm:$0xff] %v5555_v46  ;;  %v397_v62 = vadd.f32 %v333_v35, %v181_v59  ;;  %v549_v39 = vmul.f32 %v5070_v40, %v5480_v38  ;;  %v548_v32 = vmul.f32 %v5051_v10, %v5480_v38  ;;  %v394_v30 = vadd.f32 %v330_v45, %v178_v14  ;;  %v8276_v14 = vld [vmem:[#allocation25_spill] sm:$0xff] }
  0xf9   :  { %8272 = vst [vmem:[#allocation22_spill] sm:$0xff] %v5563_v44  ;;  %8273 = vst [vmem:[#allocation51_spill] sm:$0xff] %v5565_v54  ;;  %1027 = vperm.xlu0 %4786, %v828_v50   ;;  %1024 = vperm.xlu1 %4787, %v827_v47   ;;  %v611_v5 = vadd.f32 %v547_v16, %v395_v61  ;;  %v465_v36 = vrot.slane %v8250_v48, %v4892_v17  ;;  %v8274_v19 = vsub.s32 3, %v4866_v2 }
  0xfa   :  { %v5577_v58 = vrot.slane %v5402_v20, %v4888_v15  ;;  %v830_v59 = vsub.f32 %v5541_v1, %v5027_v0  ;;  %v829_v38 = vsub.f32 %v5555_v46, %v5027_v0  ;;  %v396_v47 = vadd.f32 %v332_v49, %v180_v4 }
  0xfb   :  { %v5582_v50 = vrot.slane %v5404_v34, %v8274_v19  ;;  %v832_v60 = vsub.f32 %v5563_v44, %v5027_v0  ;;  %v831_v48 = vsub.f32 %v5565_v54, %v5027_v0  ;;  %v5593_v13 = vadd.f32 %v5523_v55, %v611_v5  ;;  %v8277_v5 = vld [vmem:[#allocation13_spill] sm:$0xff] }
  0xfc   :  { %v610_v35 = vadd.f32 %v546_v57, %v394_v30  ;;  %v613_v42 = vadd.f32 %v549_v39, %v397_v62  ;;  %v612_v16 = vadd.f32 %v548_v32, %v396_v47  ;;  %v335_v45 = vmul.f32 %v4917_v26, %v5420_v11  ;;  %v8279_v32 = vld [vmem:[#allocation14_spill] sm:$0xff] }
  0xfd   :  { %8275 = vst [vmem:[#allocation52_spill] sm:$0xff] %v5593_v13  ;;  %1033 = vperm.xlu0 %4786, %v830_v59   ;;  %1030 = vperm.xlu1 %4787, %v829_v38   ;;  %v334_v49 = vmul.f32 %v4915_v25, %v5420_v11  ;;  %v185_v4 = vmul.f32 %v4913_v24, %v8276_v14 }
  0xfe   :  { %v337_v61 = vmul.f32 %v4938_v33, %v5420_v11  ;;  %v5605_v30 = vsub.f32 %v8277_v5, %v5027_v0  ;;  %v5608_v57 = vadd.f32 %v5523_v55, %v610_v35  ;;  %v183_v62 = vmul.f32 %v4911_v23, %v8276_v14 }
  0xff   :  { %v551_v39 = vmul.f32 %v5024_v63, %v465_v36  ;;  %v5615_v19 = vsub.f32 %v8279_v32, %v5027_v0  ;;  %v5618_v59 = vadd.f32 %v5523_v55, %v613_v42  ;;  %v5621_v38 = vadd.f32 %v5523_v55, %v612_v16  ;;  %v5635_v55 = vld [vmem:[%s8060_s0 + $0x38] sm:$0x7] }
 0x100   :  { %8278 = vst [vmem:[#allocation25_spill] sm:$0xff] %v5608_v57  ;;  %v182_v47 = vmul.f32 %v4907_v21, %v8276_v14  ;;  %v550_v35 = vmul.f32 %v4957_v41, %v465_v36  ;;  %792 = vst.msk [vmem:[#allocation5 + $0x8] sm:$0xff] %vm790_vm0, %v5605_v30  ;;  %v399_v5 = vadd.f32 %v335_v45, %v183_v62 }
 0x101   :  { %8280 = vst [vmem:[#allocation13_spill] sm:$0xff] %v5618_v59  ;;  %8281 = vst [vmem:[#allocation14_spill] sm:$0xff] %v5621_v38  ;;  %1039 = vperm.xlu0 %4786, %v832_v60   ;;  %1036 = vperm.xlu1 %4787, %v831_v48   ;;  %v184_v32 = vmul.f32 %v4909_v22, %v8276_v14  ;;  %v336_v42 = vmul.f32 %v4919_v27, %v5420_v11 }
 0x102   :  { %791 = vst.msk [vmem:[#allocation5] sm:$0xff] %vm790_vm0, %v5615_v19  ;;  %v398_v16 = vadd.f32 %v334_v49, %v182_v47  ;;  %v401_v54 = vadd.f32 %v337_v61, %v185_v4  ;;  %v553_v60 = vmul.f32 %v5070_v40, %v465_v36  ;;  %v469_v48 = vrot.slane %v5402_v20, %v4892_v17 }
 0x103   :  { %v834_v45 = vsub.f32 %v5593_v13, %v5027_v0  ;;  %v833_v11 = vsub.f32 %v5608_v57, %v5027_v0  ;;  %v615_v14 = vadd.f32 %v551_v39, %v399_v5  ;;  %v552_v62 = vmul.f32 %v5051_v10, %v465_v36 }
 0x104   :  { %v836_v44 = vsub.f32 %v5618_v59, %v5027_v0  ;;  %v835_v49 = vsub.f32 %v5621_v38, %v5027_v0  ;;  %v614_v4 = vadd.f32 %v550_v35, %v398_v16  ;;  %v5653_v61 = vrot.slane %v5635_v55, %v8251_v9 }
 0x105   :  { %1045 = vperm.xlu0 %4786, %v834_v45   ;;  %1042 = vperm.xlu1 %4787, %v833_v11   ;;  %v5656_v20 = vadd.f32 %v5582_v50, %v615_v14  ;;  %v400_v47 = vadd.f32 %v336_v42, %v184_v32  ;;  %v339_v36 = vmul.f32 %v4917_v26, %v5577_v58  ;;  %v8284_v42 = vsub.s32 4, %v4866_v2 }
 0x106   :  { %v5661_v39 = vadd.f32 %v5582_v50, %v614_v4  ;;  %v617_v5 = vadd.f32 %v553_v60, %v401_v54  ;;  %v187_v35 = vmul.f32 %v4911_v23, %v5424_v29  ;;  %v338_v16 = vmul.f32 %v4915_v25, %v5577_v58 }
 0x107   :  { %8282 = vst [vmem:[#allocation53_spill] sm:$0xff] %v5656_v20  ;;  %v616_v38 = vadd.f32 %v552_v62, %v400_v47  ;;  %v555_v45 = vmul.f32 %v5024_v63, %v469_v48  ;;  %v189_v11 = vmul.f32 %v4913_v24, %v5424_v29  ;;  %v341_v32 = vmul.f32 %v4938_v33, %v5577_v58 }
 0x108   :  { %8283 = vst [vmem:[#allocation54_spill] sm:$0xff] %v5661_v39  ;;  %v693_v14 = vrot.slane %v5404_v34, %v8284_v42  ;;  %v186_v54 = vmul.f32 %v4907_v21, %v5424_v29  ;;  %v554_v60 = vmul.f32 %v4957_v41, %v469_v48  ;;  %v257_v62 = vrot.slane %v5505_v18, %v4888_v15 }
 0x109   :  { %1051 = vperm.xlu0 %4786, %v836_v44   ;;  %1048 = vperm.xlu1 %4787, %v835_v49   ;;  %v5681_v4 = vadd.f32 %v5582_v50, %v617_v5  ;;  %v5684_v47 = vadd.f32 %v5582_v50, %v616_v38  ;;  %v403_v59 = vadd.f32 %v339_v36, %v187_v35 }
 0x10a   :  { %v838_v42 = vsub.f32 %v5656_v20, %v5027_v0  ;;  %v402_v57 = vadd.f32 %v338_v16, %v186_v54  ;;  %v188_v13 = vmul.f32 %v4909_v22, %v5424_v29  ;;  %v340_v46 = vmul.f32 %v4919_v27, %v5577_v58 }
 0x10b   :  { %8285 = vst [vmem:[#allocation55_spill] sm:$0xff] %v5681_v4  ;;  %8286 = vst [vmem:[#allocation56_spill] sm:$0xff] %v5684_v47  ;;  %v837_v44 = vsub.f32 %v5661_v39, %v5027_v0  ;;  %v619_v49 = vadd.f32 %v555_v45, %v403_v59  ;;  %v405_v5 = vadd.f32 %v341_v32, %v189_v11 }
 0x10c   :  { %v557_v1 = vmul.f32 %v5070_v40, %v469_v48  ;;  %v618_v50 = vadd.f32 %v554_v60, %v402_v57  ;;  %v556_v38 = vmul.f32 %v5051_v10, %v469_v48  ;;  %v473_v36 = vrot.slane %v5505_v18, %v4892_v17 }
 0x10d   :  { %v5700_v35 = vrot.slane %v5635_v55, %v4888_v15  ;;  %1057 = vperm.xlu0 %4786, %v838_v42   ;;  %1054 = vperm.xlu1 %4787, %v837_v44   ;;  %v840_v29 = vsub.f32 %v5681_v4, %v5027_v0  ;;  %v839_v58 = vsub.f32 %v5684_v47, %v5027_v0 }
 0x10e   :  { %v5706_v59 = vadd.f32 %v693_v14, %v619_v49  ;;  %v5708_v57 = vadd.f32 %v693_v14, %v618_v50  ;;  %v404_v48 = vadd.f32 %v340_v46, %v188_v13  ;;  %v343_v16 = vmul.f32 %v4917_v26, %v257_v62  ;;  %v46_v50 = vld [vmem:[%s8060_s0 + $0x3c] sm:$0x7]  ;;  %s4775_s0 = sld [smem:[#allocation2 + $0x1]] }
 0x10f   :  { %v342_v18 = vmul.f32 %v4915_v25, %v257_v62  ;;  %v621_v45 = vadd.f32 %v557_v1, %v405_v5  ;;  %v191_v11 = vmul.f32 %v4911_v23, %v5527_v53  ;;  %v193_v32 = vmul.f32 %v4913_v24, %v5527_v53 }
 0x110   :  { %8287 = vst [vmem:[#allocation57_spill] sm:$0xff] %v5706_v59  ;;  %8288 = vst [vmem:[#allocation58_spill] sm:$0xff] %v5708_v57  ;;  %v345_v54 = vmul.f32 %v4938_v33, %v257_v62  ;;  %v620_v60 = vadd.f32 %v556_v38, %v404_v48  ;;  %v559_v42 = vmul.f32 %v5024_v63, %v473_v36  ;;  %v8289_v13 = vsub.s32 5, %v4866_v2 }
 0x111   :  { %v190_v44 = vmul.f32 %v4907_v21, %v5527_v53  ;;  %v558_v46 = vmul.f32 %v4957_v41, %v473_v36  ;;  %1063 = vperm.xlu0 %4786, %v840_v29   ;;  %1060 = vperm.xlu1 %4787, %v839_v58   ;;  %v842_v49 = vsub.f32 %v5706_v59, %v5027_v0 }
 0x112   :  { %v697_v1 = vrot.slane %v5404_v34, %v8289_v13  ;;  %v5726_v5 = vadd.f32 %v693_v14, %v621_v45  ;;  %v841_v38 = vsub.f32 %v5708_v57, %v5027_v0  ;;  %v5733_v48 = vadd.f32 %v693_v14, %v620_v60 }
 0x113   :  { %v407_v47 = vadd.f32 %v343_v16, %v191_v11  ;;  %v406_v4 = vadd.f32 %v342_v18, %v190_v44  ;;  %v409_v39 = vadd.f32 %v345_v54, %v193_v32  ;;  %v561_v29 = vmul.f32 %v5070_v40, %v473_v36 }
 0x114   :  { %8290 = vst [vmem:[#allocation59_spill] sm:$0xff] %v5726_v5  ;;  %8291 = vst [vmem:[#allocation60_spill] sm:$0xff] %v5733_v48  ;;  %v192_v58 = vmul.f32 %v4909_v22, %v5527_v53  ;;  %v344_v45 = vmul.f32 %v4919_v27, %v257_v62  ;;  %v477_v20 = vrot.slane %v5635_v55, %v4892_v17  ;;  %v8292_v14 = vsub.s32 6, %v4866_v2 }
 0x115   :  { %v623_v13 = vadd.f32 %v559_v42, %v407_v47  ;;  %v622_v59 = vadd.f32 %v558_v46, %v406_v4  ;;  %v5742_v28 = vrot.slane %v46_v50, %v8251_v9  ;;  %1069 = vperm.xlu0 %4786, %v842_v49   ;;  %1066 = vperm.xlu1 %4787, %v841_v38  }
 0x116   :  { %v701_v16 = vrot.slane %v5404_v34, %v8292_v14  ;;  %v560_v18 = vmul.f32 %v5051_v10, %v473_v36  ;;  %v265_v53 = vrot.slane %v46_v50, %v4888_v15  ;;  %v844_v62 = vsub.f32 %v5726_v5, %v5027_v0 }
 0x117   :  { %v5751_v4 = vadd.f32 %v697_v1, %v623_v13  ;;  %v5753_v47 = vadd.f32 %v697_v1, %v622_v59  ;;  %v347_v9 = vmul.f32 %v4917_v26, %v5700_v35  ;;  %v843_v55 = vsub.f32 %v5733_v48, %v5027_v0 }
 0x118   :  { %v625_v11 = vadd.f32 %v561_v29, %v409_v39  ;;  %v408_v32 = vadd.f32 %v344_v45, %v192_v58  ;;  %v346_v36 = vmul.f32 %v4915_v25, %v5700_v35  ;;  %v195_v15 = vmul.f32 %v4911_v23, %v5653_v61 }
 0x119   :  { %8293 = vst [vmem:[#allocation61_spill] sm:$0xff] %v5751_v4  ;;  %8294 = vst [vmem:[#allocation62_spill] sm:$0xff] %v5753_v47  ;;  %v563_v54 = vmul.f32 %v5024_v63, %v477_v20  ;;  %v197_v59 = vmul.f32 %v4913_v24, %v5653_v61  ;;  %v349_v60 = vmul.f32 %v4938_v33, %v5700_v35  ;;  %1075 = vperm.xlu0 %4786, %v844_v62  }
 0x11a   :  { %1072 = vperm.xlu1 %4787, %v843_v55   ;;  %v624_v42 = vadd.f32 %v560_v18, %v408_v32  ;;  %v194_v39 = vmul.f32 %v4907_v21, %v5653_v61  ;;  %v562_v44 = vmul.f32 %v4957_v41, %v477_v20  ;;  %v846_v46 = vsub.f32 %v5751_v4, %v5027_v0 }
 0x11b   :  { %v845_v49 = vsub.f32 %v5753_v47, %v5027_v0  ;;  %v5775_v38 = vadd.f32 %v697_v1, %v625_v11  ;;  %v411_v29 = vadd.f32 %v347_v9, %v195_v15  ;;  %v196_v13 = vmul.f32 %v4909_v22, %v5653_v61 }
 0x11c   :  { %v5777_v58 = vadd.f32 %v697_v1, %v624_v42  ;;  %v410_v45 = vadd.f32 %v346_v36, %v194_v39  ;;  %v348_v14 = vmul.f32 %v4919_v27, %v5700_v35  ;;  %v413_v62 = vadd.f32 %v349_v60, %v197_v59 }
 0x11d   :  { %8295 = vst [vmem:[#allocation63_spill] sm:$0xff] %v5775_v38  ;;  %v627_v18 = vadd.f32 %v563_v54, %v411_v29  ;;  %v565_v55 = vmul.f32 %v5070_v40, %v477_v20  ;;  %v481_v32 = vrot.slane %v46_v50, %v4892_v17  ;;  %v8297_v47 = vsub.s32 7, %v4866_v2  ;;  %1081 = vperm.xlu0 %4786, %v846_v46  }
 0x11e   :  { %8296 = vst [vmem:[#allocation64_spill] sm:$0xff] %v5777_v58  ;;  %1078 = vperm.xlu1 %4787, %v845_v49   ;;  %v626_v1 = vadd.f32 %v562_v44, %v410_v45  ;;  %v564_v9 = vmul.f32 %v5051_v10, %v477_v20  ;;  %v848_v61 = vsub.f32 %v5775_v38, %v5027_v0 }
 0x11f   :  { %v705_v11 = vrot.slane %v5404_v34, %v8297_v47  ;;  %v5791_v36 = vadd.f32 %v701_v16, %v627_v18  ;;  %v351_v35 = vmul.f32 %v4917_v26, %v265_v53  ;;  %v350_v15 = vmul.f32 %v4915_v25, %v265_v53 }
 0x120   :  { %v847_v17 = vsub.f32 %v5777_v58, %v5027_v0  ;;  %v5797_v2 = vadd.f32 %v701_v16, %v626_v1  ;;  %v412_v34 = vadd.f32 %v348_v14, %v196_v13  ;;  %v199_v50 = vmul.f32 %v4911_v23, %v5742_v28 }
 0x121   :  { %8298 = vst [vmem:[#allocation65_spill] sm:$0xff] %v5791_v36  ;;  %v629_v47 = vadd.f32 %v565_v55, %v413_v62  ;;  %v567_v20 = vmul.f32 %v5024_v63, %v481_v32  ;;  %v198_v54 = vmul.f32 %v4907_v21, %v5742_v28  ;;  %v566_v59 = vmul.f32 %v4957_v41, %v481_v32 }
 0x122   :  { %8299 = vst [vmem:[#allocation66_spill] sm:$0xff] %v5797_v2  ;;  %1087 = vperm.xlu0 %4786, %v848_v61   ;;  %1084 = vperm.xlu1 %4787, %v847_v17   ;;  %v628_v25 = vadd.f32 %v564_v9, %v412_v34  ;;  %v201_v26 = vmul.f32 %v4913_v24, %v5742_v28  ;;  %v5845_v61 = vstv %s4775_s0 }
 0x123   :  { %v353_v60 = vmul.f32 %v4938_v33, %v265_v53  ;;  %v850_v42 = vsub.f32 %v5791_v36, %v5027_v0  ;;  %v5810_v23 = vadd.f32 %v701_v16, %v629_v47  ;;  %v415_v39 = vadd.f32 %v351_v35, %v199_v50  ;;  %v5875_v47 = vld [vmem:[%s8062_s2] sm:$0xff] }
 0x124   :  { %v414_v63 = vadd.f32 %v350_v15, %v198_v54  ;;  %v849_v21 = vsub.f32 %v5797_v2, %v5027_v0  ;;  %v5814_v44 = vadd.f32 %v701_v16, %v628_v25  ;;  %v200_v41 = vmul.f32 %v4909_v22, %v5742_v28 }
 0x125   :  { %v352_v46 = vmul.f32 %v4919_v27, %v265_v53  ;;  %v631_v24 = vadd.f32 %v567_v20, %v415_v39  ;;  %v417_v33 = vadd.f32 %v353_v60, %v201_v26  ;;  %v569_v29 = vmul.f32 %v5070_v40, %v481_v32  ;;  %v8302_v26 = vld [vmem:[#allocation30_spill] sm:$0xff] }
 0x126   :  { %v630_v49 = vadd.f32 %v566_v59, %v414_v63  ;;  %1093 = vperm.xlu0 %4786, %v850_v42   ;;  %1090 = vperm.xlu1 %4787, %v849_v21   ;;  %v568_v45 = vmul.f32 %v5051_v10, %v481_v32  ;;  %v852_v13 = vsub.f32 %v5810_v23, %v5027_v0  ;;  %v8303_v63 = vld [vmem:[#allocation31_spill] sm:$0xff] }
 0x127   :  { %v851_v16 = vsub.f32 %v5814_v44, %v5027_v0  ;;  %v5825_v14 = vadd.f32 %v705_v11, %v631_v24  ;;  %v416_v27 = vadd.f32 %v352_v46, %v200_v41  ;;  %v633_v28 = vadd.f32 %v569_v29, %v417_v33  ;;  %v8304_v41 = vld [vmem:[#allocation32_spill] sm:$0xff] }
 0x128   :  { %v5827_v22 = vadd.f32 %v705_v11, %v630_v49  ;;  %v1473_v17 = vsub.f32 %v5128_v31, %v5845_v61  ;;  %v5879_v20 = vsub.f32 %v5875_v47, %v5845_v61  ;;  %v1475_v25 = vsub.f32 %v5156_v51, %v5845_v61 }
 0x129   :  { %v632_v53 = vadd.f32 %v568_v45, %v416_v27  ;;  %v854_v40 = vsub.f32 %v5825_v14, %v5027_v0  ;;  %v5833_v18 = vadd.f32 %v705_v11, %v633_v28  ;;  %v1474_v60 = vsub.f32 %v8302_v26, %v5845_v61 }
 0x12a   :  { %1099 = vperm.xlu0 %4786, %v852_v13   ;;  %1096 = vperm.xlu1 %4787, %v851_v16   ;;  %v853_v10 = vsub.f32 %v5827_v22, %v5027_v0  ;;  %1468 = vst.msk [vmem:[#allocation5 + $0x10] sm:$0xff] %vm790_vm0, %v5879_v20  ;;  %v1477_v21 = vsub.f32 %v8303_v63, %v5845_v61 }
 0x12b   :  { %v5835_v62 = vadd.f32 %v705_v11, %v632_v53  ;;  %v856_v55 = vsub.f32 %v5833_v18, %v5027_v0  ;;  %v1471_v11 = vsub.f32 %v5116_v6, %v5845_v61  ;;  %v1476_v46 = vsub.f32 %v8304_v41, %v5845_v61  ;;  %v8318_v41 = vld [vmem:[#allocation12_spill] sm:$0xff] }
 0x12c   :  { %v1479_v33 = vsub.f32 %v5208_v37, %v5845_v61  ;;  %v1478_v29 = vsub.f32 %v5210_v52, %v5845_v61  ;;  %v1481_v16 = vsub.f32 %v5232_v7, %v5845_v61  ;;  %v1480_v27 = vsub.f32 %v5234_v12, %v5845_v61 }
 0x12d   :  { %v855_v32 = vsub.f32 %v5835_v62, %v5027_v0  ;;  %v1470_v0 = vsub.f32 %v5118_v3, %v5845_v61 }
 0x12e   :  { %1105 = vperm.xlu0 %4786, %v854_v40   ;;  %1102 = vperm.xlu1 %4787, %v853_v10   ;;  %v1483_v40 = vsub.f32 %v5262_v8, %v5845_v61  ;;  %v8305_v10 = vld [vmem:[#allocation38_spill] sm:$0xff] }
 0x132   :  { %1111 = vperm.xlu0 %4786, %v856_v55   ;;  %1108 = vperm.xlu1 %4787, %v855_v32   ;;  %v1482_v55 = vsub.f32 %v8305_v10, %v5845_v61 }
 0x134   :  { %v5841_v1 = vpop.permute.xlu0 %925  ;;  %v5843_v9 = vpop.permute.xlu1 %922 }
 0x136   :  { %1456 = vrot.lane.b32.xlu0 %v5605_v30, %s4834_s29  ;;  %1454 = vrot.lane.b32.xlu1 %v5615_v19, %s4834_s29  ;;  %v8300_v30 = vld [vmem:[#allocation28_spill] sm:$0xff]  ;;  %v5866_v19 = vld [vmem:[%s8062_s2 + $0x8] sm:$0xff] }
 0x137   :  { %v1472_v34 = vsub.f32 %v8300_v30, %v5845_v61  ;;  %v5870_v50 = vsub.f32 %v5866_v19, %v5845_v61  ;;  %8301 = vst [vmem:[#allocation28_spill] sm:$0xff] %v5875_v47 }
 0x138   :  { %v5855_v35 = vpop.permute.xlu0 %931  ;;  %v5857_v15 = vpop.permute.xlu1 %928 }
 0x139   :  { %1469 = vst.msk [vmem:[#allocation5 + $0x18] sm:$0xff] %vm790_vm0, %v5870_v50 }
 0x13a   :  { %1602 = vperm.xlu0 %4786, %v1471_v11   ;;  %1599 = vperm.xlu1 %4787, %v1470_v0   ;;  %v8306_v0 = vld [vmem:[#allocation39_spill] sm:$0xff] }
 0x13c   :  { %v5881_v54 = vpop.permute.xlu0 %937  ;;  %v5883_v59 = vpop.permute.xlu1 %934 }
 0x13e   :  { %1608 = vperm.xlu0 %4786, %v1473_v17   ;;  %1605 = vperm.xlu1 %4787, %v1472_v34   ;;  %v1485_v17 = vsub.f32 %v8306_v0, %v5845_v61  ;;  %v8307_v34 = vld [vmem:[#allocation40_spill] sm:$0xff]  ;;  %v8311_v0 = vld [vmem:[#allocation46_spill] sm:$0xff] }
 0x140   :  { %v5893_v42 = vpop.permute.xlu0 %943  ;;  %v5895_v39 = vpop.permute.xlu1 %940 }
 0x142   :  { %1614 = vperm.xlu0 %4786, %v1475_v25   ;;  %1611 = vperm.xlu1 %4787, %v1474_v60   ;;  %v1484_v25 = vsub.f32 %v8307_v34, %v5845_v61 }
 0x144   :  { %v5901_v24 = vpop.permute.xlu0 %949  ;;  %v5903_v49 = vpop.permute.xlu1 %946 }
 0x146   :  { %1620 = vperm.xlu0 %4786, %v1477_v21   ;;  %1617 = vperm.xlu1 %4787, %v1476_v46   ;;  %v1487_v46 = vsub.f32 %v5310_v43, %v5845_v61 }
 0x148   :  { %v5909_v45 = vpop.permute.xlu0 %955  ;;  %v5911_v13 = vpop.permute.xlu1 %952 }
 0x14a   :  { %1626 = vperm.xlu0 %4786, %v1479_v33   ;;  %1623 = vperm.xlu1 %4787, %v1478_v29   ;;  %v1486_v33 = vsub.f32 %v5312_v56, %v5845_v61  ;;  %v8310_v56 = vld [vmem:[#allocation45_spill] sm:$0xff] }
 0x14b   :  { %v1491_v43 = vsub.f32 %v8310_v56, %v5845_v61  ;;  %v8315_v56 = vld [vmem:[#allocation17_spill] sm:$0xff] }
 0x14c   :  { %v5917_v28 = vpop.permute.xlu0 %961  ;;  %v5919_v53 = vpop.permute.xlu1 %958  ;;  %v1493_v52 = vsub.f32 %v8315_v56, %v5845_v61 }
 0x14e   :  { %1632 = vperm.xlu0 %4786, %v1481_v16   ;;  %1629 = vperm.xlu1 %4787, %v1480_v27   ;;  %v8308_v27 = vld [vmem:[#allocation43_spill] sm:$0xff] }
 0x150   :  { %v5925_v32 = vpop.permute.xlu0 %967  ;;  %v5927_v11 = vpop.permute.xlu1 %964 }
 0x152   :  { %1638 = vperm.xlu0 %4786, %v1483_v40   ;;  %1635 = vperm.xlu1 %4787, %v1482_v55   ;;  %v1489_v40 = vsub.f32 %v8308_v27, %v5845_v61  ;;  %v8309_v55 = vld [vmem:[#allocation44_spill] sm:$0xff]  ;;  %v8313_v27 = vld [vmem:[#allocation9_spill] sm:$0xff] }
 0x153   :  { %v1488_v34 = vsub.f32 %v8309_v55, %v5845_v61  ;;  %v1119_v8 = vrot.slane %v5843_v9, %v8313_v27  ;;  %v8314_v55 = vld [vmem:[#allocation11_spill] sm:$0xff]  ;;  %v1163_v9 = vrot.slane %v5903_v49, %v8313_v27 }
 0x154   :  { %v5933_v60 = vpop.permute.xlu0 %973  ;;  %v5935_v21 = vpop.permute.xlu1 %970  ;;  %v1131_v12 = vrot.slane %v5857_v15, %v8314_v55  ;;  %v1153_v15 = vrot.slane %v5895_v39, %v8314_v55  ;;  %v1191_v56 = vrot.slane %v5927_v11, %v8314_v55 }
 0x156   :  { %1644 = vperm.xlu0 %4786, %v1485_v17   ;;  %1641 = vperm.xlu1 %4787, %v1484_v25  }
 0x158   :  { %v5941_v29 = vpop.permute.xlu0 %979  ;;  %v5943_v16 = vpop.permute.xlu1 %976 }
 0x15a   :  { %1650 = vperm.xlu0 %4786, %v1487_v46   ;;  %1647 = vperm.xlu1 %4787, %v1486_v33   ;;  %v1490_v46 = vsub.f32 %v8311_v0, %v5845_v61  ;;  %v8312_v33 = vld [vmem:[#allocation10_spill] sm:$0xff]  ;;  %v1144_v0 = vrot.slane %v5883_v59, %v8313_v27 }
 0x15b   :  { %v1124_v10 = vrot.slane %v5841_v1, %v8312_v33  ;;  %v1167_v1 = vrot.slane %v5901_v24, %v8312_v33  ;;  %v1186_v59 = vrot.slane %v5917_v28, %v8312_v33  ;;  %v1182_v24 = vrot.slane %v5919_v53, %v8313_v27  ;;  %v8319_v28 = vld [vmem:[#allocation48_spill] sm:$0xff] }
 0x15c   :  { %v5949_v17 = vpop.permute.xlu0 %985  ;;  %v5951_v25 = vpop.permute.xlu1 %982  ;;  %v1494_v51 = vsub.f32 %v8319_v28, %v5845_v61 }
 0x15d   :  { %v1126_v39 = vsel %vm1125_vm1, %v1124_v10, %v1119_v8  ;;  %v1168_v47 = vsel %vm1125_vm1, %v1167_v1, %v1163_v9  ;;  %v1158_v8 = vrot.slane %v5893_v42, %v8318_v41  ;;  %v1177_v10 = vrot.slane %v5909_v45, %v8318_v41 }
 0x15e   :  { %1656 = vperm.xlu0 %4786, %v1489_v40   ;;  %1653 = vperm.xlu1 %4787, %v1488_v34   ;;  %v1148_v40 = vrot.slane %v5881_v54, %v8312_v33  ;;  %v1172_v54 = vrot.slane %v5911_v13, %v8314_v55  ;;  %v1138_v13 = vrot.slane %v5855_v35, %v8318_v41 }
 0x15f   :  { %v1133_v53 = vsel %vm1132_vm2, %v1131_v12, %v1126_v39  ;;  %v1187_v28 = vsel %vm1125_vm1, %v1186_v59, %v1182_v24  ;;  %v1196_v12 = vrot.slane %v5925_v32, %v8318_v41  ;;  %v1224_v45 = vrot.slane %v5949_v17, %v8312_v33  ;;  %v8320_v17 = vld [vmem:[#allocation49_spill] sm:$0xff] }
 0x160   :  { %v5965_v34 = vpop.permute.xlu0 %991  ;;  %v5967_v7 = vpop.permute.xlu1 %988  ;;  %v1173_v11 = vsel %vm1132_vm2, %v1172_v54, %v1168_v47  ;;  %v1192_v42 = vsel %vm1132_vm2, %v1191_v56, %v1187_v28  ;;  %v1220_v47 = vrot.slane %v5951_v25, %v8313_v27  ;;  %v1140_v56 = vsel %vm1139_vm3, %v1138_v13, %v1133_v53  ;;  %v8321_v25 = vld [vmem:[#allocation16_spill] sm:$0xff] }
 0x161   :  { %v1229_v32 = vrot.slane %v5967_v7, %v8314_v55  ;;  %v1496_v54 = vsub.f32 %v8321_v25, %v5845_v61  ;;  %v1178_v7 = vsel %vm1139_vm3, %v1177_v10, %v1173_v11 }
 0x162   :  { %1662 = vperm.xlu0 %4786, %v1491_v43   ;;  %1659 = vperm.xlu1 %4787, %v1490_v46   ;;  %v8316_v43 = vld [vmem:[#allocation47_spill] sm:$0xff]  ;;  %v1225_v24 = vsel %vm1125_vm1, %v1224_v45, %v1220_v47 }
 0x163   :  { %v1492_v49 = vsub.f32 %v8316_v43, %v5845_v61  ;;  %v8317_v46 = vld [vmem:[#allocation19_spill] sm:$0xff]  ;;  %v1149_v43 = vsel %vm1125_vm1, %v1148_v40, %v1144_v0  ;;  %v1205_v0 = vrot.slane %v5933_v60, %v8312_v33  ;;  %v1210_v40 = vrot.slane %v5943_v16, %v8314_v55 }
 0x164   :  { %v1495_v37 = vsub.f32 %v8317_v46, %v5845_v61  ;;  %v998_v63 = vpop.permute.xlu0 %997  ;;  %v995_v26 = vpop.permute.xlu1 %994  ;;  %v1154_v35 = vsel %vm1132_vm2, %v1153_v15, %v1149_v43  ;;  %v1497_v15 = vsub.f32 %v8320_v17, %v5845_v61  ;;  %v1234_v43 = vrot.slane %v5965_v34, %v8318_v41 }
 0x165   :  { %v1243_v60 = vrot.slane %v998_v63, %v8312_v33  ;;  %v1159_v59 = vsel %vm1139_vm3, %v1158_v8, %v1154_v35  ;;  %v1230_v13 = vsel %vm1132_vm2, %v1229_v32, %v1225_v24 }
 0x166   :  { %1668 = vperm.xlu0 %4786, %v1493_v52   ;;  %1665 = vperm.xlu1 %4787, %v1492_v49   ;;  %v1201_v52 = vrot.slane %v5935_v21, %v8313_v27  ;;  %v1239_v21 = vrot.slane %v995_v26, %v8313_v27  ;;  %v1235_v45 = vsel %vm1139_vm3, %v1234_v43, %v1230_v13  ;;  %v8327_v13 = vld [vmem:[#allocation21_spill] sm:$0xff] }
 0x168   :  { %v1004_v1 = vpop.permute.xlu0 %1003  ;;  %v1001_v9 = vpop.permute.xlu1 %1000  ;;  %v1206_v63 = vsel %vm1125_vm1, %v1205_v0, %v1201_v52  ;;  %v1244_v28 = vsel %vm1125_vm1, %v1243_v60, %v1239_v21  ;;  %v8323_v52 = vld [vmem:[#allocation20_spill] sm:$0xff] }
 0x169   :  { %v1248_v16 = vrot.slane %v1001_v9, %v8314_v55  ;;  %v1211_v26 = vsel %vm1132_vm2, %v1210_v40, %v1206_v63  ;;  %v1253_v53 = vrot.slane %v1004_v1, %v8318_v41 }
 0x16a   :  { %1674 = vperm.xlu0 %4786, %v1495_v37   ;;  %1671 = vperm.xlu1 %4787, %v1494_v51   ;;  %v1215_v37 = vrot.slane %v5941_v29, %v8318_v41  ;;  %v1197_v51 = vsel %vm1139_vm3, %v1196_v12, %v1192_v42  ;;  %v1427_v29 = vsel %vm1426_vm4, %v1159_v59, %v1140_v56  ;;  %v8322_v12 = vld [vmem:[#allocation8_spill] sm:$0xff]  ;;  %v8325_v59 = vld [vmem:[#allocation23_spill] sm:$0xff] }
 0x16b   :  { %v1249_v8 = vsel %vm1132_vm2, %v1248_v16, %v1244_v28  ;;  %v1429_v34 = vsel %vm1428_vm5, %v1178_v7, %v1427_v29  ;;  %v1499_v0 = vsub.f32 %v8322_v12, %v5845_v61  ;;  %v1498_v42 = vsub.f32 %v8323_v52, %v5845_v61  ;;  %v8324_v16 = vld [vmem:[#allocation18_spill] sm:$0xff] }
 0x16c   :  { %v1010_v49 = vpop.permute.xlu0 %1009  ;;  %v1007_v39 = vpop.permute.xlu1 %1006  ;;  %v1216_v11 = vsel %vm1139_vm3, %v1215_v37, %v1211_v26  ;;  %v1431_v40 = vsel %vm1430_vm6, %v1197_v51, %v1429_v34  ;;  %v1254_v9 = vsel %vm1139_vm3, %v1253_v53, %v1249_v8  ;;  %v1500_v7 = vsub.f32 %v8325_v59, %v5845_v61  ;;  %v8328_v8 = vld [vmem:[#allocation24_spill] sm:$0xff] }
 0x16d   :  { %v1262_v35 = vrot.slane %v1010_v49, %v8312_v33  ;;  %v1258_v10 = vrot.slane %v1007_v39, %v8313_v27  ;;  %v1433_v21 = vsel %vm1432_vm7, %v1216_v11, %v1431_v40  ;;  %v8326_v49 = vld [vmem:[#allocation15_spill] sm:$0xff]  ;;  %v1502_v28 = vsub.f32 %v8327_v13, %v5845_v61 }
 0x16e   :  { %1680 = vperm.xlu0 %4786, %v1497_v15   ;;  %1677 = vperm.xlu1 %4787, %v1496_v54   ;;  %v1501_v15 = vsub.f32 %v8324_v16, %v5845_v61  ;;  %v1435_v63 = vsel %vm1434_vm8, %v1235_v45, %v1433_v21  ;;  %v1503_v39 = vsub.f32 %v8326_v49, %v5845_v61  ;;  %v8331_v45 = vld [vmem:[#allocation27_spill] sm:$0xff] }
 0x16f   :  { %v1263_v56 = vsel %vm1125_vm1, %v1262_v35, %v1258_v10  ;;  %v1437_v24 = vsel %vm1436_vm9, %v1254_v9, %v1435_v63  ;;  %v1505_v35 = vsub.f32 %v8328_v8, %v5845_v61  ;;  %v8329_v10 = vld [vmem:[#allocation26_spill] sm:$0xff]  ;;  %v8333_v21 = vld [vmem:[#allocation51_spill] sm:$0xff] }
 0x170   :  { %v1016_v47 = vpop.permute.xlu0 %1015  ;;  %v1013_v1 = vpop.permute.xlu1 %1012  ;;  %v1504_v34 = vsub.f32 %v8329_v10, %v5845_v61 }
 0x171   :  { %v1272_v32 = vrot.slane %v1016_v47, %v8318_v41  ;;  %v1267_v60 = vrot.slane %v1013_v1, %v8314_v55  ;;  %v1506_v47 = vsub.f32 %v8331_v45, %v5845_v61 }
 0x172   :  { %1686 = vperm.xlu0 %4786, %v1499_v0   ;;  %1683 = vperm.xlu1 %4787, %v1498_v42   ;;  %v8330_v42 = vld [vmem:[#allocation50_spill] sm:$0xff] }
 0x173   :  { %v1268_v54 = vsel %vm1132_vm2, %v1267_v60, %v1263_v56  ;;  %v1507_v40 = vsub.f32 %v8330_v42, %v5845_v61  ;;  %v1508_v56 = vsub.f32 %v8333_v21, %v5845_v61 }
 0x174   :  { %v6065_v37 = vpop.permute.xlu0 %1021  ;;  %v6067_v51 = vpop.permute.xlu1 %1018  ;;  %v1273_v26 = vsel %vm1139_vm3, %v1272_v32, %v1268_v54  ;;  %v8332_v32 = vld [vmem:[#allocation22_spill] sm:$0xff] }
 0x175   :  { %v1439_v43 = vsel %vm1438_vm10, %v1273_v26, %v1437_v24  ;;  %v1509_v60 = vsub.f32 %v8332_v32, %v5845_v61  ;;  %v8335_v26 = vld [vmem:[#allocation25_spill] sm:$0xff]  ;;  %v8341_v32 = vld [vmem:[#allocation56_spill] sm:$0xff] }
 0x176   :  { %1692 = vperm.xlu0 %4786, %v1501_v15   ;;  %1689 = vperm.xlu1 %4787, %v1500_v7   ;;  %1450 = vst.msk [vmem:[#allocation5] sm:$0xff] %vm1449_vm11, %v1439_v43  ;;  %v8334_v7 = vld [vmem:[#allocation52_spill] sm:$0xff]  ;;  %v1510_v24 = vsub.f32 %v8335_v26, %v5845_v61  ;;  %v1516_v45 = vsub.f32 %v8341_v32, %v5845_v61 }
 0x177   :  { %v1511_v63 = vsub.f32 %v8334_v7, %v5845_v61  ;;  %v8339_v7 = vld [vmem:[#allocation54_spill] sm:$0xff]  ;;  %v1521_v32 = vsub.f32 %v5726_v5, %v5845_v61 }
 0x178   :  { %v6077_v53 = vpop.permute.xlu0 %1027  ;;  %v6079_v29 = vpop.permute.xlu1 %1024  ;;  %v1514_v21 = vsub.f32 %v8339_v7, %v5845_v61 }
 0x17a   :  { %1698 = vperm.xlu0 %4786, %v1503_v39   ;;  %1695 = vperm.xlu1 %4787, %v1502_v28   ;;  %v8336_v28 = vld [vmem:[#allocation13_spill] sm:$0xff] }
 0x17c   :  { %v6085_v11 = vpop.permute.xlu0 %1033  ;;  %v6087_v0 = vpop.permute.xlu1 %1030 }
 0x17d   :  { %v1300_v5 = vrot.slane %v6085_v11, %v8312_v33  ;;  %v1525_v11 = vsub.f32 %v5775_v38, %v5845_v61 }
 0x17e   :  { %1704 = vperm.xlu0 %4786, %v1505_v35   ;;  %1701 = vperm.xlu1 %4787, %v1504_v34   ;;  %v1513_v35 = vsub.f32 %v8336_v28, %v5845_v61  ;;  %v8337_v34 = vld [vmem:[#allocation14_spill] sm:$0xff]  ;;  %v8340_v28 = vld [vmem:[#allocation55_spill] sm:$0xff] }
 0x180   :  { %v6093_v1 = vpop.permute.xlu0 %1039  ;;  %v6095_v9 = vpop.permute.xlu1 %1036 }
 0x182   :  { %1710 = vperm.xlu0 %4786, %v1507_v40   ;;  %1707 = vperm.xlu1 %4787, %v1506_v47   ;;  %v1512_v40 = vsub.f32 %v8337_v34, %v5845_v61  ;;  %v1517_v34 = vsub.f32 %v8340_v28, %v5845_v61  ;;  %v1520_v28 = vsub.f32 %v5733_v48, %v5845_v61 }
 0x183   :  { %v1286_v48 = vrot.slane %v6079_v29, %v8314_v55 }
 0x184   :  { %v6101_v15 = vpop.permute.xlu0 %1045  ;;  %v6103_v54 = vpop.permute.xlu1 %1042 }
 0x186   :  { %1716 = vperm.xlu0 %4786, %v1509_v60   ;;  %1713 = vperm.xlu1 %4787, %v1508_v56   ;;  %v8338_v56 = vld [vmem:[#allocation53_spill] sm:$0xff] }
 0x187   :  { %v1515_v26 = vsub.f32 %v8338_v56, %v5845_v61  ;;  %v1518_v56 = vsub.f32 %v5708_v57, %v5845_v61  ;;  %v1523_v57 = vsub.f32 %v5751_v4, %v5845_v61  ;;  %v1296_v4 = vrot.slane %v6087_v0, %v8313_v27 }
 0x188   :  { %v6109_v43 = vpop.permute.xlu0 %1051  ;;  %v6111_v39 = vpop.permute.xlu1 %1048 }
 0x189   :  { %v1324_v29 = vrot.slane %v6111_v39, %v8314_v55  ;;  %v1301_v13 = vsel %vm1125_vm1, %v1300_v5, %v1296_v4 }
 0x18a   :  { %1722 = vperm.xlu0 %4786, %v1511_v63   ;;  %1719 = vperm.xlu1 %4787, %v1510_v24  }
 0x18c   :  { %v6117_v47 = vpop.permute.xlu0 %1057  ;;  %v6119_v60 = vpop.permute.xlu1 %1054 }
 0x18d   :  { %v1338_v0 = vrot.slane %v6117_v47, %v8312_v33  ;;  %v1526_v47 = vsub.f32 %v5797_v2, %v5845_v61 }
 0x18e   :  { %1728 = vperm.xlu0 %4786, %v1513_v35   ;;  %1725 = vperm.xlu1 %4787, %v1512_v40   ;;  %v8342_v40 = vld [vmem:[#allocation57_spill] sm:$0xff] }
 0x18f   :  { %v1519_v7 = vsub.f32 %v8342_v40, %v5845_v61  ;;  %v8343_v40 = vld [vmem:[#allocation62_spill] sm:$0xff] }
 0x190   :  { %v6125_v63 = vpop.permute.xlu0 %1063  ;;  %v1061_v24 = vpop.permute.xlu1 %1060  ;;  %v1522_v10 = vsub.f32 %v8343_v40, %v5845_v61  ;;  %v1319_v40 = vrot.slane %v6101_v15, %v8312_v33  ;;  %v1334_v15 = vrot.slane %v6119_v60, %v8313_v27 }
 0x191   :  { %v1343_v39 = vrot.slane %v1061_v24, %v8314_v55  ;;  %v1329_v24 = vrot.slane %v6109_v43, %v8318_v41 }
 0x192   :  { %1734 = vperm.xlu0 %4786, %v1515_v26   ;;  %1731 = vperm.xlu1 %4787, %v1514_v21   ;;  %v1339_v2 = vsel %vm1125_vm1, %v1338_v0, %v1334_v15 }
 0x194   :  { %v6131_v42 = vpop.permute.xlu0 %1069  ;;  %v6133_v35 = vpop.permute.xlu1 %1066 }
 0x195   :  { %v1357_v5 = vrot.slane %v6131_v42, %v8312_v33  ;;  %v1353_v4 = vrot.slane %v6133_v35, %v8313_v27 }
 0x196   :  { %1740 = vperm.xlu0 %4786, %v1517_v34   ;;  %1737 = vperm.xlu1 %4787, %v1516_v45  }
 0x198   :  { %v6139_v26 = vpop.permute.xlu0 %1075 }
 0x199   :  { %v6141_v21 = vpop.permute.xlu1 %1072 }
 0x19a   :  { %1746 = vperm.xlu0 %4786, %v1519_v7   ;;  %1743 = vperm.xlu1 %4787, %v1518_v56   ;;  %v1281_v7 = vrot.slane %v6065_v37, %v8312_v33  ;;  %v1277_v56 = vrot.slane %v6067_v51, %v8313_v27  ;;  %v1315_v37 = vrot.slane %v6103_v54, %v8313_v27 }
 0x19b   :  { %v1305_v51 = vrot.slane %v6095_v9, %v8314_v55  ;;  %v1524_v54 = vsub.f32 %v5777_v58, %v5845_v61  ;;  %v1291_v9 = vrot.slane %v6077_v53, %v8318_v41 }
 0x19c   :  { %v6147_v34 = vpop.permute.xlu0 %1081  ;;  %v1320_v58 = vsel %vm1125_vm1, %v1319_v40, %v1315_v37 }
 0x19d   :  { %v6149_v45 = vpop.permute.xlu1 %1078  ;;  %v1306_v53 = vsel %vm1132_vm2, %v1305_v51, %v1301_v13  ;;  %v1362_v13 = vrot.slane %v6141_v21, %v8314_v55  ;;  %v1376_v43 = vrot.slane %v6147_v34, %v8312_v33  ;;  %v1529_v21 = vsub.f32 %v5810_v23, %v5845_v61 }
 0x19e   :  { %1752 = vperm.xlu0 %4786, %v1521_v32   ;;  %1749 = vperm.xlu1 %4787, %v1520_v28   ;;  %v1528_v34 = vsub.f32 %v5814_v44, %v5845_v61 }
 0x1a1   :  { %v6163_v32 = vpop.permute.xlu0 %1087  ;;  %v1085_v28 = vpop.permute.xlu1 %1084 }
 0x1a2   :  { %1758 = vperm.xlu0 %4786, %v1523_v57   ;;  %1755 = vperm.xlu1 %4787, %v1522_v10   ;;  %v1527_v57 = vsub.f32 %v5791_v36, %v5845_v61  ;;  %v1282_v10 = vsel %vm1125_vm1, %v1281_v7, %v1277_v56  ;;  %v1310_v7 = vrot.slane %v6093_v1, %v8318_v41 }
 0x1a3   :  { %v1287_v60 = vsel %vm1132_vm2, %v1286_v48, %v1282_v10  ;;  %v1325_v56 = vsel %vm1132_vm2, %v1324_v29, %v1320_v58  ;;  %v1348_v48 = vrot.slane %v6125_v63, %v8318_v41  ;;  %v1344_v1 = vsel %vm1132_vm2, %v1343_v39, %v1339_v2 }
 0x1a4   :  { %v1372_v58 = vrot.slane %v6149_v45, %v8313_v27  ;;  %v1381_v63 = vrot.slane %v1085_v28, %v8314_v55  ;;  %v1292_v2 = vsel %vm1139_vm3, %v1291_v9, %v1287_v60  ;;  %v1311_v45 = vsel %vm1139_vm3, %v1310_v7, %v1306_v53 }
 0x1a5   :  { %v1094_v38 = vpop.permute.xlu0 %1093  ;;  %v1091_v8 = vpop.permute.xlu1 %1090  ;;  %v1330_v28 = vsel %vm1139_vm3, %v1329_v24, %v1325_v56  ;;  %v1349_v29 = vsel %vm1139_vm3, %v1348_v48, %v1344_v1  ;;  %v1386_v15 = vrot.slane %v6163_v32, %v8318_v41  ;;  %v1531_v24 = vsub.f32 %v5825_v14, %v5845_v61 }
 0x1a6   :  { %1764 = vperm.xlu0 %4786, %v1525_v11   ;;  %1761 = vperm.xlu1 %4787, %v1524_v54   ;;  %v1395_v42 = vrot.slane %v1094_v38, %v8312_v33  ;;  %v1391_v51 = vrot.slane %v1091_v8, %v8313_v27  ;;  %v1358_v38 = vsel %vm1125_vm1, %v1357_v5, %v1353_v4 }
 0x1a7   :  { %v1367_v8 = vrot.slane %v6139_v26, %v8318_v41  ;;  %v1363_v11 = vsel %vm1132_vm2, %v1362_v13, %v1358_v38  ;;  %v1377_v0 = vsel %vm1125_vm1, %v1376_v43, %v1372_v58  ;;  %v1440_v26 = vsel %vm1426_vm4, %v1311_v45, %v1292_v2 }
 0x1a8   :  { %v1382_v10 = vsel %vm1132_vm2, %v1381_v63, %v1377_v0  ;;  %v1396_v9 = vsel %vm1125_vm1, %v1395_v42, %v1391_v51  ;;  %v1441_v32 = vsel %vm1428_vm5, %v1330_v28, %v1440_v26  ;;  %v1530_v56 = vsub.f32 %v5827_v22, %v5845_v61  ;;  %v8345_v26 = vld [vmem:[#allocation29_spill] sm:$0xff] }
 0x1a9   :  { %v1100_v40 = vpop.permute.xlu0 %1099  ;;  %v1097_v37 = vpop.permute.xlu1 %1096  ;;  %v1368_v53 = vsel %vm1139_vm3, %v1367_v8, %v1363_v11  ;;  %v1442_v48 = vsel %vm1430_vm6, %v1349_v29, %v1441_v32  ;;  %v1387_v5 = vsel %vm1139_vm3, %v1386_v15, %v1382_v10  ;;  %v1533_v51 = vsub.f32 %v5833_v18, %v5845_v61 }
 0x1aa   :  { %1770 = vperm.xlu0 %4786, %v1527_v57   ;;  %1767 = vperm.xlu1 %4787, %v1526_v47   ;;  %v1400_v35 = vrot.slane %v1097_v37, %v8314_v55  ;;  %v1405_v39 = vrot.slane %v1100_v40, %v8318_v41  ;;  %v1443_v40 = vsel %vm1432_vm7, %v1368_v53, %v1442_v48  ;;  %v8347_v53 = vld [vmem:[#allocation31_spill] sm:$0xff] }
 0x1ab   :  { %v1444_v42 = vsel %vm1434_vm8, %v1387_v5, %v1443_v40  ;;  %v1532_v2 = vsub.f32 %v5835_v62, %v5845_v61  ;;  %v6269_v61 = vstv %s4776_s8 }
 0x1ac   :  { %v1401_v47 = vsel %vm1132_vm2, %v1400_v35, %v1396_v9  ;;  %v2130_v29 = vsub.f32 %v5116_v6, %v6269_v61  ;;  %v2129_v11 = vsub.f32 %v5118_v3, %v6269_v61 }
 0x1ad   :  { %v1106_v54 = vpop.permute.xlu0 %1105  ;;  %v1103_v57 = vpop.permute.xlu1 %1102  ;;  %v1406_v13 = vsel %vm1139_vm3, %v1405_v39, %v1401_v47  ;;  %v8346_v47 = vld [vmem:[#allocation30_spill] sm:$0xff] }
 0x1ae   :  { %1776 = vperm.xlu0 %4786, %v1529_v21   ;;  %1773 = vperm.xlu1 %4787, %v1528_v34   ;;  %v1414_v60 = vrot.slane %v1106_v54, %v8312_v33  ;;  %v1410_v7 = vrot.slane %v1103_v57, %v8313_v27  ;;  %v1445_v34 = vsel %vm1436_vm9, %v1406_v13, %v1444_v42  ;;  %v8344_v57 = vld [vmem:[#allocation28_spill] sm:$0xff] }
 0x1af   :  { %v2132_v54 = vsub.f32 %v5128_v31, %v6269_v61  ;;  %v6293_v10 = vsub.f32 %v8344_v57, %v6269_v61 }
 0x1b0   :  { %v1415_v37 = vsel %vm1125_vm1, %v1414_v60, %v1410_v7  ;;  %v2133_v60 = vsub.f32 %v8346_v47, %v6269_v61 }
 0x1b1   :  { %v1112_v4 = vpop.permute.xlu0 %1111  ;;  %v1109_v1 = vpop.permute.xlu1 %1108  ;;  %2127 = vst.msk [vmem:[#allocation5 + $0x20] sm:$0xff] %vm790_vm0, %v6293_v10 }
 0x1b2   :  { %v1424_v43 = vrot.slane %v1112_v4, %v8318_v41  ;;  %v1419_v58 = vrot.slane %v1109_v1, %v8314_v55  ;;  %1782 = vperm.xlu0 %4786, %v1531_v24   ;;  %1779 = vperm.xlu1 %4787, %v1530_v56   ;;  %v2136_v24 = vsub.f32 %v8347_v53, %v6269_v61  ;;  %v8348_v56 = vld [vmem:[#allocation32_spill] sm:$0xff]  ;;  %v8349_v1 = vld [vmem:[#allocation33_spill] sm:$0xff] }
 0x1b3   :  { %v2135_v48 = vsub.f32 %v8348_v56, %v6269_v61  ;;  %v2138_v13 = vsub.f32 %v8349_v1, %v6269_v61  ;;  %v8364_v1 = vld [vmem:[#allocation47_spill] sm:$0xff] }
 0x1b4   :  { %v1420_v63 = vsel %vm1132_vm2, %v1419_v58, %v1415_v37 }
 0x1b5   :  { %v1457_v35 = vpop.permute.xlu0 %1456  ;;  %v1425_v21 = vsel %vm1139_vm3, %v1424_v43, %v1420_v63  ;;  %v1455_v45 = vpop.permute.xlu1 %1454  ;;  %v8350_v43 = vld [vmem:[#allocation34_spill] sm:$0xff]  ;;  %v8351_v63 = vld [vmem:[#allocation35_spill] sm:$0xff] }
 0x1b6   :  { %v1446_v28 = vsel %vm1438_vm10, %v1425_v21, %v1445_v34  ;;  %1461 = vst.msk [vmem:[#allocation5] sm:$0xff] %vm1460_vm12, %v1455_v45  ;;  %1788 = vperm.xlu0 %4786, %v1533_v51   ;;  %1785 = vperm.xlu1 %4787, %v1532_v2   ;;  %v2137_v58 = vsub.f32 %v8350_v43, %v6269_v61  ;;  %v8352_v51 = vld [vmem:[#allocation36_spill] sm:$0xff]  ;;  %v8353_v34 = vld [vmem:[#allocation37_spill] sm:$0xff] }
 0x1b7   :  { %1451 = vst.msk [vmem:[#allocation5 + $0x8] sm:$0xff] %vm1449_vm11, %v1446_v28  ;;  %v2140_v42 = vsub.f32 %v8351_v63, %v6269_v61  ;;  %v2139_v2 = vsub.f32 %v8352_v51, %v6269_v61  ;;  %v2142_v45 = vsub.f32 %v8353_v34, %v6269_v61  ;;  %v8354_v28 = vld [vmem:[#allocation38_spill] sm:$0xff] }
 0x1b8   :  { %1462 = vst.msk [vmem:[#allocation5 + $0x8] sm:$0xff] %vm1460_vm12, %v1457_v35  ;;  %v8362_v51 = vld [vmem:[#allocation46_spill] sm:$0xff] }
 0x1b9   :  { %v6265_v38 = vpop.permute.xlu0 %1602  ;;  %v6267_v8 = vpop.permute.xlu1 %1599  ;;  %v2149_v63 = vsub.f32 %v8362_v51, %v6269_v61 }
 0x1ba   :  { %2116 = vrot.lane.b32.xlu0 %v5870_v50, %s4834_s29  ;;  %2114 = vrot.lane.b32.xlu1 %v5879_v20, %s4834_s29  ;;  %v2131_v50 = vsub.f32 %v8300_v30, %v6269_v61  ;;  %v6289_v20 = vsub.f32 %v5866_v19, %v6269_v61  ;;  %v2134_v19 = vsub.f32 %v8345_v26, %v6269_v61 }
 0x1bc   :  { %2128 = vst.msk [vmem:[#allocation5 + $0x28] sm:$0xff] %vm790_vm0, %v6289_v20 }
 0x1bd   :  { %v6279_v0 = vpop.permute.xlu0 %1608  ;;  %v6281_v15 = vpop.permute.xlu1 %1605 }
 0x1be   :  { %2261 = vperm.xlu0 %4786, %v2130_v29   ;;  %2258 = vperm.xlu1 %4787, %v2129_v11   ;;  %v2141_v29 = vsub.f32 %v8354_v28, %v6269_v61  ;;  %v8360_v28 = vld [vmem:[#allocation44_spill] sm:$0xff] }
 0x1bf   :  { %v2147_v34 = vsub.f32 %v8360_v28, %v6269_v61  ;;  %v1802_v28 = vrot.slane %v6281_v15, %v8314_v55 }
 0x1c1   :  { %v6295_v9 = vpop.permute.xlu0 %1614  ;;  %v6297_v39 = vpop.permute.xlu1 %1611 }
 0x1c2   :  { %2267 = vperm.xlu0 %4786, %v2132_v54   ;;  %2264 = vperm.xlu1 %4787, %v2131_v50   ;;  %v8355_v50 = vld [vmem:[#allocation39_spill] sm:$0xff] }
 0x1c3   :  { %v2144_v57 = vsub.f32 %v8355_v50, %v6269_v61 }
 0x1c5   :  { %v6307_v7 = vpop.permute.xlu0 %1620  ;;  %v6309_v32 = vpop.permute.xlu1 %1617 }
 0x1c6   :  { %2273 = vperm.xlu0 %4786, %v2134_v19   ;;  %2270 = vperm.xlu1 %4787, %v2133_v60   ;;  %v8356_v19 = vld [vmem:[#allocation40_spill] sm:$0xff] }
 0x1c7   :  { %v2143_v60 = vsub.f32 %v8356_v19, %v6269_v61  ;;  %v8359_v19 = vld [vmem:[#allocation43_spill] sm:$0xff] }
 0x1c8   :  { %v2148_v50 = vsub.f32 %v8359_v19, %v6269_v61  ;;  %v1816_v19 = vrot.slane %v6295_v9, %v8312_v33  ;;  %v8363_v9 = vld [vmem:[#allocation17_spill] sm:$0xff] }
 0x1c9   :  { %v6315_v5 = vpop.permute.xlu0 %1626  ;;  %v6317_v4 = vpop.permute.xlu1 %1623  ;;  %v2152_v43 = vsub.f32 %v8363_v9, %v6269_v61 }
 0x1ca   :  { %2279 = vperm.xlu0 %4786, %v2136_v24   ;;  %2276 = vperm.xlu1 %4787, %v2135_v48   ;;  %v1835_v51 = vrot.slane %v6315_v5, %v8312_v33 }
 0x1cd   :  { %v6323_v40 = vpop.permute.xlu0 %1632  ;;  %v6325_v37 = vpop.permute.xlu1 %1629 }
 0x1ce   :  { %2285 = vperm.xlu0 %4786, %v2138_v13   ;;  %2282 = vperm.xlu1 %4787, %v2137_v58   ;;  %v8357_v13 = vld [vmem:[#allocation41_spill] sm:$0xff]  ;;  %v1840_v15 = vrot.slane %v6325_v37, %v8314_v55  ;;  %v1807_v37 = vrot.slane %v6279_v0, %v8318_v41 }
 0x1cf   :  { %v2146_v58 = vsub.f32 %v8357_v13, %v6269_v61 }
 0x1d1   :  { %v6331_v35 = vpop.permute.xlu0 %1638  ;;  %v6333_v21 = vpop.permute.xlu1 %1635 }
 0x1d2   :  { %2291 = vperm.xlu0 %4786, %v2140_v42   ;;  %2288 = vperm.xlu1 %4787, %v2139_v2   ;;  %v8358_v42 = vld [vmem:[#allocation42_spill] sm:$0xff]  ;;  %v1850_v5 = vrot.slane %v6333_v21, %v8313_v27 }
 0x1d3   :  { %v2145_v2 = vsub.f32 %v8358_v42, %v6269_v61  ;;  %v8361_v42 = vld [vmem:[#allocation45_spill] sm:$0xff] }
 0x1d4   :  { %v2150_v13 = vsub.f32 %v8361_v42, %v6269_v61  ;;  %v1812_v42 = vrot.slane %v6297_v39, %v8313_v27  ;;  %v1854_v39 = vrot.slane %v6331_v35, %v8312_v33  ;;  %v8365_v35 = vld [vmem:[#allocation48_spill] sm:$0xff] }
 0x1d5   :  { %v6339_v11 = vpop.permute.xlu0 %1644  ;;  %v1642_v54 = vpop.permute.xlu1 %1641  ;;  %v2153_v53 = vsub.f32 %v8365_v35, %v6269_v61 }
 0x1d6   :  { %2297 = vperm.xlu0 %4786, %v2142_v45   ;;  %2294 = vperm.xlu1 %4787, %v2141_v29   ;;  %v1817_v47 = vsel %vm1125_vm1, %v1816_v19, %v1812_v42  ;;  %v1855_v35 = vsel %vm1125_vm1, %v1854_v39, %v1850_v5 }
 0x1d9   :  { %v6345_v24 = vpop.permute.xlu0 %1650  ;;  %v6347_v48 = vpop.permute.xlu1 %1647 }
 0x1da   :  { %2303 = vperm.xlu0 %4786, %v2144_v57   ;;  %2300 = vperm.xlu1 %4787, %v2143_v60  }
 0x1dd   :  { %v6353_v45 = vpop.permute.xlu0 %1656  ;;  %v6355_v29 = vpop.permute.xlu1 %1653 }
 0x1de   :  { %2309 = vperm.xlu0 %4786, %v2146_v58   ;;  %2306 = vperm.xlu1 %4787, %v2145_v2   ;;  %v1797_v58 = vrot.slane %v6265_v38, %v8312_v33  ;;  %v1793_v2 = vrot.slane %v6267_v8, %v8313_v27  ;;  %v1831_v38 = vrot.slane %v6317_v4, %v8313_v27 }
 0x1df   :  { %v1821_v8 = vrot.slane %v6309_v32, %v8314_v55  ;;  %v2151_v4 = vsub.f32 %v8364_v1, %v6269_v61 }
 0x1e0   :  { %v1798_v32 = vsel %vm1125_vm1, %v1797_v58, %v1793_v2  ;;  %v1836_v1 = vsel %vm1125_vm1, %v1835_v51, %v1831_v38  ;;  %v1826_v58 = vrot.slane %v6307_v7, %v8318_v41  ;;  %v1873_v51 = vrot.slane %v6345_v24, %v8312_v33 }
 0x1e1   :  { %v6361_v57 = vpop.permute.xlu0 %1662  ;;  %v6363_v60 = vpop.permute.xlu1 %1659  ;;  %v1803_v21 = vsel %vm1132_vm2, %v1802_v28, %v1798_v32  ;;  %v1822_v0 = vsel %vm1132_vm2, %v1821_v8, %v1817_v47  ;;  %v1841_v2 = vsel %vm1132_vm2, %v1840_v15, %v1836_v1  ;;  %v1864_v28 = vrot.slane %v6339_v11, %v8318_v41 }
 0x1e2   :  { %2315 = vperm.xlu0 %4786, %v2148_v50   ;;  %2312 = vperm.xlu1 %4787, %v2147_v34   ;;  %v1878_v47 = vrot.slane %v6355_v29, %v8314_v55  ;;  %v1888_v1 = vrot.slane %v6363_v60, %v8313_v27  ;;  %v2155_v60 = vsub.f32 %v8321_v25, %v6269_v61 }
 0x1e3   :  { %v1827_v8 = vsel %vm1139_vm3, %v1826_v58, %v1822_v0 }
 0x1e5   :  { %v6377_v50 = vpop.permute.xlu0 %1668  ;;  %v1666_v34 = vpop.permute.xlu1 %1665 }
 0x1e6   :  { %2321 = vperm.xlu0 %4786, %v2150_v13   ;;  %2318 = vperm.xlu1 %4787, %v2149_v63   ;;  %v2154_v63 = vsub.f32 %v8317_v46, %v6269_v61  ;;  %v1859_v13 = vrot.slane %v1642_v54, %v8314_v55  ;;  %v1845_v54 = vrot.slane %v6323_v40, %v8318_v41 }
 0x1e7   :  { %v1892_v40 = vrot.slane %v6361_v57, %v8312_v33  ;;  %v1897_v11 = vrot.slane %v1666_v34, %v8314_v55  ;;  %v2156_v57 = vsub.f32 %v8320_v17, %v6269_v61  ;;  %v1902_v5 = vrot.slane %v6377_v50, %v8318_v41 }
 0x1e8   :  { %v1860_v7 = vsel %vm1132_vm2, %v1859_v13, %v1855_v35  ;;  %v1846_v34 = vsel %vm1139_vm3, %v1845_v54, %v1841_v2  ;;  %v2158_v54 = vsub.f32 %v8322_v12, %v6269_v61  ;;  %v2157_v2 = vsub.f32 %v8323_v52, %v6269_v61 }
 0x1e9   :  { %v1675_v9 = vpop.permute.xlu0 %1674  ;;  %v1672_v56 = vpop.permute.xlu1 %1671  ;;  %v1893_v39 = vsel %vm1125_vm1, %v1892_v40, %v1888_v1 }
 0x1ea   :  { %2327 = vperm.xlu0 %4786, %v2152_v43   ;;  %2324 = vperm.xlu1 %4787, %v2151_v4   ;;  %v1869_v43 = vrot.slane %v6347_v48, %v8313_v27  ;;  %v1911_v24 = vrot.slane %v1675_v9, %v8312_v33  ;;  %v1907_v38 = vrot.slane %v1672_v56, %v8313_v27 }
 0x1eb   :  { %v1808_v48 = vsel %vm1139_vm3, %v1807_v37, %v1803_v21  ;;  %v1883_v56 = vrot.slane %v6353_v45, %v8318_v41  ;;  %v1898_v32 = vsel %vm1132_vm2, %v1897_v11, %v1893_v39 }
 0x1ec   :  { %v1874_v15 = vsel %vm1125_vm1, %v1873_v51, %v1869_v43  ;;  %v1912_v37 = vsel %vm1125_vm1, %v1911_v24, %v1907_v38  ;;  %v2094_v45 = vsel %vm1426_vm4, %v1827_v8, %v1808_v48  ;;  %v1903_v51 = vsel %vm1139_vm3, %v1902_v5, %v1898_v32  ;;  %v8367_v5 = vld [vmem:[#allocation24_spill] sm:$0xff] }
 0x1ed   :  { %v1681_v19 = vpop.permute.xlu0 %1680  ;;  %v1678_v42 = vpop.permute.xlu1 %1677  ;;  %v1879_v9 = vsel %vm1132_vm2, %v1878_v47, %v1874_v15  ;;  %v2095_v50 = vsel %vm1428_vm5, %v1846_v34, %v2094_v45  ;;  %v2160_v24 = vsub.f32 %v8324_v16, %v6269_v61  ;;  %v2159_v38 = vsub.f32 %v8325_v59, %v6269_v61  ;;  %v8369_v45 = vld [vmem:[#allocation50_spill] sm:$0xff] }
 0x1ee   :  { %2333 = vperm.xlu0 %4786, %v2154_v63   ;;  %2330 = vperm.xlu1 %4787, %v2153_v53   ;;  %v1916_v29 = vrot.slane %v1678_v42, %v8314_v55  ;;  %v1865_v53 = vsel %vm1139_vm3, %v1864_v28, %v1860_v7  ;;  %v1921_v13 = vrot.slane %v1681_v19, %v8318_v41 }
 0x1ef   :  { %v1884_v0 = vsel %vm1139_vm3, %v1883_v56, %v1879_v9  ;;  %v2096_v28 = vsel %vm1430_vm6, %v1865_v53, %v2095_v50  ;;  %v2162_v15 = vsub.f32 %v8326_v49, %v6269_v61  ;;  %v8366_v56 = vld [vmem:[#allocation21_spill] sm:$0xff] }
 0x1f0   :  { %v1917_v35 = vsel %vm1132_vm2, %v1916_v29, %v1912_v37  ;;  %v2097_v19 = vsel %vm1432_vm7, %v1884_v0, %v2096_v28  ;;  %v2161_v53 = vsub.f32 %v8366_v56, %v6269_v61  ;;  %v8372_v28 = vld [vmem:[#allocation51_spill] sm:$0xff] }
 0x1f1   :  { %v1687_v4 = vpop.permute.xlu0 %1686  ;;  %v1684_v63 = vpop.permute.xlu1 %1683  ;;  %v1922_v47 = vsel %vm1139_vm3, %v1921_v13, %v1917_v35  ;;  %v2098_v48 = vsel %vm1434_vm8, %v1903_v51, %v2097_v19  ;;  %v2166_v35 = vsub.f32 %v8369_v45, %v6269_v61  ;;  %v2167_v51 = vsub.f32 %v8372_v28, %v6269_v61  ;;  %v8386_v28 = vld [vmem:[#allocation62_spill] sm:$0xff]  ;;  %v8388_v45 = vld [vmem:[#allocation64_spill] sm:$0xff] }
 0x1f2   :  { %2339 = vperm.xlu0 %4786, %v2156_v57   ;;  %2336 = vperm.xlu1 %4787, %v2155_v60   ;;  %v1930_v21 = vrot.slane %v1687_v4, %v8312_v33  ;;  %v1926_v58 = vrot.slane %v1684_v63, %v8313_v27  ;;  %v2099_v8 = vsel %vm1436_vm9, %v1922_v47, %v2098_v48  ;;  %v8368_v63 = vld [vmem:[#allocation26_spill] sm:$0xff]  ;;  %v8373_v47 = vld [vmem:[#allocation52_spill] sm:$0xff] }
 0x1f3   :  { %v2164_v4 = vsub.f32 %v8367_v5, %v6269_v61  ;;  %v2163_v32 = vsub.f32 %v8368_v63, %v6269_v61  ;;  %v8376_v48 = vld [vmem:[#allocation14_spill] sm:$0xff] }
 0x1f4   :  { %v1931_v42 = vsel %vm1125_vm1, %v1930_v21, %v1926_v58  ;;  %v8370_v21 = vld [vmem:[#allocation27_spill] sm:$0xff] }
 0x1f5   :  { %v1693_v43 = vpop.permute.xlu0 %1692  ;;  %v1690_v7 = vpop.permute.xlu1 %1689  ;;  %v2165_v58 = vsub.f32 %v8370_v21, %v6269_v61 }
 0x1f6   :  { %v1940_v40 = vrot.slane %v1693_v43, %v8318_v41  ;;  %v1935_v1 = vrot.slane %v1690_v7, %v8314_v55  ;;  %2345 = vperm.xlu0 %4786, %v2158_v54   ;;  %2342 = vperm.xlu1 %4787, %v2157_v2   ;;  %v8371_v54 = vld [vmem:[#allocation22_spill] sm:$0xff] }
 0x1f7   :  { %v2168_v2 = vsub.f32 %v8371_v54, %v6269_v61  ;;  %v2181_v54 = vsub.f32 %v8386_v28, %v6269_v61 }
 0x1f8   :  { %v1936_v11 = vsel %vm1132_vm2, %v1935_v1, %v1931_v42  ;;  %v8374_v1 = vld [vmem:[#allocation25_spill] sm:$0xff] }
 0x1f9   :  { %v6473_v29 = vpop.permute.xlu0 %1698  ;;  %v6475_v57 = vpop.permute.xlu1 %1695  ;;  %v1941_v60 = vsel %vm1139_vm3, %v1940_v40, %v1936_v11  ;;  %v2170_v40 = vsub.f32 %v8373_v47, %v6269_v61  ;;  %v2169_v19 = vsub.f32 %v8374_v1, %v6269_v61  ;;  %v8384_v1 = vld [vmem:[#allocation60_spill] sm:$0xff] }
 0x1fa   :  { %2351 = vperm.xlu0 %4786, %v2160_v24   ;;  %2348 = vperm.xlu1 %4787, %v2159_v38   ;;  %v2100_v34 = vsel %vm1438_vm10, %v1941_v60, %v2099_v8  ;;  %v8375_v24 = vld [vmem:[#allocation13_spill] sm:$0xff]  ;;  %v2171_v60 = vsub.f32 %v8376_v48, %v6269_v61  ;;  %v2179_v47 = vsub.f32 %v8384_v1, %v6269_v61 }
 0x1fb   :  { %2110 = vst.msk [vmem:[#allocation5 + $0x10] sm:$0xff] %vm1449_vm11, %v2100_v34  ;;  %v2172_v38 = vsub.f32 %v8375_v24, %v6269_v61 }
 0x1fd   :  { %v6485_v9 = vpop.permute.xlu0 %1704  ;;  %v6487_v39 = vpop.permute.xlu1 %1701 }
 0x1fe   :  { %2357 = vperm.xlu0 %4786, %v2162_v15   ;;  %2354 = vperm.xlu1 %4787, %v2161_v53   ;;  %v8377_v15 = vld [vmem:[#allocation53_spill] sm:$0xff]  ;;  %v1954_v1 = vrot.slane %v6487_v39, %v8314_v55 }
 0x1ff   :  { %v2174_v53 = vsub.f32 %v8377_v15, %v6269_v61  ;;  %v8382_v15 = vld [vmem:[#allocation58_spill] sm:$0xff] }
 0x200   :  { %v2177_v24 = vsub.f32 %v8382_v15, %v6269_v61  ;;  %v8385_v15 = vld [vmem:[#allocation61_spill] sm:$0xff] }
 0x201   :  { %v6493_v37 = vpop.permute.xlu0 %1710  ;;  %v6495_v13 = vpop.permute.xlu1 %1707 }
 0x202   :  { %2363 = vperm.xlu0 %4786, %v2164_v4   ;;  %2360 = vperm.xlu1 %4787, %v2163_v32   ;;  %v8378_v4 = vld [vmem:[#allocation54_spill] sm:$0xff] }
 0x203   :  { %v2173_v32 = vsub.f32 %v8378_v4, %v6269_v61 }
 0x205   :  { %v6501_v50 = vpop.permute.xlu0 %1716  ;;  %v6503_v0 = vpop.permute.xlu1 %1713 }
 0x206   :  { %2369 = vperm.xlu0 %4786, %v2166_v35   ;;  %2366 = vperm.xlu1 %4787, %v2165_v58  }
 0x209   :  { %v6509_v43 = vpop.permute.xlu0 %1722  ;;  %v6511_v7 = vpop.permute.xlu1 %1719 }
 0x20a   :  { %2375 = vperm.xlu0 %4786, %v2168_v2   ;;  %2372 = vperm.xlu1 %4787, %v2167_v51   ;;  %v8379_v2 = vld [vmem:[#allocation55_spill] sm:$0xff]  ;;  %v1987_v28 = vrot.slane %v6509_v43, %v8312_v33 }
 0x20b   :  { %v2176_v51 = vsub.f32 %v8379_v2, %v6269_v61 }
 0x20d   :  { %v6517_v42 = vpop.permute.xlu0 %1728  ;;  %v6519_v11 = vpop.permute.xlu1 %1725 }
 0x20e   :  { %2381 = vperm.xlu0 %4786, %v2170_v40   ;;  %2378 = vperm.xlu1 %4787, %v2169_v19   ;;  %v8380_v40 = vld [vmem:[#allocation56_spill] sm:$0xff]  ;;  %v1992_v39 = vrot.slane %v6519_v11, %v8314_v55  ;;  %v1959_v11 = vrot.slane %v6485_v9, %v8318_v41 }
 0x20f   :  { %v2175_v19 = vsub.f32 %v8380_v40, %v6269_v61  ;;  %v8383_v40 = vld [vmem:[#allocation59_spill] sm:$0xff] }
 0x210   :  { %v2180_v2 = vsub.f32 %v8383_v40, %v6269_v61  ;;  %v1968_v40 = vrot.slane %v6493_v37, %v8312_v33  ;;  %v8387_v37 = vld [vmem:[#allocation63_spill] sm:$0xff] }
 0x211   :  { %v6525_v8 = vpop.permute.xlu0 %1734  ;;  %v6527_v34 = vpop.permute.xlu1 %1731  ;;  %v2184_v21 = vsub.f32 %v8387_v37, %v6269_v61 }
 0x212   :  { %2387 = vperm.xlu0 %4786, %v2172_v38   ;;  %2384 = vperm.xlu1 %4787, %v2171_v60   ;;  %v8381_v60 = vld [vmem:[#allocation57_spill] sm:$0xff]  ;;  %v2002_v43 = vrot.slane %v6527_v34, %v8313_v27 }
 0x213   :  { %v2178_v4 = vsub.f32 %v8381_v60, %v6269_v61  ;;  %v2182_v60 = vsub.f32 %v8385_v15, %v6269_v61  ;;  %v1964_v15 = vrot.slane %v6495_v13, %v8313_v27  ;;  %v2006_v13 = vrot.slane %v6525_v8, %v8312_v33  ;;  %v8389_v8 = vld [vmem:[#allocation66_spill] sm:$0xff] }
 0x214   :  { %v2185_v5 = vsub.f32 %v8389_v8, %v6269_v61 }
 0x215   :  { %v6533_v35 = vpop.permute.xlu0 %1740  ;;  %v1738_v58 = vpop.permute.xlu1 %1737  ;;  %v1969_v56 = vsel %vm1125_vm1, %v1968_v40, %v1964_v15  ;;  %v2007_v8 = vsel %vm1125_vm1, %v2006_v13, %v2002_v43 }
 0x216   :  { %2393 = vperm.xlu0 %4786, %v2174_v53   ;;  %2390 = vperm.xlu1 %4787, %v2173_v32  }
 0x219   :  { %v6539_v48 = vpop.permute.xlu0 %1746  ;;  %v6541_v38 = vpop.permute.xlu1 %1743 }
 0x21a   :  { %2399 = vperm.xlu0 %4786, %v2176_v51   ;;  %2396 = vperm.xlu1 %4787, %v2175_v19  }
 0x21d   :  { %v6547_v53 = vpop.permute.xlu0 %1752  ;;  %v6549_v32 = vpop.permute.xlu1 %1749 }
 0x21e   :  { %2405 = vperm.xlu0 %4786, %v2178_v4   ;;  %2402 = vperm.xlu1 %4787, %v2177_v24   ;;  %v1949_v24 = vrot.slane %v6473_v29, %v8312_v33  ;;  %v1945_v4 = vrot.slane %v6475_v57, %v8313_v27  ;;  %v1983_v29 = vrot.slane %v6511_v7, %v8313_v27 }
 0x21f   :  { %v1973_v57 = vrot.slane %v6503_v0, %v8314_v55  ;;  %v2183_v7 = vsub.f32 %v8388_v45, %v6269_v61 }
 0x220   :  { %v1950_v0 = vsel %vm1125_vm1, %v1949_v24, %v1945_v4  ;;  %v1988_v45 = vsel %vm1125_vm1, %v1987_v28, %v1983_v29  ;;  %v1978_v24 = vrot.slane %v6501_v50, %v8318_v41  ;;  %v2025_v28 = vrot.slane %v6539_v48, %v8312_v33 }
 0x221   :  { %v6555_v51 = vpop.permute.xlu0 %1758  ;;  %v6557_v19 = vpop.permute.xlu1 %1755  ;;  %v1955_v34 = vsel %vm1132_vm2, %v1954_v1, %v1950_v0  ;;  %v1974_v9 = vsel %vm1132_vm2, %v1973_v57, %v1969_v56  ;;  %v1993_v4 = vsel %vm1132_vm2, %v1992_v39, %v1988_v45  ;;  %v2016_v1 = vrot.slane %v6533_v35, %v8318_v41 }
 0x222   :  { %2411 = vperm.xlu0 %4786, %v2180_v2   ;;  %2408 = vperm.xlu1 %4787, %v2179_v47   ;;  %v2030_v56 = vrot.slane %v6549_v32, %v8314_v55  ;;  %v2040_v45 = vrot.slane %v6557_v19, %v8313_v27  ;;  %v2187_v19 = vsub.f32 %v5814_v44, %v6269_v61 }
 0x223   :  { %v1979_v57 = vsel %vm1139_vm3, %v1978_v24, %v1974_v9 }
 0x225   :  { %v6571_v2 = vpop.permute.xlu0 %1764  ;;  %v1762_v47 = vpop.permute.xlu1 %1761 }
 0x226   :  { %2417 = vperm.xlu0 %4786, %v2182_v60   ;;  %2414 = vperm.xlu1 %4787, %v2181_v54   ;;  %v2186_v54 = vsub.f32 %v5791_v36, %v6269_v61  ;;  %v2011_v60 = vrot.slane %v1738_v58, %v8314_v55  ;;  %v1997_v58 = vrot.slane %v6517_v42, %v8318_v41 }
 0x227   :  { %v2044_v42 = vrot.slane %v6555_v51, %v8312_v33  ;;  %v2049_v35 = vrot.slane %v1762_v47, %v8314_v55  ;;  %v2188_v51 = vsub.f32 %v5810_v23, %v6269_v61  ;;  %v2054_v43 = vrot.slane %v6571_v2, %v8318_v41 }
 0x228   :  { %v2012_v50 = vsel %vm1132_vm2, %v2011_v60, %v2007_v8  ;;  %v1998_v47 = vsel %vm1139_vm3, %v1997_v58, %v1993_v4  ;;  %v2190_v58 = vsub.f32 %v5825_v14, %v6269_v61  ;;  %v2189_v4 = vsub.f32 %v5827_v22, %v6269_v61 }
 0x229   :  { %v1771_v37 = vpop.permute.xlu0 %1770  ;;  %v1768_v63 = vpop.permute.xlu1 %1767  ;;  %v2045_v13 = vsel %vm1125_vm1, %v2044_v42, %v2040_v45 }
 0x22a   :  { %2423 = vperm.xlu0 %4786, %v2184_v21   ;;  %2420 = vperm.xlu1 %4787, %v2183_v7   ;;  %v2021_v21 = vrot.slane %v6541_v38, %v8313_v27  ;;  %v2063_v48 = vrot.slane %v1771_v37, %v8312_v33  ;;  %v2059_v29 = vrot.slane %v1768_v63, %v8313_v27 }
 0x22b   :  { %v1960_v38 = vsel %vm1139_vm3, %v1959_v11, %v1955_v34  ;;  %v2035_v63 = vrot.slane %v6547_v53, %v8318_v41  ;;  %v2050_v0 = vsel %vm1132_vm2, %v2049_v35, %v2045_v13 }
 0x22c   :  { %v2026_v39 = vsel %vm1125_vm1, %v2025_v28, %v2021_v21  ;;  %v2064_v11 = vsel %vm1125_vm1, %v2063_v48, %v2059_v29  ;;  %v2101_v53 = vsel %vm1426_vm4, %v1979_v57, %v1960_v38  ;;  %v2055_v28 = vsel %vm1139_vm3, %v2054_v43, %v2050_v0  ;;  %v6707_v0 = vld [vmem:[%s8062_s2] sm:$0xff] }
 0x22d   :  { %v1777_v15 = vpop.permute.xlu0 %1776  ;;  %v1774_v40 = vpop.permute.xlu1 %1773  ;;  %v2031_v37 = vsel %vm1132_vm2, %v2030_v56, %v2026_v39  ;;  %v2102_v2 = vsel %vm1428_vm5, %v1998_v47, %v2101_v53  ;;  %v2192_v29 = vsub.f32 %v5833_v18, %v6269_v61  ;;  %v2191_v38 = vsub.f32 %v5835_v62, %v6269_v61  ;;  %8390 = vst [vmem:[#allocation10_spill] sm:$0xff] %v6707_v0 }
 0x22e   :  { %2429 = vperm.xlu0 %4786, %v2186_v54   ;;  %2426 = vperm.xlu1 %4787, %v2185_v5   ;;  %v2068_v32 = vrot.slane %v1774_v40, %v8314_v55  ;;  %v2017_v5 = vsel %vm1139_vm3, %v2016_v1, %v2012_v50  ;;  %v2073_v60 = vrot.slane %v1777_v15, %v8318_v41  ;;  %v6677_v61 = vstv %s4777_s9 }
 0x22f   :  { %v2036_v9 = vsel %vm1139_vm3, %v2035_v63, %v2031_v37  ;;  %v2103_v1 = vsel %vm1430_vm6, %v2017_v5, %v2102_v2  ;;  %v2789_v5 = vsub.f32 %v5116_v6, %v6677_v61  ;;  %v2788_v37 = vsub.f32 %v5118_v3, %v6677_v61 }
 0x230   :  { %v2069_v8 = vsel %vm1132_vm2, %v2068_v32, %v2064_v11  ;;  %v2104_v15 = vsel %vm1432_vm7, %v2036_v9, %v2103_v1  ;;  %v6711_v11 = vsub.f32 %v6707_v0, %v6677_v61  ;;  %v8393_v1 = vld [vmem:[#allocation32_spill] sm:$0xff] }
 0x231   :  { %v1783_v7 = vpop.permute.xlu0 %1782  ;;  %v1780_v54 = vpop.permute.xlu1 %1779  ;;  %v2074_v56 = vsel %vm1139_vm3, %v2073_v60, %v2069_v8  ;;  %v2105_v48 = vsel %vm1434_vm8, %v2055_v28, %v2104_v15  ;;  %v2793_v8 = vsub.f32 %v8345_v26, %v6677_v61  ;;  %v2794_v28 = vsub.f32 %v8393_v1, %v6677_v61 }
 0x232   :  { %2435 = vperm.xlu0 %4786, %v2188_v51   ;;  %2432 = vperm.xlu1 %4787, %v2187_v19   ;;  %v2082_v34 = vrot.slane %v1783_v7, %v8312_v33  ;;  %v2078_v24 = vrot.slane %v1780_v54, %v8313_v27  ;;  %v2106_v19 = vsel %vm1436_vm9, %v2074_v56, %v2105_v48  ;;  %v8394_v56 = vld [vmem:[#allocation33_spill] sm:$0xff]  ;;  %v8396_v48 = vld [vmem:[#allocation35_spill] sm:$0xff] }
 0x233   :  { %v2791_v7 = vsub.f32 %v5128_v31, %v6677_v61  ;;  %2786 = vst.msk [vmem:[#allocation5 + $0x30] sm:$0xff] %vm790_vm0, %v6711_v11 }
 0x234   :  { %v2083_v40 = vsel %vm1125_vm1, %v2082_v34, %v2078_v24  ;;  %v8391_v34 = vld [vmem:[#allocation30_spill] sm:$0xff] }
 0x235   :  { %v1789_v21 = vpop.permute.xlu0 %1788  ;;  %v1786_v50 = vpop.permute.xlu1 %1785  ;;  %v2792_v24 = vsub.f32 %v8391_v34, %v6677_v61 }
 0x236   :  { %v2092_v42 = vrot.slane %v1789_v21, %v8318_v41  ;;  %v2087_v45 = vrot.slane %v1786_v50, %v8314_v55  ;;  %2441 = vperm.xlu0 %4786, %v2190_v58   ;;  %2438 = vperm.xlu1 %4787, %v2189_v4   ;;  %v8392_v58 = vld [vmem:[#allocation31_spill] sm:$0xff] }
 0x237   :  { %v2795_v4 = vsub.f32 %v8392_v58, %v6677_v61  ;;  %v8409_v58 = vld [vmem:[#allocation47_spill] sm:$0xff] }
 0x238   :  { %v2088_v35 = vsel %vm1132_vm2, %v2087_v45, %v2083_v40  ;;  %v8395_v45 = vld [vmem:[#allocation34_spill] sm:$0xff] }
 0x239   :  { %v2117_v32 = vpop.permute.xlu0 %2116  ;;  %v2093_v51 = vsel %vm1139_vm3, %v2092_v42, %v2088_v35  ;;  %v2115_v57 = vpop.permute.xlu1 %2114  ;;  %v2797_v42 = vsub.f32 %v8394_v56, %v6677_v61  ;;  %v2796_v15 = vsub.f32 %v8395_v45, %v6677_v61  ;;  %v8407_v45 = vld [vmem:[#allocation46_spill] sm:$0xff] }
 0x23a   :  { %v2107_v47 = vsel %vm1438_vm10, %v2093_v51, %v2106_v19  ;;  %2120 = vst.msk [vmem:[#allocation5 + $0x10] sm:$0xff] %vm1460_vm12, %v2115_v57  ;;  %2447 = vperm.xlu0 %4786, %v2192_v29   ;;  %2444 = vperm.xlu1 %4787, %v2191_v38   ;;  %v2799_v29 = vsub.f32 %v8396_v48, %v6677_v61  ;;  %v8397_v38 = vld [vmem:[#allocation36_spill] sm:$0xff]  ;;  %v8398_v57 = vld [vmem:[#allocation37_spill] sm:$0xff] }
 0x23b   :  { %2111 = vst.msk [vmem:[#allocation5 + $0x18] sm:$0xff] %vm1449_vm11, %v2107_v47  ;;  %v2801_v47 = vsub.f32 %v8398_v57, %v6677_v61  ;;  %v2808_v56 = vsub.f32 %v8407_v45, %v6677_v61 }
 0x23c   :  { %2121 = vst.msk [vmem:[#allocation5 + $0x18] sm:$0xff] %vm1460_vm12, %v2117_v32  ;;  %v2798_v32 = vsub.f32 %v8397_v38, %v6677_v61  ;;  %v8405_v38 = vld [vmem:[#allocation44_spill] sm:$0xff] }
 0x23d   :  { %v6673_v39 = vpop.permute.xlu0 %2261  ;;  %v6675_v63 = vpop.permute.xlu1 %2258  ;;  %v2806_v48 = vsub.f32 %v8405_v38, %v6677_v61 }
 0x23e   :  { %2775 = vrot.lane.b32.xlu0 %v6289_v20, %s4834_s29  ;;  %2773 = vrot.lane.b32.xlu1 %v6293_v10, %s4834_s29  ;;  %v2790_v20 = vsub.f32 %v8300_v30, %v6677_v61  ;;  %v6698_v10 = vld [vmem:[%s8062_s2 + $0x8] sm:$0xff] }
 0x23f   :  { %v6702_v54 = vsub.f32 %v6698_v10, %v6677_v61 }
 0x241   :  { %v6687_v13 = vpop.permute.xlu0 %2267  ;;  %v6689_v43 = vpop.permute.xlu1 %2264  ;;  %2787 = vst.msk [vmem:[#allocation5 + $0x38] sm:$0xff] %vm790_vm0, %v6702_v54 }
 0x242   :  { %2920 = vperm.xlu0 %4786, %v2789_v5   ;;  %2917 = vperm.xlu1 %4787, %v2788_v37   ;;  %v8399_v5 = vld [vmem:[#allocation38_spill] sm:$0xff]  ;;  %v2461_v38 = vrot.slane %v6689_v43, %v8314_v55 }
 0x243   :  { %v2800_v37 = vsub.f32 %v8399_v5, %v6677_v61  ;;  %v8403_v5 = vld [vmem:[#allocation42_spill] sm:$0xff] }
 0x244   :  { %v2804_v57 = vsub.f32 %v8403_v5, %v6677_v61  ;;  %v8406_v5 = vld [vmem:[#allocation45_spill] sm:$0xff] }
 0x245   :  { %v6713_v60 = vpop.permute.xlu0 %2273  ;;  %v6715_v53 = vpop.permute.xlu1 %2270 }
 0x246   :  { %2926 = vperm.xlu0 %4786, %v2791_v7   ;;  %2923 = vperm.xlu1 %4787, %v2790_v20  }
 0x249   :  { %v6725_v2 = vpop.permute.xlu0 %2279  ;;  %v6727_v9 = vpop.permute.xlu1 %2276 }
 0x24a   :  { %2932 = vperm.xlu0 %4786, %v2793_v8   ;;  %2929 = vperm.xlu1 %4787, %v2792_v24   ;;  %v8400_v8 = vld [vmem:[#allocation39_spill] sm:$0xff] }
 0x24b   :  { %v2803_v24 = vsub.f32 %v8400_v8, %v6677_v61 }
 0x24d   :  { %v6733_v21 = vpop.permute.xlu0 %2285  ;;  %v6735_v50 = vpop.permute.xlu1 %2282 }
 0x24e   :  { %2938 = vperm.xlu0 %4786, %v2795_v4   ;;  %2935 = vperm.xlu1 %4787, %v2794_v28   ;;  %v8401_v4 = vld [vmem:[#allocation40_spill] sm:$0xff]  ;;  %v2494_v45 = vrot.slane %v6733_v21, %v8312_v33 }
 0x24f   :  { %v2802_v28 = vsub.f32 %v8401_v4, %v6677_v61  ;;  %v8404_v4 = vld [vmem:[#allocation43_spill] sm:$0xff] }
 0x250   :  { %v2807_v8 = vsub.f32 %v8404_v4, %v6677_v61  ;;  %v2475_v4 = vrot.slane %v6713_v60, %v8312_v33  ;;  %v8408_v60 = vld [vmem:[#allocation17_spill] sm:$0xff] }
 0x251   :  { %v6741_v40 = vpop.permute.xlu0 %2291  ;;  %v6743_v35 = vpop.permute.xlu1 %2288  ;;  %v2811_v1 = vsub.f32 %v8408_v60, %v6677_v61 }
 0x252   :  { %2944 = vperm.xlu0 %4786, %v2797_v42   ;;  %2941 = vperm.xlu1 %4787, %v2796_v15   ;;  %v2499_v43 = vrot.slane %v6743_v35, %v8314_v55  ;;  %v2466_v35 = vrot.slane %v6687_v13, %v8318_v41 }
 0x255   :  { %v6749_v51 = vpop.permute.xlu0 %2297  ;;  %v6751_v19 = vpop.permute.xlu1 %2294 }
 0x256   :  { %2950 = vperm.xlu0 %4786, %v2799_v29   ;;  %2947 = vperm.xlu1 %4787, %v2798_v32   ;;  %v8402_v29 = vld [vmem:[#allocation41_spill] sm:$0xff]  ;;  %v2509_v21 = vrot.slane %v6751_v19, %v8313_v27 }
 0x257   :  { %v2805_v32 = vsub.f32 %v8402_v29, %v6677_v61  ;;  %v2809_v29 = vsub.f32 %v8406_v5, %v6677_v61  ;;  %v2471_v5 = vrot.slane %v6715_v53, %v8313_v27  ;;  %v2513_v53 = vrot.slane %v6749_v51, %v8312_v33  ;;  %v8410_v51 = vld [vmem:[#allocation48_spill] sm:$0xff] }
 0x258   :  { %v2812_v26 = vsub.f32 %v8410_v51, %v6677_v61 }
 0x259   :  { %v6757_v7 = vpop.permute.xlu0 %2303  ;;  %v2301_v20 = vpop.permute.xlu1 %2300  ;;  %v2476_v0 = vsel %vm1125_vm1, %v2475_v4, %v2471_v5  ;;  %v2514_v51 = vsel %vm1125_vm1, %v2513_v53, %v2509_v21 }
 0x25a   :  { %2956 = vperm.xlu0 %4786, %v2801_v47   ;;  %2953 = vperm.xlu1 %4787, %v2800_v37  }
 0x25d   :  { %v6763_v42 = vpop.permute.xlu0 %2309  ;;  %v6765_v15 = vpop.permute.xlu1 %2306 }
 0x25e   :  { %2962 = vperm.xlu0 %4786, %v2803_v24   ;;  %2959 = vperm.xlu1 %4787, %v2802_v28  }
 0x261   :  { %v6771_v47 = vpop.permute.xlu0 %2315  ;;  %v6773_v37 = vpop.permute.xlu1 %2312 }
 0x262   :  { %2968 = vperm.xlu0 %4786, %v2805_v32   ;;  %2965 = vperm.xlu1 %4787, %v2804_v57   ;;  %v2456_v57 = vrot.slane %v6673_v39, %v8312_v33  ;;  %v2452_v32 = vrot.slane %v6675_v63, %v8313_v27  ;;  %v2490_v39 = vrot.slane %v6735_v50, %v8313_v27 }
 0x263   :  { %v2480_v63 = vrot.slane %v6727_v9, %v8314_v55  ;;  %v2810_v50 = vsub.f32 %v8409_v58, %v6677_v61 }
 0x264   :  { %v2457_v9 = vsel %vm1125_vm1, %v2456_v57, %v2452_v32  ;;  %v2495_v58 = vsel %vm1125_vm1, %v2494_v45, %v2490_v39  ;;  %v2485_v57 = vrot.slane %v6725_v2, %v8318_v41  ;;  %v2532_v45 = vrot.slane %v6763_v42, %v8312_v33 }
 0x265   :  { %v6779_v24 = vpop.permute.xlu0 %2321  ;;  %v6781_v28 = vpop.permute.xlu1 %2318  ;;  %v2462_v19 = vsel %vm1132_vm2, %v2461_v38, %v2457_v9  ;;  %v2481_v13 = vsel %vm1132_vm2, %v2480_v63, %v2476_v0  ;;  %v2500_v32 = vsel %vm1132_vm2, %v2499_v43, %v2495_v58  ;;  %v2523_v38 = vrot.slane %v6757_v7, %v8318_v41 }
 0x266   :  { %2974 = vperm.xlu0 %4786, %v2807_v8   ;;  %2971 = vperm.xlu1 %4787, %v2806_v48   ;;  %v2537_v0 = vrot.slane %v6773_v37, %v8314_v55  ;;  %v2547_v58 = vrot.slane %v6781_v28, %v8313_v27  ;;  %v2814_v28 = vsub.f32 %v8321_v25, %v6677_v61 }
 0x267   :  { %v2486_v63 = vsel %vm1139_vm3, %v2485_v57, %v2481_v13 }
 0x269   :  { %v6795_v8 = vpop.permute.xlu0 %2327  ;;  %v2325_v48 = vpop.permute.xlu1 %2324 }
 0x26a   :  { %2980 = vperm.xlu0 %4786, %v2809_v29   ;;  %2977 = vperm.xlu1 %4787, %v2808_v56   ;;  %v2813_v56 = vsub.f32 %v8317_v46, %v6677_v61  ;;  %v2518_v29 = vrot.slane %v2301_v20, %v8314_v55  ;;  %v2504_v20 = vrot.slane %v6741_v40, %v8318_v41 }
 0x26b   :  { %v2551_v40 = vrot.slane %v6779_v24, %v8312_v33  ;;  %v2556_v7 = vrot.slane %v2325_v48, %v8314_v55  ;;  %v2815_v24 = vsub.f32 %v8320_v17, %v6677_v61  ;;  %v2561_v21 = vrot.slane %v6795_v8, %v8318_v41 }
 0x26c   :  { %v2519_v2 = vsel %vm1132_vm2, %v2518_v29, %v2514_v51  ;;  %v2505_v48 = vsel %vm1139_vm3, %v2504_v20, %v2500_v32  ;;  %v2817_v20 = vsub.f32 %v8322_v12, %v6677_v61  ;;  %v2816_v32 = vsub.f32 %v8323_v52, %v6677_v61 }
 0x26d   :  { %v2334_v60 = vpop.permute.xlu0 %2333  ;;  %v2331_v34 = vpop.permute.xlu1 %2330  ;;  %v2552_v53 = vsel %vm1125_vm1, %v2551_v40, %v2547_v58 }
 0x26e   :  { %2986 = vperm.xlu0 %4786, %v2811_v1   ;;  %2983 = vperm.xlu1 %4787, %v2810_v50   ;;  %v2528_v1 = vrot.slane %v6765_v15, %v8313_v27  ;;  %v2570_v42 = vrot.slane %v2334_v60, %v8312_v33  ;;  %v2566_v39 = vrot.slane %v2331_v34, %v8313_v27 }
 0x26f   :  { %v2467_v15 = vsel %vm1139_vm3, %v2466_v35, %v2462_v19  ;;  %v2542_v34 = vrot.slane %v6771_v47, %v8318_v41  ;;  %v2557_v9 = vsel %vm1132_vm2, %v2556_v7, %v2552_v53 }
 0x270   :  { %v2533_v43 = vsel %vm1125_vm1, %v2532_v45, %v2528_v1  ;;  %v2571_v35 = vsel %vm1125_vm1, %v2570_v42, %v2566_v39  ;;  %v2753_v47 = vsel %vm1426_vm4, %v2486_v63, %v2467_v15  ;;  %v2562_v45 = vsel %vm1139_vm3, %v2561_v21, %v2557_v9  ;;  %v8412_v21 = vld [vmem:[#allocation24_spill] sm:$0xff] }
 0x271   :  { %v2340_v5 = vpop.permute.xlu0 %2339  ;;  %v2337_v4 = vpop.permute.xlu1 %2336  ;;  %v2538_v60 = vsel %vm1132_vm2, %v2537_v0, %v2533_v43  ;;  %v2754_v8 = vsel %vm1428_vm5, %v2505_v48, %v2753_v47  ;;  %v2819_v42 = vsub.f32 %v8324_v16, %v6677_v61  ;;  %v2818_v39 = vsub.f32 %v8325_v59, %v6677_v61  ;;  %v8414_v47 = vld [vmem:[#allocation50_spill] sm:$0xff] }
 0x272   :  { %2992 = vperm.xlu0 %4786, %v2813_v56   ;;  %2989 = vperm.xlu1 %4787, %v2812_v26   ;;  %v2575_v37 = vrot.slane %v2337_v4, %v8314_v55  ;;  %v2524_v26 = vsel %vm1139_vm3, %v2523_v38, %v2519_v2  ;;  %v2580_v29 = vrot.slane %v2340_v5, %v8318_v41 }
 0x273   :  { %v2543_v13 = vsel %vm1139_vm3, %v2542_v34, %v2538_v60  ;;  %v2755_v38 = vsel %vm1430_vm6, %v2524_v26, %v2754_v8  ;;  %v2821_v43 = vsub.f32 %v8326_v49, %v6677_v61  ;;  %v8411_v34 = vld [vmem:[#allocation21_spill] sm:$0xff] }
 0x274   :  { %v2576_v51 = vsel %vm1132_vm2, %v2575_v37, %v2571_v35  ;;  %v2756_v5 = vsel %vm1432_vm7, %v2543_v13, %v2755_v38  ;;  %v2820_v26 = vsub.f32 %v8411_v34, %v6677_v61  ;;  %v8417_v38 = vld [vmem:[#allocation51_spill] sm:$0xff] }
 0x275   :  { %v2346_v50 = vpop.permute.xlu0 %2345  ;;  %v2343_v56 = vpop.permute.xlu1 %2342  ;;  %v2581_v0 = vsel %vm1139_vm3, %v2580_v29, %v2576_v51  ;;  %v2757_v15 = vsel %vm1434_vm8, %v2562_v45, %v2756_v5  ;;  %v2825_v51 = vsub.f32 %v8414_v47, %v6677_v61  ;;  %v2826_v45 = vsub.f32 %v8417_v38, %v6677_v61  ;;  %v8431_v38 = vld [vmem:[#allocation62_spill] sm:$0xff]  ;;  %v8433_v47 = vld [vmem:[#allocation64_spill] sm:$0xff] }
 0x276   :  { %2998 = vperm.xlu0 %4786, %v2815_v24   ;;  %2995 = vperm.xlu1 %4787, %v2814_v28   ;;  %v2589_v19 = vrot.slane %v2346_v50, %v8312_v33  ;;  %v2585_v57 = vrot.slane %v2343_v56, %v8313_v27  ;;  %v2758_v63 = vsel %vm1436_vm9, %v2581_v0, %v2757_v15  ;;  %v8413_v56 = vld [vmem:[#allocation26_spill] sm:$0xff]  ;;  %v8418_v0 = vld [vmem:[#allocation52_spill] sm:$0xff] }
 0x277   :  { %v2823_v50 = vsub.f32 %v8412_v21, %v6677_v61  ;;  %v2822_v9 = vsub.f32 %v8413_v56, %v6677_v61  ;;  %v8421_v15 = vld [vmem:[#allocation14_spill] sm:$0xff] }
 0x278   :  { %v2590_v4 = vsel %vm1125_vm1, %v2589_v19, %v2585_v57  ;;  %v8415_v19 = vld [vmem:[#allocation27_spill] sm:$0xff] }
 0x279   :  { %v2352_v1 = vpop.permute.xlu0 %2351  ;;  %v2349_v2 = vpop.permute.xlu1 %2348  ;;  %v2824_v57 = vsub.f32 %v8415_v19, %v6677_v61 }
 0x27a   :  { %v2599_v40 = vrot.slane %v2352_v1, %v8318_v41  ;;  %v2594_v58 = vrot.slane %v2349_v2, %v8314_v55  ;;  %3004 = vperm.xlu0 %4786, %v2817_v20   ;;  %3001 = vperm.xlu1 %4787, %v2816_v32   ;;  %v8416_v20 = vld [vmem:[#allocation22_spill] sm:$0xff] }
 0x27b   :  { %v2827_v32 = vsub.f32 %v8416_v20, %v6677_v61  ;;  %v2840_v20 = vsub.f32 %v8431_v38, %v6677_v61 }
 0x27c   :  { %v2595_v7 = vsel %vm1132_vm2, %v2594_v58, %v2590_v4  ;;  %v8419_v58 = vld [vmem:[#allocation25_spill] sm:$0xff] }
 0x27d   :  { %v6891_v37 = vpop.permute.xlu0 %2357  ;;  %v6893_v24 = vpop.permute.xlu1 %2354  ;;  %v2600_v28 = vsel %vm1139_vm3, %v2599_v40, %v2595_v7  ;;  %v2829_v40 = vsub.f32 %v8418_v0, %v6677_v61  ;;  %v2828_v5 = vsub.f32 %v8419_v58, %v6677_v61  ;;  %v8429_v58 = vld [vmem:[#allocation60_spill] sm:$0xff] }
 0x27e   :  { %3010 = vperm.xlu0 %4786, %v2819_v42   ;;  %3007 = vperm.xlu1 %4787, %v2818_v39   ;;  %v2759_v48 = vsel %vm1438_vm10, %v2600_v28, %v2758_v63  ;;  %v8420_v42 = vld [vmem:[#allocation13_spill] sm:$0xff]  ;;  %v2830_v28 = vsub.f32 %v8421_v15, %v6677_v61  ;;  %v2838_v0 = vsub.f32 %v8429_v58, %v6677_v61 }
 0x27f   :  { %2769 = vst.msk [vmem:[#allocation5 + $0x20] sm:$0xff] %vm1449_vm11, %v2759_v48  ;;  %v2831_v39 = vsub.f32 %v8420_v42, %v6677_v61 }
 0x281   :  { %v6903_v60 = vpop.permute.xlu0 %2363  ;;  %v6905_v53 = vpop.permute.xlu1 %2360 }
 0x282   :  { %3016 = vperm.xlu0 %4786, %v2821_v43   ;;  %3013 = vperm.xlu1 %4787, %v2820_v26   ;;  %v8422_v43 = vld [vmem:[#allocation53_spill] sm:$0xff]  ;;  %v2613_v58 = vrot.slane %v6905_v53, %v8314_v55 }
 0x283   :  { %v2833_v26 = vsub.f32 %v8422_v43, %v6677_v61  ;;  %v8427_v43 = vld [vmem:[#allocation58_spill] sm:$0xff] }
 0x284   :  { %v2836_v42 = vsub.f32 %v8427_v43, %v6677_v61  ;;  %v8430_v43 = vld [vmem:[#allocation61_spill] sm:$0xff] }
 0x285   :  { %v6911_v35 = vpop.permute.xlu0 %2369  ;;  %v6913_v29 = vpop.permute.xlu1 %2366 }
 0x286   :  { %3022 = vperm.xlu0 %4786, %v2823_v50   ;;  %3019 = vperm.xlu1 %4787, %v2822_v9   ;;  %v8423_v50 = vld [vmem:[#allocation54_spill] sm:$0xff] }
 0x287   :  { %v2832_v9 = vsub.f32 %v8423_v50, %v6677_v61 }
 0x289   :  { %v6919_v8 = vpop.permute.xlu0 %2375  ;;  %v6921_v13 = vpop.permute.xlu1 %2372 }
 0x28a   :  { %3028 = vperm.xlu0 %4786, %v2825_v51   ;;  %3025 = vperm.xlu1 %4787, %v2824_v57  }
 0x28d   :  { %v6927_v1 = vpop.permute.xlu0 %2381  ;;  %v6929_v2 = vpop.permute.xlu1 %2378 }
 0x28e   :  { %3034 = vperm.xlu0 %4786, %v2827_v32   ;;  %3031 = vperm.xlu1 %4787, %v2826_v45   ;;  %v8424_v32 = vld [vmem:[#allocation55_spill] sm:$0xff]  ;;  %v2646_v38 = vrot.slane %v6927_v1, %v8312_v33 }
 0x28f   :  { %v2835_v45 = vsub.f32 %v8424_v32, %v6677_v61 }
 0x291   :  { %v6935_v4 = vpop.permute.xlu0 %2387  ;;  %v6937_v7 = vpop.permute.xlu1 %2384 }
 0x292   :  { %3040 = vperm.xlu0 %4786, %v2829_v40   ;;  %3037 = vperm.xlu1 %4787, %v2828_v5   ;;  %v8425_v40 = vld [vmem:[#allocation56_spill] sm:$0xff]  ;;  %v2651_v53 = vrot.slane %v6937_v7, %v8314_v55  ;;  %v2618_v7 = vrot.slane %v6903_v60, %v8318_v41 }
 0x293   :  { %v2834_v5 = vsub.f32 %v8425_v40, %v6677_v61  ;;  %v8428_v40 = vld [vmem:[#allocation59_spill] sm:$0xff] }
 0x294   :  { %v2839_v32 = vsub.f32 %v8428_v40, %v6677_v61  ;;  %v2627_v40 = vrot.slane %v6911_v35, %v8312_v33  ;;  %v8432_v35 = vld [vmem:[#allocation63_spill] sm:$0xff] }
 0x295   :  { %v6943_v63 = vpop.permute.xlu0 %2393  ;;  %v6945_v48 = vpop.permute.xlu1 %2390  ;;  %v2843_v19 = vsub.f32 %v8432_v35, %v6677_v61 }
 0x296   :  { %3046 = vperm.xlu0 %4786, %v2831_v39   ;;  %3043 = vperm.xlu1 %4787, %v2830_v28   ;;  %v8426_v28 = vld [vmem:[#allocation57_spill] sm:$0xff]  ;;  %v2661_v1 = vrot.slane %v6945_v48, %v8313_v27 }
 0x297   :  { %v2837_v50 = vsub.f32 %v8426_v28, %v6677_v61  ;;  %v2841_v28 = vsub.f32 %v8430_v43, %v6677_v61  ;;  %v2623_v43 = vrot.slane %v6913_v29, %v8313_v27  ;;  %v2665_v29 = vrot.slane %v6943_v63, %v8312_v33  ;;  %v8434_v63 = vld [vmem:[#allocation66_spill] sm:$0xff] }
 0x298   :  { %v2844_v21 = vsub.f32 %v8434_v63, %v6677_v61 }
 0x299   :  { %v6951_v51 = vpop.permute.xlu0 %2399  ;;  %v2397_v57 = vpop.permute.xlu1 %2396  ;;  %v2628_v34 = vsel %vm1125_vm1, %v2627_v40, %v2623_v43  ;;  %v2666_v63 = vsel %vm1125_vm1, %v2665_v29, %v2661_v1 }
 0x29a   :  { %3052 = vperm.xlu0 %4786, %v2833_v26   ;;  %3049 = vperm.xlu1 %4787, %v2832_v9  }
 0x29d   :  { %v6957_v15 = vpop.permute.xlu0 %2405  ;;  %v6959_v39 = vpop.permute.xlu1 %2402 }
 0x29e   :  { %3058 = vperm.xlu0 %4786, %v2835_v45   ;;  %3055 = vperm.xlu1 %4787, %v2834_v5  }
 0x2a1   :  { %v6965_v26 = vpop.permute.xlu0 %2411  ;;  %v6967_v9 = vpop.permute.xlu1 %2408 }
 0x2a2   :  { %3064 = vperm.xlu0 %4786, %v2837_v50   ;;  %3061 = vperm.xlu1 %4787, %v2836_v42   ;;  %v2608_v42 = vrot.slane %v6891_v37, %v8312_v33  ;;  %v2604_v50 = vrot.slane %v6893_v24, %v8313_v27  ;;  %v2642_v37 = vrot.slane %v6929_v2, %v8313_v27 }
 0x2a3   :  { %v2632_v24 = vrot.slane %v6921_v13, %v8314_v55  ;;  %v2842_v2 = vsub.f32 %v8433_v47, %v6677_v61 }
 0x2a4   :  { %v2609_v13 = vsel %vm1125_vm1, %v2608_v42, %v2604_v50  ;;  %v2647_v47 = vsel %vm1125_vm1, %v2646_v38, %v2642_v37  ;;  %v2637_v42 = vrot.slane %v6919_v8, %v8318_v41  ;;  %v2684_v38 = vrot.slane %v6957_v15, %v8312_v33 }
 0x2a5   :  { %v6973_v45 = vpop.permute.xlu0 %2417  ;;  %v6975_v5 = vpop.permute.xlu1 %2414  ;;  %v2614_v48 = vsel %vm1132_vm2, %v2613_v58, %v2609_v13  ;;  %v2633_v60 = vsel %vm1132_vm2, %v2632_v24, %v2628_v34  ;;  %v2652_v50 = vsel %vm1132_vm2, %v2651_v53, %v2647_v47  ;;  %v2675_v58 = vrot.slane %v6951_v51, %v8318_v41 }
 0x2a6   :  { %3070 = vperm.xlu0 %4786, %v2839_v32   ;;  %3067 = vperm.xlu1 %4787, %v2838_v0   ;;  %v2689_v34 = vrot.slane %v6967_v9, %v8314_v55  ;;  %v2699_v47 = vrot.slane %v6975_v5, %v8313_v27  ;;  %v2846_v5 = vsub.f32 %v5814_v44, %v6677_v61 }
 0x2a7   :  { %v2638_v24 = vsel %vm1139_vm3, %v2637_v42, %v2633_v60 }
 0x2a9   :  { %v6989_v32 = vpop.permute.xlu0 %2423  ;;  %v2421_v0 = vpop.permute.xlu1 %2420 }
 0x2aa   :  { %3076 = vperm.xlu0 %4786, %v2841_v28   ;;  %3073 = vperm.xlu1 %4787, %v2840_v20   ;;  %v2845_v20 = vsub.f32 %v5791_v36, %v6677_v61  ;;  %v2670_v28 = vrot.slane %v2397_v57, %v8314_v55  ;;  %v2656_v57 = vrot.slane %v6935_v4, %v8318_v41 }
 0x2ab   :  { %v2703_v4 = vrot.slane %v6973_v45, %v8312_v33  ;;  %v2708_v51 = vrot.slane %v2421_v0, %v8314_v55  ;;  %v2847_v45 = vsub.f32 %v5810_v23, %v6677_v61  ;;  %v2713_v1 = vrot.slane %v6989_v32, %v8318_v41 }
 0x2ac   :  { %v2671_v8 = vsel %vm1132_vm2, %v2670_v28, %v2666_v63  ;;  %v2657_v0 = vsel %vm1139_vm3, %v2656_v57, %v2652_v50  ;;  %v2849_v57 = vsub.f32 %v5825_v14, %v6677_v61  ;;  %v2848_v50 = vsub.f32 %v5827_v22, %v6677_v61 }
 0x2ad   :  { %v2430_v35 = vpop.permute.xlu0 %2429  ;;  %v2427_v56 = vpop.permute.xlu1 %2426  ;;  %v2704_v29 = vsel %vm1125_vm1, %v2703_v4, %v2699_v47 }
 0x2ae   :  { %3082 = vperm.xlu0 %4786, %v2843_v19   ;;  %3079 = vperm.xlu1 %4787, %v2842_v2   ;;  %v2680_v19 = vrot.slane %v6959_v39, %v8313_v27  ;;  %v2722_v15 = vrot.slane %v2430_v35, %v8312_v33  ;;  %v2718_v37 = vrot.slane %v2427_v56, %v8313_v27 }
 0x2af   :  { %v2619_v39 = vsel %vm1139_vm3, %v2618_v7, %v2614_v48  ;;  %v2694_v56 = vrot.slane %v6965_v26, %v8318_v41  ;;  %v2709_v13 = vsel %vm1132_vm2, %v2708_v51, %v2704_v29 }
 0x2b0   :  { %v2685_v53 = vsel %vm1125_vm1, %v2684_v38, %v2680_v19  ;;  %v2723_v7 = vsel %vm1125_vm1, %v2722_v15, %v2718_v37  ;;  %v2760_v26 = vsel %vm1426_vm4, %v2638_v24, %v2619_v39  ;;  %v2714_v38 = vsel %vm1139_vm3, %v2713_v1, %v2709_v13 }
 0x2b1   :  { %v2436_v43 = vpop.permute.xlu0 %2435  ;;  %v2433_v40 = vpop.permute.xlu1 %2432  ;;  %v2690_v35 = vsel %vm1132_vm2, %v2689_v34, %v2685_v53  ;;  %v2761_v32 = vsel %vm1428_vm5, %v2657_v0, %v2760_v26  ;;  %v2851_v37 = vsub.f32 %v5833_v18, %v6677_v61  ;;  %v2850_v39 = vsub.f32 %v5835_v62, %v6677_v61  ;;  %v8436_v26 = vld [vmem:[#allocation29_spill] sm:$0xff] }
 0x2b2   :  { %3088 = vperm.xlu0 %4786, %v2845_v20   ;;  %3085 = vperm.xlu1 %4787, %v2844_v21   ;;  %v2727_v9 = vrot.slane %v2433_v40, %v8314_v55  ;;  %v2676_v21 = vsel %vm1139_vm3, %v2675_v58, %v2671_v8  ;;  %v2732_v28 = vrot.slane %v2436_v43, %v8318_v41  ;;  %v7095_v61 = vstv %s4778_s14 }
 0x2b3   :  { %v2695_v60 = vsel %vm1139_vm3, %v2694_v56, %v2690_v35  ;;  %v2762_v58 = vsel %vm1430_vm6, %v2676_v21, %v2761_v32  ;;  %v3448_v21 = vsub.f32 %v5116_v6, %v7095_v61  ;;  %v3447_v35 = vsub.f32 %v5118_v3, %v7095_v61 }
 0x2b4   :  { %v2728_v63 = vsel %vm1132_vm2, %v2727_v9, %v2723_v7  ;;  %v2763_v43 = vsel %vm1432_vm7, %v2695_v60, %v2762_v58  ;;  %v8438_v60 = vld [vmem:[#allocation31_spill] sm:$0xff] }
 0x2b5   :  { %v2442_v2 = vpop.permute.xlu0 %2441  ;;  %v2439_v20 = vpop.permute.xlu1 %2438  ;;  %v2733_v34 = vsel %vm1139_vm3, %v2732_v28, %v2728_v63  ;;  %v2764_v15 = vsel %vm1434_vm8, %v2714_v38, %v2763_v43  ;;  %v8437_v63 = vld [vmem:[#allocation30_spill] sm:$0xff] }
 0x2b6   :  { %3094 = vperm.xlu0 %4786, %v2847_v45   ;;  %3091 = vperm.xlu1 %4787, %v2846_v5   ;;  %v2741_v48 = vrot.slane %v2442_v2, %v8312_v33  ;;  %v2737_v42 = vrot.slane %v2439_v20, %v8313_v27  ;;  %v2765_v5 = vsel %vm1436_vm9, %v2733_v34, %v2764_v15  ;;  %v8435_v20 = vld [vmem:[#allocation10_spill] sm:$0xff] }
 0x2b7   :  { %v3450_v2 = vsub.f32 %v5128_v31, %v7095_v61  ;;  %v7119_v13 = vsub.f32 %v8435_v20, %v7095_v61 }
 0x2b8   :  { %v2742_v40 = vsel %vm1125_vm1, %v2741_v48, %v2737_v42  ;;  %v3451_v48 = vsub.f32 %v8437_v63, %v7095_v61 }
 0x2b9   :  { %v2448_v19 = vpop.permute.xlu0 %2447  ;;  %v2445_v8 = vpop.permute.xlu1 %2444  ;;  %3445 = vst.msk [vmem:[#allocation5 + $0x40] sm:$0xff] %vm790_vm0, %v7119_v13 }
 0x2ba   :  { %v2751_v4 = vrot.slane %v2448_v19, %v8318_v41  ;;  %v2746_v47 = vrot.slane %v2445_v8, %v8314_v55  ;;  %3100 = vperm.xlu0 %4786, %v2849_v57   ;;  %3097 = vperm.xlu1 %4787, %v2848_v50   ;;  %v3454_v57 = vsub.f32 %v8438_v60, %v7095_v61  ;;  %v8439_v50 = vld [vmem:[#allocation32_spill] sm:$0xff]  ;;  %v8440_v8 = vld [vmem:[#allocation33_spill] sm:$0xff] }
 0x2bb   :  { %v3453_v58 = vsub.f32 %v8439_v50, %v7095_v61  ;;  %v3456_v34 = vsub.f32 %v8440_v8, %v7095_v61  ;;  %v8455_v8 = vld [vmem:[#allocation47_spill] sm:$0xff] }
 0x2bc   :  { %v2747_v51 = vsel %vm1132_vm2, %v2746_v47, %v2742_v40 }
 0x2bd   :  { %v2776_v9 = vpop.permute.xlu0 %2775  ;;  %v2752_v45 = vsel %vm1139_vm3, %v2751_v4, %v2747_v51  ;;  %v2774_v24 = vpop.permute.xlu1 %2773  ;;  %v8441_v4 = vld [vmem:[#allocation34_spill] sm:$0xff]  ;;  %v8442_v51 = vld [vmem:[#allocation35_spill] sm:$0xff] }
 0x2be   :  { %v2766_v0 = vsel %vm1438_vm10, %v2752_v45, %v2765_v5  ;;  %2779 = vst.msk [vmem:[#allocation5 + $0x20] sm:$0xff] %vm1460_vm12, %v2774_v24  ;;  %3106 = vperm.xlu0 %4786, %v2851_v37   ;;  %3103 = vperm.xlu1 %4787, %v2850_v39   ;;  %v3455_v47 = vsub.f32 %v8441_v4, %v7095_v61  ;;  %v8443_v37 = vld [vmem:[#allocation36_spill] sm:$0xff]  ;;  %v8444_v5 = vld [vmem:[#allocation37_spill] sm:$0xff] }
 0x2bf   :  { %2770 = vst.msk [vmem:[#allocation5 + $0x28] sm:$0xff] %vm1449_vm11, %v2766_v0  ;;  %v3458_v15 = vsub.f32 %v8442_v51, %v7095_v61  ;;  %v3457_v39 = vsub.f32 %v8443_v37, %v7095_v61  ;;  %v3460_v24 = vsub.f32 %v8444_v5, %v7095_v61  ;;  %v8445_v0 = vld [vmem:[#allocation38_spill] sm:$0xff] }
 0x2c0   :  { %2780 = vst.msk [vmem:[#allocation5 + $0x28] sm:$0xff] %vm1460_vm12, %v2776_v9  ;;  %v8453_v37 = vld [vmem:[#allocation46_spill] sm:$0xff] }
 0x2c1   :  { %v7091_v53 = vpop.permute.xlu0 %2920  ;;  %v7093_v56 = vpop.permute.xlu1 %2917  ;;  %v3467_v51 = vsub.f32 %v8453_v37, %v7095_v61 }
 0x2c2   :  { %3434 = vrot.lane.b32.xlu0 %v6702_v54, %s4834_s29  ;;  %3432 = vrot.lane.b32.xlu1 %v6711_v11, %s4834_s29  ;;  %v3449_v54 = vsub.f32 %v8300_v30, %v7095_v61  ;;  %v7115_v11 = vsub.f32 %v6698_v10, %v7095_v61  ;;  %v3452_v10 = vsub.f32 %v8436_v26, %v7095_v61 }
 0x2c4   :  { %3446 = vst.msk [vmem:[#allocation5 + $0x48] sm:$0xff] %vm790_vm0, %v7115_v11 }
 0x2c5   :  { %v7105_v29 = vpop.permute.xlu0 %2926  ;;  %v7107_v1 = vpop.permute.xlu1 %2923 }
 0x2c6   :  { %3579 = vperm.xlu0 %4786, %v3448_v21   ;;  %3576 = vperm.xlu1 %4787, %v3447_v35   ;;  %v3459_v21 = vsub.f32 %v8445_v0, %v7095_v61  ;;  %v8451_v0 = vld [vmem:[#allocation44_spill] sm:$0xff] }
 0x2c7   :  { %v3465_v5 = vsub.f32 %v8451_v0, %v7095_v61  ;;  %v3120_v0 = vrot.slane %v7107_v1, %v8314_v55 }
 0x2c9   :  { %v7121_v7 = vpop.permute.xlu0 %2932  ;;  %v7123_v28 = vpop.permute.xlu1 %2929 }
 0x2ca   :  { %3585 = vperm.xlu0 %4786, %v3450_v2   ;;  %3582 = vperm.xlu1 %4787, %v3449_v54   ;;  %v8446_v54 = vld [vmem:[#allocation39_spill] sm:$0xff] }
 0x2cb   :  { %v3462_v20 = vsub.f32 %v8446_v54, %v7095_v61 }
 0x2cd   :  { %v7133_v42 = vpop.permute.xlu0 %2938  ;;  %v7135_v32 = vpop.permute.xlu1 %2935 }
 0x2ce   :  { %3591 = vperm.xlu0 %4786, %v3452_v10   ;;  %3588 = vperm.xlu1 %4787, %v3451_v48   ;;  %v8447_v10 = vld [vmem:[#allocation40_spill] sm:$0xff] }
 0x2cf   :  { %v3461_v48 = vsub.f32 %v8447_v10, %v7095_v61  ;;  %v8450_v10 = vld [vmem:[#allocation43_spill] sm:$0xff] }
 0x2d0   :  { %v3466_v54 = vsub.f32 %v8450_v10, %v7095_v61  ;;  %v3134_v10 = vrot.slane %v7121_v7, %v8312_v33  ;;  %v8454_v7 = vld [vmem:[#allocation17_spill] sm:$0xff] }
 0x2d1   :  { %v7141_v38 = vpop.permute.xlu0 %2944  ;;  %v7143_v19 = vpop.permute.xlu1 %2941  ;;  %v3470_v4 = vsub.f32 %v8454_v7, %v7095_v61 }
 0x2d2   :  { %3597 = vperm.xlu0 %4786, %v3454_v57   ;;  %3594 = vperm.xlu1 %4787, %v3453_v58   ;;  %v3153_v37 = vrot.slane %v7141_v38, %v8312_v33 }
 0x2d5   :  { %v7149_v43 = vpop.permute.xlu0 %2950  ;;  %v7151_v40 = vpop.permute.xlu1 %2947 }
 0x2d6   :  { %3603 = vperm.xlu0 %4786, %v3456_v34   ;;  %3600 = vperm.xlu1 %4787, %v3455_v47   ;;  %v8448_v34 = vld [vmem:[#allocation41_spill] sm:$0xff]  ;;  %v3158_v1 = vrot.slane %v7151_v40, %v8314_v55  ;;  %v3125_v40 = vrot.slane %v7105_v29, %v8318_v41 }
 0x2d7   :  { %v3464_v47 = vsub.f32 %v8448_v34, %v7095_v61 }
 0x2d9   :  { %v7157_v9 = vpop.permute.xlu0 %2956  ;;  %v7159_v45 = vpop.permute.xlu1 %2953 }
 0x2da   :  { %3609 = vperm.xlu0 %4786, %v3458_v15   ;;  %3606 = vperm.xlu1 %4787, %v3457_v39   ;;  %v8449_v15 = vld [vmem:[#allocation42_spill] sm:$0xff]  ;;  %v3168_v38 = vrot.slane %v7159_v45, %v8313_v27 }
 0x2db   :  { %v3463_v39 = vsub.f32 %v8449_v15, %v7095_v61  ;;  %v8452_v15 = vld [vmem:[#allocation45_spill] sm:$0xff] }
 0x2dc   :  { %v3468_v34 = vsub.f32 %v8452_v15, %v7095_v61  ;;  %v3130_v15 = vrot.slane %v7123_v28, %v8313_v27  ;;  %v3172_v28 = vrot.slane %v7157_v9, %v8312_v33  ;;  %v8456_v9 = vld [vmem:[#allocation48_spill] sm:$0xff] }
 0x2dd   :  { %v7165_v35 = vpop.permute.xlu0 %2962  ;;  %v2960_v2 = vpop.permute.xlu1 %2959  ;;  %v3471_v60 = vsub.f32 %v8456_v9, %v7095_v61 }
 0x2de   :  { %3615 = vperm.xlu0 %4786, %v3460_v24   ;;  %3612 = vperm.xlu1 %4787, %v3459_v21   ;;  %v3135_v63 = vsel %vm1125_vm1, %v3134_v10, %v3130_v15  ;;  %v3173_v9 = vsel %vm1125_vm1, %v3172_v28, %v3168_v38 }
 0x2e1   :  { %v7171_v57 = vpop.permute.xlu0 %2968  ;;  %v7173_v58 = vpop.permute.xlu1 %2965 }
 0x2e2   :  { %3621 = vperm.xlu0 %4786, %v3462_v20   ;;  %3618 = vperm.xlu1 %4787, %v3461_v48  }
 0x2e5   :  { %v7179_v24 = vpop.permute.xlu0 %2974  ;;  %v7181_v21 = vpop.permute.xlu1 %2971 }
 0x2e6   :  { %3627 = vperm.xlu0 %4786, %v3464_v47   ;;  %3624 = vperm.xlu1 %4787, %v3463_v39   ;;  %v3115_v47 = vrot.slane %v7091_v53, %v8312_v33  ;;  %v3111_v39 = vrot.slane %v7093_v56, %v8313_v27  ;;  %v3149_v53 = vrot.slane %v7143_v19, %v8313_v27 }
 0x2e7   :  { %v3139_v56 = vrot.slane %v7135_v32, %v8314_v55  ;;  %v3469_v19 = vsub.f32 %v8455_v8, %v7095_v61 }
 0x2e8   :  { %v3116_v32 = vsel %vm1125_vm1, %v3115_v47, %v3111_v39  ;;  %v3154_v8 = vsel %vm1125_vm1, %v3153_v37, %v3149_v53  ;;  %v3144_v47 = vrot.slane %v7133_v42, %v8318_v41  ;;  %v3191_v37 = vrot.slane %v7171_v57, %v8312_v33 }
 0x2e9   :  { %v7187_v20 = vpop.permute.xlu0 %2980  ;;  %v7189_v48 = vpop.permute.xlu1 %2977  ;;  %v3121_v45 = vsel %vm1132_vm2, %v3120_v0, %v3116_v32  ;;  %v3140_v29 = vsel %vm1132_vm2, %v3139_v56, %v3135_v63  ;;  %v3159_v39 = vsel %vm1132_vm2, %v3158_v1, %v3154_v8  ;;  %v3182_v0 = vrot.slane %v7165_v35, %v8318_v41 }
 0x2ea   :  { %3633 = vperm.xlu0 %4786, %v3466_v54   ;;  %3630 = vperm.xlu1 %4787, %v3465_v5   ;;  %v3196_v63 = vrot.slane %v7181_v21, %v8314_v55  ;;  %v3206_v8 = vrot.slane %v7189_v48, %v8313_v27  ;;  %v3473_v48 = vsub.f32 %v8321_v25, %v7095_v61 }
 0x2eb   :  { %v3145_v56 = vsel %vm1139_vm3, %v3144_v47, %v3140_v29 }
 0x2ed   :  { %v7203_v54 = vpop.permute.xlu0 %2986  ;;  %v2984_v5 = vpop.permute.xlu1 %2983 }
 0x2ee   :  { %3639 = vperm.xlu0 %4786, %v3468_v34   ;;  %3636 = vperm.xlu1 %4787, %v3467_v51   ;;  %v3472_v51 = vsub.f32 %v8317_v46, %v7095_v61  ;;  %v3177_v34 = vrot.slane %v2960_v2, %v8314_v55  ;;  %v3163_v2 = vrot.slane %v7149_v43, %v8318_v41 }
 0x2ef   :  { %v3210_v43 = vrot.slane %v7187_v20, %v8312_v33  ;;  %v3215_v35 = vrot.slane %v2984_v5, %v8314_v55  ;;  %v3474_v20 = vsub.f32 %v8320_v17, %v7095_v61  ;;  %v3220_v38 = vrot.slane %v7203_v54, %v8318_v41 }
 0x2f0   :  { %v3178_v42 = vsel %vm1132_vm2, %v3177_v34, %v3173_v9  ;;  %v3164_v5 = vsel %vm1139_vm3, %v3163_v2, %v3159_v39  ;;  %v3476_v2 = vsub.f32 %v8322_v12, %v7095_v61  ;;  %v3475_v39 = vsub.f32 %v8323_v52, %v7095_v61 }
 0x2f1   :  { %v2993_v7 = vpop.permute.xlu0 %2992  ;;  %v2990_v50 = vpop.permute.xlu1 %2989  ;;  %v3211_v28 = vsel %vm1125_vm1, %v3210_v43, %v3206_v8 }
 0x2f2   :  { %3645 = vperm.xlu0 %4786, %v3470_v4   ;;  %3642 = vperm.xlu1 %4787, %v3469_v19   ;;  %v3187_v4 = vrot.slane %v7173_v58, %v8313_v27  ;;  %v3229_v57 = vrot.slane %v2993_v7, %v8312_v33  ;;  %v3225_v53 = vrot.slane %v2990_v50, %v8313_v27 }
 0x2f3   :  { %v3126_v58 = vsel %vm1139_vm3, %v3125_v40, %v3121_v45  ;;  %v3201_v50 = vrot.slane %v7179_v24, %v8318_v41  ;;  %v3216_v32 = vsel %vm1132_vm2, %v3215_v35, %v3211_v28 }
 0x2f4   :  { %v3192_v1 = vsel %vm1125_vm1, %v3191_v37, %v3187_v4  ;;  %v3230_v40 = vsel %vm1125_vm1, %v3229_v57, %v3225_v53  ;;  %v3412_v24 = vsel %vm1426_vm4, %v3145_v56, %v3126_v58  ;;  %v3221_v37 = vsel %vm1139_vm3, %v3220_v38, %v3216_v32  ;;  %v8458_v38 = vld [vmem:[#allocation24_spill] sm:$0xff] }
 0x2f5   :  { %v2999_v10 = vpop.permute.xlu0 %2998  ;;  %v2996_v15 = vpop.permute.xlu1 %2995  ;;  %v3197_v7 = vsel %vm1132_vm2, %v3196_v63, %v3192_v1  ;;  %v3413_v54 = vsel %vm1428_vm5, %v3164_v5, %v3412_v24  ;;  %v3478_v57 = vsub.f32 %v8324_v16, %v7095_v61  ;;  %v3477_v53 = vsub.f32 %v8325_v59, %v7095_v61  ;;  %v8460_v24 = vld [vmem:[#allocation50_spill] sm:$0xff] }
 0x2f6   :  { %3651 = vperm.xlu0 %4786, %v3472_v51   ;;  %3648 = vperm.xlu1 %4787, %v3471_v60   ;;  %v3234_v21 = vrot.slane %v2996_v15, %v8314_v55  ;;  %v3183_v60 = vsel %vm1139_vm3, %v3182_v0, %v3178_v42  ;;  %v3239_v34 = vrot.slane %v2999_v10, %v8318_v41 }
 0x2f7   :  { %v3202_v29 = vsel %vm1139_vm3, %v3201_v50, %v3197_v7  ;;  %v3414_v0 = vsel %vm1430_vm6, %v3183_v60, %v3413_v54  ;;  %v3480_v1 = vsub.f32 %v8326_v49, %v7095_v61  ;;  %v8457_v50 = vld [vmem:[#allocation21_spill] sm:$0xff] }
 0x2f8   :  { %v3235_v9 = vsel %vm1132_vm2, %v3234_v21, %v3230_v40  ;;  %v3415_v10 = vsel %vm1432_vm7, %v3202_v29, %v3414_v0  ;;  %v3479_v60 = vsub.f32 %v8457_v50, %v7095_v61  ;;  %v8463_v0 = vld [vmem:[#allocation51_spill] sm:$0xff] }
 0x2f9   :  { %v3005_v19 = vpop.permute.xlu0 %3004  ;;  %v3002_v51 = vpop.permute.xlu1 %3001  ;;  %v3240_v63 = vsel %vm1139_vm3, %v3239_v34, %v3235_v9  ;;  %v3416_v58 = vsel %vm1434_vm8, %v3221_v37, %v3415_v10  ;;  %v3484_v9 = vsub.f32 %v8460_v24, %v7095_v61  ;;  %v3485_v37 = vsub.f32 %v8463_v0, %v7095_v61  ;;  %v8477_v0 = vld [vmem:[#allocation62_spill] sm:$0xff]  ;;  %v8479_v24 = vld [vmem:[#allocation64_spill] sm:$0xff] }
 0x2fa   :  { %3657 = vperm.xlu0 %4786, %v3474_v20   ;;  %3654 = vperm.xlu1 %4787, %v3473_v48   ;;  %v3248_v45 = vrot.slane %v3005_v19, %v8312_v33  ;;  %v3244_v47 = vrot.slane %v3002_v51, %v8313_v27  ;;  %v3417_v56 = vsel %vm1436_vm9, %v3240_v63, %v3416_v58  ;;  %v8459_v51 = vld [vmem:[#allocation26_spill] sm:$0xff]  ;;  %v8464_v63 = vld [vmem:[#allocation52_spill] sm:$0xff] }
 0x2fb   :  { %v3482_v19 = vsub.f32 %v8458_v38, %v7095_v61  ;;  %v3481_v32 = vsub.f32 %v8459_v51, %v7095_v61  ;;  %v8467_v58 = vld [vmem:[#allocation14_spill] sm:$0xff] }
 0x2fc   :  { %v3249_v15 = vsel %vm1125_vm1, %v3248_v45, %v3244_v47  ;;  %v8461_v45 = vld [vmem:[#allocation27_spill] sm:$0xff] }
 0x2fd   :  { %v3011_v4 = vpop.permute.xlu0 %3010  ;;  %v3008_v42 = vpop.permute.xlu1 %3007  ;;  %v3483_v47 = vsub.f32 %v8461_v45, %v7095_v61 }
 0x2fe   :  { %v3258_v43 = vrot.slane %v3011_v4, %v8318_v41  ;;  %v3253_v8 = vrot.slane %v3008_v42, %v8314_v55  ;;  %3663 = vperm.xlu0 %4786, %v3476_v2   ;;  %3660 = vperm.xlu1 %4787, %v3475_v39   ;;  %v8462_v2 = vld [vmem:[#allocation22_spill] sm:$0xff] }
 0x2ff   :  { %v3486_v39 = vsub.f32 %v8462_v2, %v7095_v61  ;;  %v3499_v2 = vsub.f32 %v8477_v0, %v7095_v61 }
 0x300   :  { %v3254_v35 = vsel %vm1132_vm2, %v3253_v8, %v3249_v15  ;;  %v8465_v8 = vld [vmem:[#allocation25_spill] sm:$0xff] }
 0x301   :  { %v7299_v21 = vpop.permute.xlu0 %3016  ;;  %v7301_v20 = vpop.permute.xlu1 %3013  ;;  %v3259_v48 = vsel %vm1139_vm3, %v3258_v43, %v3254_v35  ;;  %v3488_v43 = vsub.f32 %v8464_v63, %v7095_v61  ;;  %v3487_v10 = vsub.f32 %v8465_v8, %v7095_v61  ;;  %v8475_v8 = vld [vmem:[#allocation60_spill] sm:$0xff] }
 0x302   :  { %3669 = vperm.xlu0 %4786, %v3478_v57   ;;  %3666 = vperm.xlu1 %4787, %v3477_v53   ;;  %v3418_v5 = vsel %vm1438_vm10, %v3259_v48, %v3417_v56  ;;  %v8466_v57 = vld [vmem:[#allocation13_spill] sm:$0xff]  ;;  %v3489_v48 = vsub.f32 %v8467_v58, %v7095_v61  ;;  %v3497_v63 = vsub.f32 %v8475_v8, %v7095_v61 }
 0x303   :  { %3428 = vst.msk [vmem:[#allocation5 + $0x30] sm:$0xff] %vm1449_vm11, %v3418_v5  ;;  %v3490_v53 = vsub.f32 %v8466_v57, %v7095_v61 }
 0x305   :  { %v7311_v7 = vpop.permute.xlu0 %3022  ;;  %v7313_v28 = vpop.permute.xlu1 %3019 }
 0x306   :  { %3675 = vperm.xlu0 %4786, %v3480_v1   ;;  %3672 = vperm.xlu1 %4787, %v3479_v60   ;;  %v8468_v1 = vld [vmem:[#allocation53_spill] sm:$0xff] }
 0x307   :  { %v3492_v60 = vsub.f32 %v8468_v1, %v7095_v61  ;;  %v8473_v1 = vld [vmem:[#allocation58_spill] sm:$0xff] }
 0x308   :  { %v3495_v57 = vsub.f32 %v8473_v1, %v7095_v61 }
 0x309   :  { %v7319_v40 = vpop.permute.xlu0 %3028  ;;  %v7321_v34 = vpop.permute.xlu1 %3025 }
 0x30a   :  { %3681 = vperm.xlu0 %4786, %v3482_v19   ;;  %3678 = vperm.xlu1 %4787, %v3481_v32   ;;  %v8469_v19 = vld [vmem:[#allocation54_spill] sm:$0xff]  ;;  %v3286_v8 = vrot.slane %v7319_v40, %v8312_v33  ;;  %v8478_v40 = vld [vmem:[#allocation63_spill] sm:$0xff] }
 0x30b   :  { %v3491_v32 = vsub.f32 %v8469_v19, %v7095_v61  ;;  %v3502_v45 = vsub.f32 %v8478_v40, %v7095_v61 }
 0x30d   :  { %v7327_v54 = vpop.permute.xlu0 %3034  ;;  %v7329_v29 = vpop.permute.xlu1 %3031 }
 0x30e   :  { %3687 = vperm.xlu0 %4786, %v3484_v9   ;;  %3684 = vperm.xlu1 %4787, %v3483_v47  }
 0x311   :  { %v7335_v4 = vpop.permute.xlu0 %3040  ;;  %v7337_v42 = vpop.permute.xlu1 %3037 }
 0x312   :  { %3693 = vperm.xlu0 %4786, %v3486_v39   ;;  %3690 = vperm.xlu1 %4787, %v3485_v37   ;;  %v8470_v39 = vld [vmem:[#allocation55_spill] sm:$0xff]  ;;  %v3305_v0 = vrot.slane %v7335_v4, %v8312_v33 }
 0x313   :  { %v3494_v37 = vsub.f32 %v8470_v39, %v7095_v61  ;;  %v8474_v39 = vld [vmem:[#allocation59_spill] sm:$0xff] }
 0x315   :  { %v7343_v15 = vpop.permute.xlu0 %3046  ;;  %v7345_v35 = vpop.permute.xlu1 %3043 }
 0x316   :  { %3699 = vperm.xlu0 %4786, %v3488_v43   ;;  %3696 = vperm.xlu1 %4787, %v3487_v10   ;;  %v8471_v43 = vld [vmem:[#allocation56_spill] sm:$0xff] }
 0x317   :  { %v3493_v10 = vsub.f32 %v8471_v43, %v7095_v61  ;;  %v3498_v43 = vsub.f32 %v8474_v39, %v7095_v61  ;;  %v3272_v39 = vrot.slane %v7313_v28, %v8314_v55  ;;  %v3310_v28 = vrot.slane %v7345_v35, %v8314_v55 }
 0x318   :  { %v3277_v35 = vrot.slane %v7311_v7, %v8318_v41 }
 0x319   :  { %v7351_v56 = vpop.permute.xlu0 %3052  ;;  %v7353_v5 = vpop.permute.xlu1 %3049 }
 0x31a   :  { %3705 = vperm.xlu0 %4786, %v3490_v53   ;;  %3702 = vperm.xlu1 %4787, %v3489_v48   ;;  %v8472_v48 = vld [vmem:[#allocation57_spill] sm:$0xff]  ;;  %v3320_v4 = vrot.slane %v7353_v5, %v8313_v27 }
 0x31b   :  { %v3496_v19 = vsub.f32 %v8472_v48, %v7095_v61  ;;  %v8476_v48 = vld [vmem:[#allocation61_spill] sm:$0xff] }
 0x31c   :  { %v3500_v1 = vsub.f32 %v8476_v48, %v7095_v61  ;;  %v3282_v48 = vrot.slane %v7321_v34, %v8313_v27  ;;  %v3324_v34 = vrot.slane %v7351_v56, %v8312_v33  ;;  %v8480_v56 = vld [vmem:[#allocation66_spill] sm:$0xff] }
 0x31d   :  { %v7359_v9 = vpop.permute.xlu0 %3058  ;;  %v3056_v47 = vpop.permute.xlu1 %3055  ;;  %v3503_v38 = vsub.f32 %v8480_v56, %v7095_v61 }
 0x31e   :  { %3711 = vperm.xlu0 %4786, %v3492_v60   ;;  %3708 = vperm.xlu1 %4787, %v3491_v32   ;;  %v3287_v50 = vsel %vm1125_vm1, %v3286_v8, %v3282_v48 }
 0x321   :  { %v7365_v58 = vpop.permute.xlu0 %3064  ;;  %v7367_v53 = vpop.permute.xlu1 %3061 }
 0x322   :  { %3717 = vperm.xlu0 %4786, %v3494_v37   ;;  %3714 = vperm.xlu1 %4787, %v3493_v10  }
 0x325   :  { %v7373_v60 = vpop.permute.xlu0 %3070  ;;  %v7375_v32 = vpop.permute.xlu1 %3067 }
 0x326   :  { %3723 = vperm.xlu0 %4786, %v3496_v19   ;;  %3720 = vperm.xlu1 %4787, %v3495_v57   ;;  %v3267_v57 = vrot.slane %v7299_v21, %v8312_v33  ;;  %v3263_v19 = vrot.slane %v7301_v20, %v8313_v27  ;;  %v3301_v21 = vrot.slane %v7337_v42, %v8313_v27 }
 0x327   :  { %v3291_v20 = vrot.slane %v7329_v29, %v8314_v55  ;;  %v3501_v42 = vsub.f32 %v8479_v24, %v7095_v61 }
 0x328   :  { %v3268_v29 = vsel %vm1125_vm1, %v3267_v57, %v3263_v19  ;;  %v3306_v24 = vsel %vm1125_vm1, %v3305_v0, %v3301_v21  ;;  %v3296_v57 = vrot.slane %v7327_v54, %v8318_v41  ;;  %v3343_v0 = vrot.slane %v7365_v58, %v8312_v33 }
 0x329   :  { %v7381_v37 = vpop.permute.xlu0 %3076  ;;  %v7383_v10 = vpop.permute.xlu1 %3073  ;;  %v3273_v5 = vsel %vm1132_vm2, %v3272_v39, %v3268_v29  ;;  %v3292_v7 = vsel %vm1132_vm2, %v3291_v20, %v3287_v50  ;;  %v3311_v19 = vsel %vm1132_vm2, %v3310_v28, %v3306_v24  ;;  %v3334_v39 = vrot.slane %v7359_v9, %v8318_v41 }
 0x32a   :  { %3729 = vperm.xlu0 %4786, %v3498_v43   ;;  %3726 = vperm.xlu1 %4787, %v3497_v63   ;;  %v3348_v50 = vrot.slane %v7375_v32, %v8314_v55  ;;  %v3362_v8 = vrot.slane %v7381_v37, %v8312_v33  ;;  %v3358_v24 = vrot.slane %v7383_v10, %v8313_v27 }
 0x32b   :  { %v3506_v32 = vsub.f32 %v5810_v23, %v7095_v61  ;;  %v3505_v37 = vsub.f32 %v5814_v44, %v7095_v61  ;;  %v3297_v10 = vsel %vm1139_vm3, %v3296_v57, %v3292_v7 }
 0x32d   :  { %v7397_v43 = vpop.permute.xlu0 %3082  ;;  %v3080_v63 = vpop.permute.xlu1 %3079 }
 0x32e   :  { %3735 = vperm.xlu0 %4786, %v3500_v1   ;;  %3732 = vperm.xlu1 %4787, %v3499_v2   ;;  %v3504_v2 = vsub.f32 %v5791_v36, %v7095_v61  ;;  %v3329_v1 = vrot.slane %v3056_v47, %v8314_v55  ;;  %v3315_v47 = vrot.slane %v7343_v15, %v8318_v41 }
 0x32f   :  { %v3325_v36 = vsel %vm1125_vm1, %v3324_v34, %v3320_v4  ;;  %v3367_v9 = vrot.slane %v3080_v63, %v8314_v55  ;;  %v3372_v34 = vrot.slane %v7397_v43, %v8318_v41 }
 0x330   :  { %v3330_v54 = vsel %vm1132_vm2, %v3329_v1, %v3325_v36  ;;  %v3278_v36 = vsel %vm1139_vm3, %v3277_v35, %v3273_v5  ;;  %v3316_v63 = vsel %vm1139_vm3, %v3315_v47, %v3311_v19  ;;  %v3508_v47 = vsub.f32 %v5825_v14, %v7095_v61 }
 0x331   :  { %v3089_v40 = vpop.permute.xlu0 %3088  ;;  %v3086_v51 = vpop.permute.xlu1 %3085  ;;  %v3507_v19 = vsub.f32 %v5827_v22, %v7095_v61 }
 0x332   :  { %3741 = vperm.xlu0 %4786, %v3502_v45   ;;  %3738 = vperm.xlu1 %4787, %v3501_v42   ;;  %v3339_v45 = vrot.slane %v7367_v53, %v8313_v27  ;;  %v3381_v58 = vrot.slane %v3089_v40, %v8312_v33  ;;  %v3377_v21 = vrot.slane %v3086_v51, %v8313_v27 }
 0x333   :  { %v3353_v51 = vrot.slane %v7373_v60, %v8318_v41  ;;  %v3363_v40 = vsel %vm1125_vm1, %v3362_v8, %v3358_v24  ;;  %v3419_v60 = vsel %vm1426_vm4, %v3297_v10, %v3278_v36  ;;  %v3509_v36 = vsub.f32 %v5835_v62, %v7095_v61 }
 0x334   :  { %v3344_v20 = vsel %vm1125_vm1, %v3343_v0, %v3339_v45  ;;  %v3382_v29 = vsel %vm1125_vm1, %v3381_v58, %v3377_v21  ;;  %v3420_v43 = vsel %vm1428_vm5, %v3316_v63, %v3419_v60  ;;  %v3510_v21 = vsub.f32 %v5833_v18, %v7095_v61  ;;  %v8483_v60 = vld [vmem:[#allocation32_spill] sm:$0xff] }
 0x335   :  { %v3095_v15 = vpop.permute.xlu0 %3094  ;;  %v3092_v48 = vpop.permute.xlu1 %3091  ;;  %v3349_v28 = vsel %vm1132_vm2, %v3348_v50, %v3344_v20  ;;  %v7503_v61 = vstv %s4779_s15 }
 0x336   :  { %3747 = vperm.xlu0 %4786, %v3504_v2   ;;  %3744 = vperm.xlu1 %4787, %v3503_v38   ;;  %v3386_v53 = vrot.slane %v3092_v48, %v8314_v55  ;;  %v3335_v38 = vsel %vm1139_vm3, %v3334_v39, %v3330_v54  ;;  %v3368_v2 = vsel %vm1132_vm2, %v3367_v9, %v3363_v40 }
 0x337   :  { %v3391_v35 = vrot.slane %v3095_v15, %v8318_v41  ;;  %v3354_v7 = vsel %vm1139_vm3, %v3353_v51, %v3349_v28  ;;  %v3421_v39 = vsel %vm1430_vm6, %v3335_v38, %v3420_v43  ;;  %v3373_v0 = vsel %vm1139_vm3, %v3372_v34, %v3368_v2 }
 0x338   :  { %v3387_v1 = vsel %vm1132_vm2, %v3386_v53, %v3382_v29  ;;  %v3422_v15 = vsel %vm1432_vm7, %v3354_v7, %v3421_v39  ;;  %v4107_v38 = vsub.f32 %v5116_v6, %v7503_v61  ;;  %v4106_v28 = vsub.f32 %v5118_v3, %v7503_v61  ;;  %v8481_v6 = vld [vmem:[#allocation30_spill] sm:$0xff] }
 0x339   :  { %v3101_v4 = vpop.permute.xlu0 %3100  ;;  %v3098_v42 = vpop.permute.xlu1 %3097  ;;  %v3392_v50 = vsel %vm1139_vm3, %v3391_v35, %v3387_v1  ;;  %v3423_v58 = vsel %vm1434_vm8, %v3373_v0, %v3422_v15  ;;  %v4111_v3 = vsub.f32 %v8436_v26, %v7503_v61  ;;  %v4110_v2 = vsub.f32 %v8481_v6, %v7503_v61  ;;  %v8484_v26 = vld [vmem:[#allocation33_spill] sm:$0xff]  ;;  %v8485_v7 = vld [vmem:[#allocation34_spill] sm:$0xff]  ;;  %v8487_v15 = vld [vmem:[#allocation36_spill] sm:$0xff] }
 0x33a   :  { %3753 = vperm.xlu0 %4786, %v3506_v32   ;;  %3750 = vperm.xlu1 %4787, %v3505_v37   ;;  %v3400_v5 = vrot.slane %v3101_v4, %v8312_v33  ;;  %v3396_v57 = vrot.slane %v3098_v42, %v8313_v27  ;;  %v3424_v37 = vsel %vm1436_vm9, %v3392_v50, %v3423_v58  ;;  %v4792_v0 = vld [vmem:[%s8062_s2 + $0x8] sm:$0xff] }
 0x33b   :  { %v4109_v4 = vsub.f32 %v5128_v31, %v7503_v61  ;;  %v8482_v31 = vld [vmem:[#allocation31_spill] sm:$0xff]  ;;  %v4112_v1 = vsub.f32 %v8483_v60, %v7503_v61  ;;  %v4115_v43 = vsub.f32 %v8484_v26, %v7503_v61  ;;  %v8492_v6 = vld [vmem:[#allocation41_spill] sm:$0xff] }
 0x33c   :  { %v3401_v48 = vsel %vm1125_vm1, %v3400_v5, %v3396_v57  ;;  %v8494_v26 = vld [vmem:[#allocation43_spill] sm:$0xff] }
 0x33d   :  { %v3107_v45 = vpop.permute.xlu0 %3106  ;;  %v3104_v54 = vpop.permute.xlu1 %3103 }
 0x33e   :  { %v3410_v8 = vrot.slane %v3107_v45, %v8318_v41  ;;  %v3405_v24 = vrot.slane %v3104_v54, %v8314_v55  ;;  %3759 = vperm.xlu0 %4786, %v3508_v47   ;;  %3756 = vperm.xlu1 %4787, %v3507_v19   ;;  %v4114_v47 = vsub.f32 %v8485_v7, %v7503_v61  ;;  %v4793_v54 = vld [vmem:[%s8062_s2] sm:$0xff]  ;;  %s4835_s2 = smov [#allocation5]  }
 0x33f   :  { %v7553_v45 = vsub.f32 %v4792_v0, %v7503_v61  ;;  %v7559_v50 = vsub.f32 %v4793_v54, %v7503_v61  ;;  %v8495_v7 = vld [vmem:[#allocation44_spill] sm:$0xff]  ;;  %s4763_s3 = sshll.u32 %s4835_s2, 4  ;;  %s4764_s3 = int_to_ptr.vmem [resolvable:$true] %s4763_s3 }
 0x340   :  { %v3406_v9 = vsel %vm1132_vm2, %v3405_v24, %v3401_v48  ;;  %v4116_v48 = vsub.f32 %v8487_v15, %v7503_v61  ;;  %v8497_v15 = vld [vmem:[#allocation46_spill] sm:$0xff]  ;;  %s4806_s20 = scalar_lea.vmem %s4764_s3, 1536  ;;  %p4811_p6 = scmp.lt.s32.totalorder %s4764_s3, %s4764_s3 }
 0x341   :  { %v3435_v53 = vpop.permute.xlu0 %3434  ;;  %v3411_v32 = vsel %vm1139_vm3, %v3410_v8, %v3406_v9  ;;  %v3433_v10 = vpop.permute.xlu1 %3432  ;;  %v8486_v8 = vld [vmem:[#allocation35_spill] sm:$0xff]  ;;  %4105 = vst.msk [vmem:[#allocation5 + $0x58] sm:$0xff] %vm790_vm0, %v7553_v45  ;;  %4104 = vst.msk [vmem:[#allocation5 + $0x50] sm:$0xff] %vm790_vm0, %v7559_v50  ;;  %p4807_p5 = scmp.ne.s32.totalorder %s4764_s3, %s4806_s20  ;;  %p4812_p7 = scmp.lt.s32.totalorder %s4806_s20, %s4806_s20 }
 0x342   :  { %v3425_v63 = vsel %vm1438_vm10, %v3411_v32, %v3424_v37  ;;  %3438 = vst.msk [vmem:[#allocation5 + $0x30] sm:$0xff] %vm1460_vm12, %v3433_v10  ;;  %3765 = vperm.xlu0 %4786, %v3510_v21   ;;  %3762 = vperm.xlu1 %4787, %v3509_v36   ;;  %v4117_v24 = vsub.f32 %v8486_v8, %v7503_v61  ;;  %v8488_v21 = vld [vmem:[#allocation37_spill] sm:$0xff] }
 0x343   :  { %3429 = vst.msk [vmem:[#allocation5 + $0x38] sm:$0xff] %vm1449_vm11, %v3425_v63  ;;  %v4119_v36 = vsub.f32 %v8488_v21, %v7503_v61  ;;  %v8490_v63 = vld [vmem:[#allocation39_spill] sm:$0xff]  ;;  %v8496_v8 = vld [vmem:[#allocation45_spill] sm:$0xff]  ;;  %p4813_p8 = por %p4812_p7, %p4811_p6 }
 0x344   :  { %3439 = vst.msk [vmem:[#allocation5 + $0x38] sm:$0xff] %vm1460_vm12, %v3435_v53  ;;  %v8489_v53 = vld [vmem:[#allocation38_spill] sm:$0xff] }
 0x345   :  { %v7499_v20 = vpop.permute.xlu0 %3579  ;;  %v7501_v51 = vpop.permute.xlu1 %3576  ;;  %v4118_v32 = vsub.f32 %v8489_v53, %v7503_v61  ;;  %p4814_p9 = pnand %p4813_p8, %p4807_p5 }
 0x346   :  { %4093 = vrot.lane.b32.xlu0 %v7115_v11, %s4834_s29  ;;  %4091 = vrot.lane.b32.xlu1 %v7119_v13, %s4834_s29  ;;  %v4108_v11 = vsub.f32 %v8300_v30, %v7503_v61  ;;  %v4113_v30 = vsub.f32 %v8482_v31, %v7503_v61  ;;  %v8493_v31 = vld [vmem:[#allocation42_spill] sm:$0xff]  ;;  %v3774_v21 = vrot.slane %v7499_v20, %v8312_v33 }
 0x349   :  { %v7513_v40 = vpop.permute.xlu0 %3585  ;;  %v7515_v34 = vpop.permute.xlu1 %3582 }
 0x34a   :  { %4238 = vperm.xlu0 %4786, %v4107_v38   ;;  %4235 = vperm.xlu1 %4787, %v4106_v28   ;;  %v4121_v38 = vsub.f32 %v8490_v63, %v7503_v61  ;;  %v8491_v28 = vld [vmem:[#allocation40_spill] sm:$0xff]  ;;  %v3779_v53 = vrot.slane %v7515_v34, %v8314_v55 }
 0x34d   :  { %v7521_v42 = vpop.permute.xlu0 %3591  ;;  %v7523_v13 = vpop.permute.xlu1 %3588 }
 0x34e   :  { %4244 = vperm.xlu0 %4786, %v4109_v4   ;;  %4241 = vperm.xlu1 %4787, %v4108_v11   ;;  %v4120_v4 = vsub.f32 %v8491_v28, %v7503_v61  ;;  %v3789_v28 = vrot.slane %v7523_v13, %v8313_v27 }
 0x351   :  { %v7529_v29 = vpop.permute.xlu0 %3597  ;;  %v7531_v35 = vpop.permute.xlu1 %3594 }
 0x352   :  { %4250 = vperm.xlu0 %4786, %v4111_v3   ;;  %4247 = vperm.xlu1 %4787, %v4110_v2   ;;  %v4123_v2 = vsub.f32 %v8492_v6, %v7503_v61 }
 0x355   :  { %v7537_v5 = vpop.permute.xlu0 %3603  ;;  %v7539_v57 = vpop.permute.xlu1 %3600 }
 0x356   :  { %4256 = vperm.xlu0 %4786, %v4113_v30   ;;  %4253 = vperm.xlu1 %4787, %v4112_v1   ;;  %v4122_v30 = vsub.f32 %v8493_v31, %v7503_v61  ;;  %v3808_v20 = vrot.slane %v7539_v57, %v8313_v27  ;;  %v4131_v31 = vsub.f32 %v8317_v46, %v7503_v61 }
 0x357   :  { %v3803_v46 = vrot.slane %v7529_v29, %v8318_v41 }
 0x359   :  { %v7545_v19 = vpop.permute.xlu0 %3609  ;;  %v7547_v39 = vpop.permute.xlu1 %3606 }
 0x35a   :  { %4262 = vperm.xlu0 %4786, %v4115_v43   ;;  %4259 = vperm.xlu1 %4787, %v4114_v47   ;;  %v4125_v43 = vsub.f32 %v8494_v26, %v7503_v61  ;;  %v4124_v47 = vsub.f32 %v8495_v7, %v7503_v61  ;;  %v3817_v34 = vrot.slane %v7547_v39, %v8314_v55 }
 0x35b   :  { %v3784_v39 = vrot.slane %v7513_v40, %v8318_v41 }
 0x35d   :  { %v7567_v9 = vpop.permute.xlu0 %3615  ;;  %v7569_v58 = vpop.permute.xlu1 %3612 }
 0x35e   :  { %4268 = vperm.xlu0 %4786, %v4117_v24   ;;  %4265 = vperm.xlu1 %4787, %v4116_v48   ;;  %v4127_v24 = vsub.f32 %v8496_v8, %v7503_v61  ;;  %v4126_v48 = vsub.f32 %v8497_v15, %v7503_v61  ;;  %v3831_v13 = vrot.slane %v7567_v9, %v8312_v33  ;;  %v8500_v9 = vld [vmem:[#allocation48_spill] sm:$0xff] }
 0x35f   :  { %v4130_v7 = vsub.f32 %v8500_v9, %v7503_v61  ;;  %v4135_v9 = vsub.f32 %v8322_v12, %v7503_v61 }
 0x361   :  { %v7577_v37 = vpop.permute.xlu0 %3621  ;;  %v3619_v10 = vpop.permute.xlu1 %3618 }
 0x362   :  { %4274 = vperm.xlu0 %4786, %v4119_v36   ;;  %4271 = vperm.xlu1 %4787, %v4118_v32   ;;  %v3770_v36 = vrot.slane %v7501_v51, %v8313_v27  ;;  %v3793_v32 = vrot.slane %v7521_v42, %v8312_v33  ;;  %v3798_v51 = vrot.slane %v7531_v35, %v8314_v55  ;;  %v8498_v42 = vld [vmem:[#allocation17_spill] sm:$0xff] }
 0x363   :  { %v4129_v6 = vsub.f32 %v8498_v42, %v7503_v61 }
 0x364   :  { %v3775_v35 = vsel %vm1125_vm1, %v3774_v21, %v3770_v36 }
 0x365   :  { %v7583_v11 = vpop.permute.xlu0 %3627  ;;  %v7585_v3 = vpop.permute.xlu1 %3624 }
 0x366   :  { %4280 = vperm.xlu0 %4786, %v4121_v38   ;;  %4277 = vperm.xlu1 %4787, %v4120_v4   ;;  %v3812_v4 = vrot.slane %v7537_v5, %v8312_v33  ;;  %v3827_v5 = vrot.slane %v7569_v58, %v8313_v27  ;;  %v3780_v58 = vsel %vm1132_vm2, %v3779_v53, %v3775_v35 }
 0x367   :  { %v3850_v21 = vrot.slane %v7583_v11, %v8312_v33  ;;  %v3846_v36 = vrot.slane %v7585_v3, %v8313_v27  ;;  %v3785_v3 = vsel %vm1139_vm3, %v3784_v39, %v3780_v58 }
 0x368   :  { %v3813_v8 = vsel %vm1125_vm1, %v3812_v4, %v3808_v20  ;;  %v3832_v15 = vsel %vm1125_vm1, %v3831_v13, %v3827_v5 }
 0x369   :  { %v7591_v60 = vpop.permute.xlu0 %3633  ;;  %v7593_v1 = vpop.permute.xlu1 %3630 }
 0x36a   :  { %4286 = vperm.xlu0 %4786, %v4123_v2   ;;  %4283 = vperm.xlu1 %4787, %v4122_v30   ;;  %v8499_v2 = vld [vmem:[#allocation47_spill] sm:$0xff]  ;;  %v3836_v30 = vrot.slane %v3619_v10, %v8314_v55  ;;  %v3822_v10 = vrot.slane %v7545_v19, %v8318_v41  ;;  %v3855_v53 = vrot.slane %v7593_v1, %v8314_v55 }
 0x36b   :  { %v4128_v57 = vsub.f32 %v8499_v2, %v7503_v61  ;;  %v3860_v42 = vrot.slane %v7591_v60, %v8318_v41 }
 0x36c   :  { %v3837_v29 = vsel %vm1132_vm2, %v3836_v30, %v3832_v15 }
 0x36d   :  { %v7599_v0 = vpop.permute.xlu0 %3639  ;;  %v7601_v54 = vpop.permute.xlu1 %3636 }
 0x36e   :  { %4292 = vperm.xlu0 %4786, %v4125_v43   ;;  %4289 = vperm.xlu1 %4787, %v4124_v47   ;;  %v3794_v47 = vsel %vm1125_vm1, %v3793_v32, %v3789_v28  ;;  %v3869_v19 = vrot.slane %v7599_v0, %v8312_v33  ;;  %v3865_v32 = vrot.slane %v7601_v54, %v8313_v27 }
 0x36f   :  { %v3799_v40 = vsel %vm1132_vm2, %v3798_v51, %v3794_v47  ;;  %v4133_v0 = vsub.f32 %v8320_v17, %v7503_v61  ;;  %v4132_v54 = vsub.f32 %v8321_v25, %v7503_v61 }
 0x370   :  { %v3804_v51 = vsel %vm1139_vm3, %v3803_v46, %v3799_v40  ;;  %v3870_v5 = vsel %vm1125_vm1, %v3869_v19, %v3865_v32 }
 0x371   :  { %v7615_v63 = vpop.permute.xlu0 %3645  ;;  %v3643_v38 = vpop.permute.xlu1 %3642  ;;  %v4071_v60 = vsel %vm1426_vm4, %v3804_v51, %v3785_v3 }
 0x372   :  { %4298 = vperm.xlu0 %4786, %v4127_v24   ;;  %4295 = vperm.xlu1 %4787, %v4126_v48   ;;  %v3818_v24 = vsel %vm1132_vm2, %v3817_v34, %v3813_v8  ;;  %v3841_v48 = vrot.slane %v7577_v37, %v8318_v41  ;;  %v3874_v37 = vrot.slane %v3643_v38, %v8314_v55 }
 0x373   :  { %v3823_v38 = vsel %vm1139_vm3, %v3822_v10, %v3818_v24  ;;  %v3851_v34 = vsel %vm1125_vm1, %v3850_v21, %v3846_v36  ;;  %v3879_v17 = vrot.slane %v7615_v63, %v8318_v41  ;;  %v4136_v21 = vsub.f32 %v8325_v59, %v7503_v61  ;;  %v8501_v59 = vld [vmem:[#allocation21_spill] sm:$0xff] }
 0x374   :  { %v3856_v13 = vsel %vm1132_vm2, %v3855_v53, %v3851_v34  ;;  %v4072_v63 = vsel %vm1428_vm5, %v3823_v38, %v4071_v60  ;;  %v8505_v34 = vld [vmem:[#allocation27_spill] sm:$0xff] }
 0x375   :  { %v3652_v26 = vpop.permute.xlu0 %3651  ;;  %v3649_v43 = vpop.permute.xlu1 %3648 }
 0x376   :  { %4304 = vperm.xlu0 %4786, %v4129_v6   ;;  %4301 = vperm.xlu1 %4787, %v4128_v57   ;;  %v3888_v11 = vrot.slane %v3652_v26, %v8312_v33  ;;  %v3884_v20 = vrot.slane %v3649_v43, %v8313_v27  ;;  %v3842_v6 = vsel %vm1139_vm3, %v3841_v48, %v3837_v29 }
 0x377   :  { %v3875_v57 = vsel %vm1132_vm2, %v3874_v37, %v3870_v5  ;;  %v3861_v43 = vsel %vm1139_vm3, %v3860_v42, %v3856_v13  ;;  %v4073_v58 = vsel %vm1430_vm6, %v3842_v6, %v4072_v63  ;;  %v4137_v48 = vsub.f32 %v8324_v16, %v7503_v61  ;;  %v8506_v5 = vld [vmem:[#allocation22_spill] sm:$0xff] }
 0x378   :  { %v3880_v47 = vsel %vm1139_vm3, %v3879_v17, %v3875_v57  ;;  %v4074_v15 = vsel %vm1432_vm7, %v3861_v43, %v4073_v58  ;;  %v4139_v16 = vsub.f32 %v8326_v49, %v7503_v61  ;;  %v8504_v49 = vld [vmem:[#allocation50_spill] sm:$0xff]  ;;  %v4142_v42 = vsub.f32 %v8505_v34, %v7503_v61  ;;  %v8510_v43 = vld [vmem:[#allocation13_spill] sm:$0xff] }
 0x379   :  { %v3658_v28 = vpop.permute.xlu0 %3657  ;;  %v3655_v4 = vpop.permute.xlu1 %3654  ;;  %v4075_v36 = vsel %vm1434_vm8, %v3880_v47, %v4074_v15  ;;  %v4143_v38 = vsub.f32 %v8504_v49, %v7503_v61  ;;  %v4145_v17 = vsub.f32 %v8506_v5, %v7503_v61  ;;  %v8519_v49 = vld [vmem:[#allocation60_spill] sm:$0xff]  ;;  %v8520_v5 = vld [vmem:[#allocation59_spill] sm:$0xff] }
 0x37a   :  { %4310 = vperm.xlu0 %4786, %v4131_v31   ;;  %4307 = vperm.xlu1 %4787, %v4130_v7   ;;  %v3893_v1 = vrot.slane %v3655_v4, %v8314_v55  ;;  %v3889_v31 = vsel %vm1125_vm1, %v3888_v11, %v3884_v20  ;;  %v3898_v35 = vrot.slane %v3658_v28, %v8318_v41  ;;  %v8502_v20 = vld [vmem:[#allocation24_spill] sm:$0xff] }
 0x37b   :  { %v4134_v7 = vsub.f32 %v8323_v52, %v7503_v61  ;;  %v4138_v4 = vsub.f32 %v8501_v59, %v7503_v61  ;;  %v4141_v3 = vsub.f32 %v8502_v20, %v7503_v61  ;;  %v8517_v59 = vld [vmem:[#allocation57_spill] sm:$0xff] }
 0x37c   :  { %v3894_v39 = vsel %vm1132_vm2, %v3893_v1, %v3889_v31  ;;  %v8503_v1 = vld [vmem:[#allocation26_spill] sm:$0xff] }
 0x37d   :  { %v3664_v2 = vpop.permute.xlu0 %3663  ;;  %v3661_v25 = vpop.permute.xlu1 %3660  ;;  %v3899_v40 = vsel %vm1139_vm3, %v3898_v35, %v3894_v39  ;;  %v8508_v35 = vld [vmem:[#allocation52_spill] sm:$0xff]  ;;  %v8509_v39 = vld [vmem:[#allocation25_spill] sm:$0xff] }
 0x37e   :  { %4316 = vperm.xlu0 %4786, %v4133_v0   ;;  %4313 = vperm.xlu1 %4787, %v4132_v54   ;;  %v3907_v30 = vrot.slane %v3664_v2, %v8312_v33  ;;  %v3903_v26 = vrot.slane %v3661_v25, %v8313_v27  ;;  %v4076_v32 = vsel %vm1436_vm9, %v3899_v40, %v4075_v36  ;;  %v8507_v2 = vld [vmem:[#allocation51_spill] sm:$0xff] }
 0x37f   :  { %v4140_v0 = vsub.f32 %v8503_v1, %v7503_v61  ;;  %v4144_v25 = vsub.f32 %v8507_v2, %v7503_v61  ;;  %v4147_v60 = vsub.f32 %v8508_v35, %v7503_v61  ;;  %v8518_v1 = vld [vmem:[#allocation62_spill] sm:$0xff]  ;;  %v8521_v2 = vld [vmem:[#allocation61_spill] sm:$0xff] }
 0x380   :  { %v3908_v12 = vsel %vm1125_vm1, %v3907_v30, %v3903_v26  ;;  %v4146_v30 = vsub.f32 %v8509_v39, %v7503_v61 }
 0x381   :  { %v3670_v8 = vpop.permute.xlu0 %3669  ;;  %v3667_v46 = vpop.permute.xlu1 %3666 }
 0x382   :  { %v3917_v10 = vrot.slane %v3670_v8, %v8318_v41  ;;  %v3912_v24 = vrot.slane %v3667_v46, %v8314_v55  ;;  %4322 = vperm.xlu0 %4786, %v4135_v9   ;;  %4319 = vperm.xlu1 %4787, %v4134_v7   ;;  %v4149_v9 = vsub.f32 %v8510_v43, %v7503_v61  ;;  %v8511_v7 = vld [vmem:[#allocation14_spill] sm:$0xff]  ;;  %v8512_v46 = vld [vmem:[#allocation53_spill] sm:$0xff] }
 0x383   :  { %v4148_v58 = vsub.f32 %v8511_v7, %v7503_v61  ;;  %v4151_v40 = vsub.f32 %v8512_v46, %v7503_v61  ;;  %v8522_v46 = vld [vmem:[#allocation64_spill] sm:$0xff] }
 0x384   :  { %v3913_v52 = vsel %vm1132_vm2, %v3912_v24, %v3908_v12 }
 0x385   :  { %v7711_v29 = vpop.permute.xlu0 %3675  ;;  %v7713_v53 = vpop.permute.xlu1 %3672  ;;  %v3918_v19 = vsel %vm1139_vm3, %v3917_v10, %v3913_v52  ;;  %v8513_v10 = vld [vmem:[#allocation54_spill] sm:$0xff] }
 0x386   :  { %4328 = vperm.xlu0 %4786, %v4137_v48   ;;  %4325 = vperm.xlu1 %4787, %v4136_v21   ;;  %v4077_v28 = vsel %vm1438_vm10, %v3918_v19, %v4076_v32  ;;  %v4150_v24 = vsub.f32 %v8513_v10, %v7503_v61  ;;  %v8514_v52 = vld [vmem:[#allocation58_spill] sm:$0xff]  ;;  %v8515_v21 = vld [vmem:[#allocation56_spill] sm:$0xff]  ;;  %v3926_v35 = vrot.slane %v7711_v29, %v8312_v33 }
 0x387   :  { %4087 = vst.msk [vmem:[#allocation5 + $0x40] sm:$0xff] %vm1449_vm11, %v4077_v28  ;;  %v4154_v48 = vsub.f32 %v8514_v52, %v7503_v61  ;;  %v4152_v36 = vsub.f32 %v8515_v21, %v7503_v61  ;;  %v8516_v28 = vld [vmem:[#allocation55_spill] sm:$0xff] }
 0x389   :  { %v7723_v37 = vpop.permute.xlu0 %3681  ;;  %v7725_v11 = vpop.permute.xlu1 %3678 }
 0x38a   :  { %4334 = vperm.xlu0 %4786, %v4139_v16   ;;  %4331 = vperm.xlu1 %4787, %v4138_v4   ;;  %v4153_v16 = vsub.f32 %v8516_v28, %v7503_v61  ;;  %v4155_v4 = vsub.f32 %v8517_v59, %v7503_v61  ;;  %v3931_v39 = vrot.slane %v7725_v11, %v8314_v55 }
 0x38d   :  { %v7731_v54 = vpop.permute.xlu0 %3687  ;;  %v7733_v51 = vpop.permute.xlu1 %3684 }
 0x38e   :  { %4340 = vperm.xlu0 %4786, %v4141_v3   ;;  %4337 = vperm.xlu1 %4787, %v4140_v0   ;;  %v4158_v0 = vsub.f32 %v8518_v1, %v7503_v61  ;;  %v3941_v7 = vrot.slane %v7733_v51, %v8313_v27 }
 0x391   :  { %v7739_v6 = vpop.permute.xlu0 %3693  ;;  %v7741_v13 = vpop.permute.xlu1 %3690 }
 0x392   :  { %4346 = vperm.xlu0 %4786, %v4143_v38   ;;  %4343 = vperm.xlu1 %4787, %v4142_v42   ;;  %v4156_v38 = vsub.f32 %v8519_v49, %v7503_v61  ;;  %v3955_v28 = vrot.slane %v7739_v6, %v8318_v41 }
 0x395   :  { %v7747_v57 = vpop.permute.xlu0 %3699  ;;  %v7749_v31 = vpop.permute.xlu1 %3696 }
 0x396   :  { %4352 = vperm.xlu0 %4786, %v4145_v17   ;;  %4349 = vperm.xlu1 %4787, %v4144_v25   ;;  %v4157_v17 = vsub.f32 %v8520_v5, %v7503_v61  ;;  %v4159_v25 = vsub.f32 %v8521_v2, %v7503_v61  ;;  %v3960_v29 = vrot.slane %v7749_v31, %v8313_v27 }
 0x397   :  { %v4160_v31 = vsub.f32 %v8522_v46, %v7503_v61 }
 0x399   :  { %v7755_v26 = vpop.permute.xlu0 %3705  ;;  %v7757_v63 = vpop.permute.xlu1 %3702 }
 0x39a   :  { %4358 = vperm.xlu0 %4786, %v4147_v60   ;;  %4355 = vperm.xlu1 %4787, %v4146_v30   ;;  %v3922_v60 = vrot.slane %v7713_v53, %v8313_v27  ;;  %v3945_v30 = vrot.slane %v7731_v54, %v8312_v33  ;;  %v3950_v53 = vrot.slane %v7741_v13, %v8314_v55 }
 0x39b   :  { %v3969_v11 = vrot.slane %v7757_v63, %v8314_v55  ;;  %v4162_v54 = vsub.f32 %v8480_v56, %v7503_v61  ;;  %v3936_v63 = vrot.slane %v7723_v37, %v8318_v41 }
 0x39c   :  { %v3927_v13 = vsel %vm1125_vm1, %v3926_v35, %v3922_v60  ;;  %v3946_v21 = vsel %vm1125_vm1, %v3945_v30, %v3941_v7 }
 0x39d   :  { %v7763_v47 = vpop.permute.xlu0 %3711  ;;  %v7765_v8 = vpop.permute.xlu1 %3708  ;;  %v3951_v37 = vsel %vm1132_vm2, %v3950_v53, %v3946_v21  ;;  %v4169_v21 = vsub.f32 %v5833_v18, %v7503_v61 }
 0x39e   :  { %4364 = vperm.xlu0 %4786, %v4149_v9   ;;  %4361 = vperm.xlu1 %4787, %v4148_v58   ;;  %v3964_v58 = vrot.slane %v7747_v57, %v8312_v33  ;;  %v3983_v51 = vrot.slane %v7763_v47, %v8312_v33  ;;  %v3979_v57 = vrot.slane %v7765_v8, %v8313_v27  ;;  %v8524_v47 = vld [vmem:[#allocation65_spill] sm:$0xff] }
 0x39f   :  { %v3932_v8 = vsel %vm1132_vm2, %v3931_v39, %v3927_v13 }
 0x3a0   :  { %v3984_v59 = vsel %vm1125_vm1, %v3983_v51, %v3979_v57 }
 0x3a1   :  { %v7771_v15 = vpop.permute.xlu0 %3717  ;;  %v3715_v12 = vpop.permute.xlu1 %3714 }
 0x3a2   :  { %4370 = vperm.xlu0 %4786, %v4151_v40   ;;  %4367 = vperm.xlu1 %4787, %v4150_v24   ;;  %v8523_v40 = vld [vmem:[#allocation63_spill] sm:$0xff]  ;;  %v3988_v24 = vrot.slane %v3715_v12, %v8314_v55  ;;  %v3974_v12 = vrot.slane %v7755_v26, %v8318_v41 }
 0x3a3   :  { %v4161_v10 = vsub.f32 %v8523_v40, %v7503_v61  ;;  %v4167_v40 = vsub.f32 %v5825_v14, %v7503_v61 }
 0x3a4   :  { %v3989_v6 = vsel %vm1132_vm2, %v3988_v24, %v3984_v59 }
 0x3a5   :  { %v7777_v19 = vpop.permute.xlu0 %3723  ;;  %v7779_v32 = vpop.permute.xlu1 %3720 }
 0x3a6   :  { %4379 = vperm.xlu0 %4786, %v4154_v48   ;;  %4373 = vperm.xlu1 %4787, %v4152_v36   ;;  %v4163_v48 = vsub.f32 %v8524_v47, %v7503_v61  ;;  %v3965_v36 = vsel %vm1125_vm1, %v3964_v58, %v3960_v29  ;;  %v4002_v1 = vrot.slane %v7777_v19, %v8312_v33 }
 0x3a9   :  { %v7785_v20 = vpop.permute.xlu0 %3729  ;;  %v7787_v3 = vpop.permute.xlu1 %3726 }
 0x3aa   :  { %4376 = vperm.xlu0 %4786, %v4153_v16   ;;  %4382 = vperm.xlu1 %4787, %v4155_v4   ;;  %v3970_v16 = vsel %vm1132_vm2, %v3969_v11, %v3965_v36  ;;  %v3993_v4 = vrot.slane %v7771_v15, %v8318_v41  ;;  %v4007_v49 = vrot.slane %v7787_v3, %v8314_v55 }
 0x3ab   :  { %v3975_v35 = vsel %vm1139_vm3, %v3974_v12, %v3970_v16  ;;  %v4012_v39 = vrot.slane %v7785_v20, %v8318_v41  ;;  %v4168_v36 = vsub.f32 %v5835_v62, %v7503_v61 }
 0x3ac   :  { %v3994_v30 = vsel %vm1139_vm3, %v3993_v4, %v3989_v6 }
 0x3ad   :  { %v7793_v34 = vpop.permute.xlu0 %3735  ;;  %v7795_v42 = vpop.permute.xlu1 %3732 }
 0x3ae   :  { %4391 = vperm.xlu0 %4786, %v4158_v0   ;;  %4385 = vperm.xlu1 %4787, %v4156_v38   ;;  %v3998_v0 = vrot.slane %v7779_v32, %v8313_v27  ;;  %v4021_v26 = vrot.slane %v7793_v34, %v8312_v33  ;;  %v4017_v38 = vrot.slane %v7795_v42, %v8313_v27 }
 0x3af   :  { %v3937_v32 = vsel %vm1139_vm3, %v3936_v63, %v3932_v8  ;;  %v4166_v34 = vsub.f32 %v5827_v22, %v7503_v61  ;;  %v4164_v42 = vsub.f32 %v5814_v44, %v7503_v61 }
 0x3b0   :  { %v4003_v60 = vsel %vm1125_vm1, %v4002_v1, %v3998_v0  ;;  %v4022_v7 = vsel %vm1125_vm1, %v4021_v26, %v4017_v38 }
 0x3b1   :  { %v7809_v43 = vpop.permute.xlu0 %3741  ;;  %v3739_v9 = vpop.permute.xlu1 %3738 }
 0x3b2   :  { %4388 = vperm.xlu0 %4786, %v4157_v17   ;;  %4394 = vperm.xlu1 %4787, %v4159_v25   ;;  %v4026_v15 = vrot.slane %v3739_v9, %v8314_v55  ;;  %v3956_v25 = vsel %vm1139_vm3, %v3955_v28, %v3951_v37  ;;  %v4008_v9 = vsel %vm1132_vm2, %v4007_v49, %v4003_v60 }
 0x3b3   :  { %v4031_v22 = vrot.slane %v7809_v43, %v8318_v41  ;;  %v4078_v20 = vsel %vm1426_vm4, %v3956_v25, %v3937_v32  ;;  %v4013_v46 = vsel %vm1139_vm3, %v4012_v39, %v4008_v9 }
 0x3b4   :  { %v4027_v29 = vsel %vm1132_vm2, %v4026_v15, %v4022_v7  ;;  %v4079_v43 = vsel %vm1428_vm5, %v3975_v35, %v4078_v20 }
 0x3b5   :  { %v3748_v56 = vpop.permute.xlu0 %3747  ;;  %v3745_v52 = vpop.permute.xlu1 %3744  ;;  %v4032_v13 = vsel %vm1139_vm3, %v4031_v22, %v4027_v29 }
 0x3b6   :  { %4403 = vperm.xlu0 %4786, %v4162_v54   ;;  %4397 = vperm.xlu1 %4787, %v4160_v31   ;;  %v4040_v19 = vrot.slane %v3748_v56, %v8312_v33  ;;  %v4036_v2 = vrot.slane %v3745_v52, %v8313_v27  ;;  %v4165_v31 = vsub.f32 %v5810_v23, %v7503_v61 }
 0x3b8   :  { %v4041_v53 = vsel %vm1125_vm1, %v4040_v19, %v4036_v2 }
 0x3b9   :  { %v3754_v5 = vpop.permute.xlu0 %3753  ;;  %v3751_v17 = vpop.permute.xlu1 %3750 }
 0x3ba   :  { %4400 = vperm.xlu0 %4786, %v4161_v10   ;;  %4406 = vperm.xlu1 %4787, %v4163_v48   ;;  %v4045_v3 = vrot.slane %v3751_v17, %v8314_v55  ;;  %v4050_v11 = vrot.slane %v3754_v5, %v8318_v41  ;;  %v4080_v10 = vsel %vm1430_vm6, %v3994_v30, %v4079_v43 }
 0x3bb   :  { %v4081_v48 = vsel %vm1432_vm7, %v4013_v46, %v4080_v10 }
 0x3bc   :  { %v4046_v54 = vsel %vm1132_vm2, %v4045_v3, %v4041_v53  ;;  %v4082_v14 = vsel %vm1434_vm8, %v4032_v13, %v4081_v48 }
 0x3bd   :  { %v3760_v58 = vpop.permute.xlu0 %3759  ;;  %v3757_v44 = vpop.permute.xlu1 %3756  ;;  %v4051_v56 = vsel %vm1139_vm3, %v4050_v11, %v4046_v54 }
 0x3be   :  { %4415 = vperm.xlu0 %4786, %v4166_v34   ;;  %4409 = vperm.xlu1 %4787, %v4164_v42   ;;  %v4059_v51 = vrot.slane %v3760_v58, %v8312_v33  ;;  %v4055_v57 = vrot.slane %v3757_v44, %v8313_v27  ;;  %v4083_v12 = vsel %vm1436_vm9, %v4051_v56, %v4082_v14 }
 0x3c0   :  { %v4060_v23 = vsel %vm1125_vm1, %v4059_v51, %v4055_v57 }
 0x3c1   :  { %v3766_v63 = vpop.permute.xlu0 %3765  ;;  %v3763_v24 = vpop.permute.xlu1 %3762 }
 0x3c2   :  { %v4069_v52 = vrot.slane %v3766_v63, %v8318_v41  ;;  %v4064_v47 = vrot.slane %v3763_v24, %v8314_v55  ;;  %4412 = vperm.xlu0 %4786, %v4165_v31   ;;  %4418 = vperm.xlu1 %4787, %v4167_v40  }
 0x3c4   :  { %v4065_v8 = vsel %vm1132_vm2, %v4064_v47, %v4060_v23 }
 0x3c5   :  { %v4070_v28 = vsel %vm1139_vm3, %v4069_v52, %v4065_v8  ;;  %v4094_v37 = vpop.permute.xlu0 %4093  ;;  %v4092_v16 = vpop.permute.xlu1 %4091 }
 0x3c6   :  { %v4084_v59 = vsel %vm1438_vm10, %v4070_v28, %v4083_v12  ;;  %4097 = vst.msk [vmem:[#allocation5 + $0x40] sm:$0xff] %vm1460_vm12, %v4092_v16  ;;  %4424 = vperm.xlu0 %4786, %v4169_v21   ;;  %4421 = vperm.xlu1 %4787, %v4168_v36  }
 0x3c7   :  { %4088 = vst.msk [vmem:[#allocation5 + $0x48] sm:$0xff] %vm1449_vm11, %v4084_v59 }
 0x3c8   :  { %4098 = vst.msk [vmem:[#allocation5 + $0x48] sm:$0xff] %vm1460_vm12, %v4094_v37 }
 0x3c9   :  { %v4239_v18 = vpop.permute.xlu0 %4238  ;;  %v4236_v4 = vpop.permute.xlu1 %4235 }
 0x3ca   :  { %4752 = vrot.lane.b32.xlu0 %v7553_v45, %s4834_s29  ;;  %4750 = vrot.lane.b32.xlu1 %v7559_v50, %s4834_s29  ;;  %v4433_v35 = vrot.slane %v4239_v18, %v8312_v33  ;;  %v4429_v60 = vrot.slane %v4236_v4, %v8313_v27 }
 0x3cc   :  { %v4434_v44 = vsel %vm1125_vm1, %v4433_v35, %v4429_v60 }
 0x3cd   :  { %v4245_v62 = vpop.permute.xlu0 %4244  ;;  %v4242_v61 = vpop.permute.xlu1 %4241 }
 0x3ce   :  { %v4438_v9 = vrot.slane %v4242_v61, %v8314_v55  ;;  %v4443_v54 = vrot.slane %v4245_v62, %v8318_v41 }
 0x3d0   :  { %v4439_v51 = vsel %vm1132_vm2, %v4438_v9, %v4434_v44 }
 0x3d1   :  { %v4251_v1 = vpop.permute.xlu0 %4250  ;;  %v4248_v0 = vpop.permute.xlu1 %4247  ;;  %v4444_v18 = vsel %vm1139_vm3, %v4443_v54, %v4439_v51 }
 0x3d2   :  { %v4452_v7 = vrot.slane %v4251_v1, %v8312_v33  ;;  %v4448_v22 = vrot.slane %v4248_v0, %v8313_v27 }
 0x3d4   :  { %v4453_v57 = vsel %vm1125_vm1, %v4452_v7, %v4448_v22 }
 0x3d5   :  { %v4257_v6 = vpop.permute.xlu0 %4256  ;;  %v4254_v49 = vpop.permute.xlu1 %4253 }
 0x3d6   :  { %v4457_v58 = vrot.slane %v4254_v49, %v8314_v55  ;;  %v4462_v43 = vrot.slane %v4257_v6, %v8318_v41 }
 0x3d8   :  { %v4458_v10 = vsel %vm1132_vm2, %v4457_v58, %v4453_v57 }
 0x3d9   :  { %v4263_v26 = vpop.permute.xlu0 %4262  ;;  %v4260_v38 = vpop.permute.xlu1 %4259  ;;  %v4463_v1 = vsel %vm1139_vm3, %v4462_v43, %v4458_v10 }
 0x3da   :  { %v4471_v29 = vrot.slane %v4263_v26, %v8312_v33  ;;  %v4467_v53 = vrot.slane %v4260_v38, %v8313_v27 }
 0x3dc   :  { %v4472_v56 = vsel %vm1125_vm1, %v4471_v29, %v4467_v53 }
 0x3dd   :  { %v4269_v5 = vpop.permute.xlu0 %4268  ;;  %v4266_v17 = vpop.permute.xlu1 %4265 }
 0x3de   :  { %v4476_v46 = vrot.slane %v4266_v17, %v8314_v55  ;;  %v4481_v8 = vrot.slane %v4269_v5, %v8318_v41 }
 0x3e0   :  { %v4477_v37 = vsel %vm1132_vm2, %v4476_v46, %v4472_v56 }
 0x3e1   :  { %v4275_v15 = vpop.permute.xlu0 %4274  ;;  %v4272_v19 = vpop.permute.xlu1 %4271  ;;  %v4482_v5 = vsel %vm1139_vm3, %v4481_v8, %v4477_v37 }
 0x3e2   :  { %v4490_v31 = vrot.slane %v4275_v15, %v8312_v33  ;;  %v4486_v40 = vrot.slane %v4272_v19, %v8313_v27 }
 0x3e4   :  { %v4491_v12 = vsel %vm1125_vm1, %v4490_v31, %v4486_v40 }
 0x3e5   :  { %v4281_v2 = vpop.permute.xlu0 %4280  ;;  %v4278_v32 = vpop.permute.xlu1 %4277 }
 0x3e6   :  { %v4495_v13 = vrot.slane %v4278_v32, %v8314_v55  ;;  %v4500_v16 = vrot.slane %v4281_v2, %v8318_v41 }
 0x3e8   :  { %v4496_v4 = vsel %vm1132_vm2, %v4495_v13, %v4491_v12 }
 0x3e9   :  { %v4287_v3 = vpop.permute.xlu0 %4286  ;;  %v4284_v34 = vpop.permute.xlu1 %4283  ;;  %v4501_v2 = vsel %vm1139_vm3, %v4500_v16, %v4496_v4 }
 0x3ea   :  { %v4509_v63 = vrot.slane %v4287_v3, %v8312_v33  ;;  %v4505_v24 = vrot.slane %v4284_v34, %v8313_v27 }
 0x3ec   :  { %v4510_v62 = vsel %vm1125_vm1, %v4509_v63, %v4505_v24 }
 0x3ed   :  { %v7915_v45 = vpop.permute.xlu0 %4292  ;;  %v4290_v42 = vpop.permute.xlu1 %4289 }
 0x3ee   :  { %v4514_v52 = vrot.slane %v4290_v42, %v8314_v55  ;;  %v4519_v61 = vrot.slane %v7915_v45, %v8318_v41  ;;  %v4730_v45 = vsel %vm1426_vm4, %v4463_v1, %v4444_v18 }
 0x3f0   :  { %v4515_v0 = vsel %vm1132_vm2, %v4514_v52, %v4510_v62 }
 0x3f1   :  { %v4299_v50 = vpop.permute.xlu0 %4298  ;;  %v4296_v25 = vpop.permute.xlu1 %4295  ;;  %v4520_v42 = vsel %vm1139_vm3, %v4519_v61, %v4515_v0 }
 0x3f2   :  { %v4528_v47 = vrot.slane %v4299_v50, %v8312_v33  ;;  %v4524_v48 = vrot.slane %v4296_v25, %v8313_v27  ;;  %v4731_v50 = vsel %vm1428_vm5, %v4482_v5, %v4730_v45 }
 0x3f4   :  { %v4529_v6 = vsel %vm1125_vm1, %v4528_v47, %v4524_v48 }
 0x3f5   :  { %v4305_v39 = vpop.permute.xlu0 %4304  ;;  %v4302_v30 = vpop.permute.xlu1 %4301 }
 0x3f6   :  { %v4533_v21 = vrot.slane %v4302_v30, %v8314_v55  ;;  %v4538_v49 = vrot.slane %v4305_v39, %v8318_v41  ;;  %v4732_v39 = vsel %vm1430_vm6, %v4501_v2, %v4731_v50 }
 0x3f7   :  { %v4733_v22 = vsel %vm1432_vm7, %v4520_v42, %v4732_v39 }
 0x3f8   :  { %v4534_v17 = vsel %vm1132_vm2, %v4533_v21, %v4529_v6 }
 0x3f9   :  { %v4311_v11 = vpop.permute.xlu0 %4310  ;;  %v4308_v20 = vpop.permute.xlu1 %4307  ;;  %v4539_v25 = vsel %vm1139_vm3, %v4538_v49, %v4534_v17 }
 0x3fa   :  { %v4547_v36 = vrot.slane %v4311_v11, %v8312_v33  ;;  %v4543_v28 = vrot.slane %v4308_v20, %v8313_v27  ;;  %v4734_v44 = vsel %vm1434_vm8, %v4539_v25, %v4733_v22 }
 0x3fc   :  { %v4548_v15 = vsel %vm1125_vm1, %v4547_v36, %v4543_v28 }
 0x3fd   :  { %v4317_v23 = vpop.permute.xlu0 %4316  ;;  %v4314_v14 = vpop.permute.xlu1 %4313 }
 0x3fe   :  { %v4552_v59 = vrot.slane %v4314_v14, %v8314_v55  ;;  %v4557_v19 = vrot.slane %v4317_v23, %v8318_v41 }
 0x400   :  { %v4553_v32 = vsel %vm1132_vm2, %v4552_v59, %v4548_v15 }
 0x401   :  { %v4323_v26 = vpop.permute.xlu0 %4322  ;;  %v4320_v38 = vpop.permute.xlu1 %4319  ;;  %v4558_v30 = vsel %vm1139_vm3, %v4557_v19, %v4553_v32 }
 0x402   :  { %v4566_v3 = vrot.slane %v4323_v26, %v8312_v33  ;;  %v4562_v34 = vrot.slane %v4320_v38, %v8313_v27  ;;  %v4735_v54 = vsel %vm1436_vm9, %v4558_v30, %v4734_v44 }
 0x404   :  { %v4567_v58 = vsel %vm1125_vm1, %v4566_v3, %v4562_v34 }
 0x405   :  { %v4329_v35 = vpop.permute.xlu0 %4328  ;;  %v4326_v60 = vpop.permute.xlu1 %4325 }
 0x406   :  { %v4576_v9 = vrot.slane %v4329_v35, %v8318_v41  ;;  %v4571_v7 = vrot.slane %v4326_v60, %v8314_v55 }
 0x408   :  { %v4572_v29 = vsel %vm1132_vm2, %v4571_v7, %v4567_v58 }
 0x409   :  { %v4577_v53 = vsel %vm1139_vm3, %v4576_v9, %v4572_v29  ;;  %v4335_v11 = vpop.permute.xlu0 %4334  ;;  %v4332_v20 = vpop.permute.xlu1 %4331 }
 0x40a   :  { %v4736_v51 = vsel %vm1438_vm10, %v4577_v53, %v4735_v54  ;;  %v4585_v59 = vrot.slane %v4335_v11, %v8312_v33  ;;  %v4581_v18 = vrot.slane %v4332_v20, %v8313_v27 }
 0x40b   :  { %4746 = vst.msk [vmem:[#allocation5 + $0x50] sm:$0xff] %vm1449_vm11, %v4736_v51 }
 0x40c   :  { %v4586_v5 = vsel %vm1125_vm1, %v4585_v59, %v4581_v18 }
 0x40d   :  { %v4341_v57 = vpop.permute.xlu0 %4340  ;;  %v4338_v43 = vpop.permute.xlu1 %4337 }
 0x40e   :  { %v4590_v61 = vrot.slane %v4338_v43, %v8314_v55  ;;  %v4595_v17 = vrot.slane %v4341_v57, %v8318_v41 }
 0x410   :  { %v4591_v2 = vsel %vm1132_vm2, %v4590_v61, %v4586_v5 }
 0x411   :  { %v4347_v46 = vpop.permute.xlu0 %4346  ;;  %v4344_v31 = vpop.permute.xlu1 %4343  ;;  %v4596_v60 = vsel %vm1139_vm3, %v4595_v17, %v4591_v2 }
 0x412   :  { %v4604_v4 = vrot.slane %v4347_v46, %v8312_v33  ;;  %v4600_v62 = vrot.slane %v4344_v31, %v8313_v27 }
 0x414   :  { %v4605_v15 = vsel %vm1125_vm1, %v4604_v4, %v4600_v62 }
 0x415   :  { %v4353_v40 = vpop.permute.xlu0 %4352  ;;  %v4350_v10 = vpop.permute.xlu1 %4349 }
 0x416   :  { %v4609_v1 = vrot.slane %v4350_v10, %v8314_v55  ;;  %v4614_v19 = vrot.slane %v4353_v40, %v8318_v41 }
 0x418   :  { %v4610_v32 = vsel %vm1132_vm2, %v4609_v1, %v4605_v15 }
 0x419   :  { %v4359_v13 = vpop.permute.xlu0 %4358  ;;  %v4356_v63 = vpop.permute.xlu1 %4355  ;;  %v4615_v39 = vsel %vm1139_vm3, %v4614_v19, %v4610_v32 }
 0x41a   :  { %v4623_v0 = vrot.slane %v4359_v13, %v8312_v33  ;;  %v4619_v6 = vrot.slane %v4356_v63, %v8313_v27 }
 0x41c   :  { %v4624_v3 = vsel %vm1125_vm1, %v4623_v0, %v4619_v6 }
 0x41d   :  { %v4365_v24 = vpop.permute.xlu0 %4364  ;;  %v4362_v56 = vpop.permute.xlu1 %4361 }
 0x41e   :  { %v4628_v49 = vrot.slane %v4362_v56, %v8314_v55  ;;  %v4633_v34 = vrot.slane %v4365_v24, %v8318_v41 }
 0x420   :  { %v4629_v45 = vsel %vm1132_vm2, %v4628_v49, %v4624_v3 }
 0x421   :  { %v4371_v52 = vpop.permute.xlu0 %4370  ;;  %v4368_v47 = vpop.permute.xlu1 %4367  ;;  %v4634_v7 = vsel %vm1139_vm3, %v4633_v34, %v4629_v45 }
 0x422   :  { %v4642_v42 = vrot.slane %v4371_v52, %v8312_v33  ;;  %v4638_v50 = vrot.slane %v4368_v47, %v8313_v27 }
 0x424   :  { %v4643_v54 = vsel %vm1125_vm1, %v4642_v42, %v4638_v50 }
 0x425   :  { %v4380_v48 = vpop.permute.xlu0 %4379  ;;  %v4374_v23 = vpop.permute.xlu1 %4373 }
 0x426   :  { %v4647_v30 = vrot.slane %v4374_v23, %v8314_v55  ;;  %v4657_v29 = vrot.slane %v4380_v48, %v8313_v27  ;;  %v4737_v48 = vsel %vm1426_vm4, %v4615_v39, %v4596_v60 }
 0x428   :  { %v4648_v40 = vsel %vm1132_vm2, %v4647_v30, %v4643_v54 }
 0x429   :  { %v4377_v14 = vpop.permute.xlu0 %4376  ;;  %v4383_v8 = vpop.permute.xlu1 %4382 }
 0x42a   :  { %v4661_v9 = vrot.slane %v4383_v8, %v8312_v33  ;;  %v4652_v22 = vrot.slane %v4377_v14, %v8318_v41 }
 0x42c   :  { %v4662_v10 = vsel %vm1125_vm1, %v4661_v9, %v4657_v29  ;;  %v4653_v24 = vsel %vm1139_vm3, %v4652_v22, %v4648_v40 }
 0x42d   :  { %v4392_v21 = vpop.permute.xlu0 %4391  ;;  %v4386_v36 = vpop.permute.xlu1 %4385 }
 0x42e   :  { %v4666_v58 = vrot.slane %v4386_v36, %v8314_v55  ;;  %v4676_v51 = vrot.slane %v4392_v21, %v8313_v27  ;;  %v4738_v21 = vsel %vm1428_vm5, %v4634_v7, %v4737_v48 }
 0x430   :  { %v4667_v56 = vsel %vm1132_vm2, %v4666_v58, %v4662_v10 }
 0x431   :  { %v4389_v28 = vpop.permute.xlu0 %4388  ;;  %v4395_v37 = vpop.permute.xlu1 %4394 }
 0x432   :  { %v4680_v44 = vrot.slane %v4395_v37, %v8312_v33  ;;  %v4671_v53 = vrot.slane %v4389_v28, %v8318_v41 }
 0x434   :  { %v4681_v52 = vsel %vm1125_vm1, %v4680_v44, %v4676_v51  ;;  %v4672_v23 = vsel %vm1139_vm3, %v4671_v53, %v4667_v56 }
 0x435   :  { %v4404_v12 = vpop.permute.xlu0 %4403  ;;  %v4398_v16 = vpop.permute.xlu1 %4397 }
 0x436   :  { %v4685_v11 = vrot.slane %v4398_v16, %v8314_v55  ;;  %v4695_v13 = vrot.slane %v4404_v12, %v8313_v27 }
 0x438   :  { %v4686_v14 = vsel %vm1132_vm2, %v4685_v11, %v4681_v52 }
 0x439   :  { %v4401_v26 = vpop.permute.xlu0 %4400  ;;  %v4407_v38 = vpop.permute.xlu1 %4406 }
 0x43a   :  { %v4699_v20 = vrot.slane %v4407_v38, %v8312_v33  ;;  %v4690_v57 = vrot.slane %v4401_v26, %v8318_v41 }
 0x43c   :  { %v4700_v8 = vsel %vm1125_vm1, %v4699_v20, %v4695_v13  ;;  %v4691_v36 = vsel %vm1139_vm3, %v4690_v57, %v4686_v14 }
 0x43d   :  { %v4416_v25 = vpop.permute.xlu0 %4415  ;;  %v4410_v35 = vpop.permute.xlu1 %4409 }
 0x43e   :  { %v4704_v43 = vrot.slane %v4410_v35, %v8314_v55  ;;  %v4714_v28 = vrot.slane %v4416_v25, %v8313_v27 }
 0x440   :  { %v4705_v37 = vsel %vm1132_vm2, %v4704_v43, %v4700_v8 }
 0x441   :  { %v4413_v46 = vpop.permute.xlu0 %4412  ;;  %v4419_v31 = vpop.permute.xlu1 %4418 }
 0x442   :  { %v4709_v63 = vrot.slane %v4413_v46, %v8318_v41  ;;  %v4718_v47 = vrot.slane %v4419_v31, %v8312_v33  ;;  %v4739_v33 = vsel %vm1430_vm6, %v4653_v24, %v4738_v21 }
 0x443   :  { %v4740_v62 = vsel %vm1432_vm7, %v4672_v23, %v4739_v33 }
 0x444   :  { %v4710_v59 = vsel %vm1139_vm3, %v4709_v63, %v4705_v37  ;;  %v4719_v61 = vsel %vm1125_vm1, %v4718_v47, %v4714_v28  ;;  %v4741_v27 = vsel %vm1434_vm8, %v4691_v36, %v4740_v62 }
 0x445   :  { %v4425_v12 = vpop.permute.xlu0 %4424  ;;  %v4422_v16 = vpop.permute.xlu1 %4421  ;;  %v4742_v0 = vsel %vm1436_vm9, %v4710_v59, %v4741_v27 }
 0x446   :  { %v4728_v18 = vrot.slane %v4425_v12, %v8318_v41  ;;  %v4723_v4 = vrot.slane %v4422_v16, %v8314_v55 }
 0x448   :  { %v4724_v1 = vsel %vm1132_vm2, %v4723_v4, %v4719_v61 }
 0x449   :  { %v4729_v6 = vsel %vm1139_vm3, %v4728_v18, %v4724_v1  ;;  %v4753_v49 = vpop.permute.xlu0 %4752  ;;  %v4751_v26 = vpop.permute.xlu1 %4750 }
 0x44a   :  { %v4743_v41 = vsel %vm1438_vm10, %v4729_v6, %v4742_v0  ;;  %4756 = vst.msk [vmem:[#allocation5 + $0x50] sm:$0xff] %vm1460_vm12, %v4751_v26 }
 0x44b   :  { %4747 = vst.msk [vmem:[#allocation5 + $0x58] sm:$0xff] %vm1449_vm11, %v4743_v41 }
 0x44c   :  { %4757 = vst.msk [vmem:[#allocation5 + $0x58] sm:$0xff] %vm1460_vm12, %v4753_v49 }
 0x44d   :  { %4817 = shalt.err (!%p4814_p9)
}
 0x44e   :  { %s4818_s22 = scalar_lea.hbm %s8064_s4, 1536 }
 0x44f   :  { %p4819_p10 = scmp.ne.s32.totalorder %s8064_s4, %s4818_s22  ;;  %p4822_p11 = scmp.lt.u32.totalorder %s4818_s22, %s8064_s4 }
 0x451   :  { %p4824_p12 = pnand %p4822_p11, %p4819_p10 }
 0x453   :  { %4827 = shalt.err (!%p4824_p12)
}
 0x454   :  { %s4836_s27 = smov 128   ;;  %s4837_s28 = smov 8  }
 0x455   :  { %4769 = dma.vmem_to_hbm [thread:$0]  %s4764_s3, 1536, %s8064_s4, [#allocation3], %s4836_s27, %s4836_s27, %s4837_s28  }
 0x456   :  { %4830 = dma.done.wait [#allocation3], 1536  }
 0x457   :  { %4831 = vsyncadd [#allocation3], 4294965760 }
 0x458   :  { %4773 = vsyncpa [#allocation3], 1 }
 0x459   :  { %4774 = vsyncpa [#allocation4], 1 }

</bundles_post_ra>
